<compile_context>
chip_gen: v7x
topology: tpu7x:2x2x1
jax: 0.10.0
libtpu: 0.0.40
codegen_flags: <defaults>
</compile_context>

<pallas_src>
import functools

import jax
import jax.numpy as jnp
from jax.experimental import pallas as pl
from jax.experimental.pallas import tpu as pltpu

HIGHEST = jax.lax.Precision.HIGHEST


# ----------------------------------------------------------------------------
# Pallas kernel: gather (one-hot matmul) + fused Linear01 + ReLU + Linear2 + sigmoid.
# All activations are laid out transposed: (features, edges) -> edges on the lane axis.
# ----------------------------------------------------------------------------
def edge_mlp_kernel(dst_ref, src_ref, hid_t_ref, w01d_ref, w01s_ref, b01_ref,
                    w2t_ref, b2_ref, out_ref):
    n_nodes = hid_t_ref.shape[1]          # N
    tile_e = out_ref.shape[1]             # TE (lane axis)

    # one-hot selection matrices, nodes on sublanes / edges on lanes
    node_iota = jax.lax.broadcasted_iota(jnp.int32, (n_nodes, tile_e), 0)
    oh_dst = (node_iota == dst_ref[...]).astype(jnp.float32)          # (N, TE)
    oh_src = (node_iota == src_ref[...]).astype(jnp.float32)          # (N, TE)

    # fused gather: x_dst_t[h, e] = hidden[dst[e], h]   (exact 0/1 selection on the MXU)
    x_dst_t = jnp.dot(hid_t_ref[...], oh_dst,
                      preferred_element_type=jnp.float32, precision=HIGHEST)   # (H, TE)
    x_src_t = jnp.dot(hid_t_ref[...], oh_src,
                      preferred_element_type=jnp.float32, precision=HIGHEST)   # (H, TE)

    # fused Linear0+Linear1 (no nonlinearity between them in build_layers) + ReLU
    h1 = (jnp.dot(w01d_ref[...], x_dst_t,
                  preferred_element_type=jnp.float32, precision=HIGHEST)
          + jnp.dot(w01s_ref[...], x_src_t,
                    preferred_element_type=jnp.float32, precision=HIGHEST)
          + b01_ref[...])                                                       # (f1, TE)
    h1 = jnp.maximum(h1, 0.0)

    # final Linear + sigmoid, produced directly lane-dense (d_out on sublanes, edges on lanes)
    h2 = jnp.dot(w2t_ref[...], h1,
                 preferred_element_type=jnp.float32, precision=HIGHEST) + b2_ref[...]  # (d_out, TE)
    out_ref[...] = jax.nn.sigmoid(h2)


# ----------------------------------------------------------------------------
# Wrapper: pad/reshape indices, launch the tiled kernel, un-pad the output.
# ----------------------------------------------------------------------------
@functools.partial(jax.jit, static_argnames=("tile_e",))
def edge_weight_pallas(hidden, dst_idx, src_idx, fused, *, tile_e=512):
    """hidden: (N, H) f32. dst_idx/src_idx: (E,) int. fused: pre-fused transposed params."""
    N, H = hidden.shape
    E = dst_idx.shape[0]
    f1 = fused["w01d_t"].shape[0]
    d_out = fused["w2_t"].shape[0]
    assert tile_e % 128 == 0, "tile_e must be a multiple of 128 (lane width)"

    n_tiles = pl.cdiv(E, tile_e)
    e_pad = n_tiles * tile_e
    pad = e_pad - E
    # pad edges point at node 0 (valid); their outputs are sliced off below
    dst_p = jnp.pad(dst_idx.astype(jnp.int32), (0, pad)).reshape(n_tiles, 1, tile_e)
    src_p = jnp.pad(src_idx.astype(jnp.int32), (0, pad)).reshape(n_tiles, 1, tile_e)
    hidden_t = jnp.transpose(hidden.astype(jnp.float32))                      # (H, N)

    full2 = lambda i: (0, 0)   # weights stay resident in VMEM across the whole grid

    out = pl.pallas_call(
        edge_mlp_kernel,
        out_shape=jax.ShapeDtypeStruct((n_tiles, d_out, tile_e), jnp.float32),
        grid_spec=pltpu.PrefetchScalarGridSpec(
            num_scalar_prefetch=0,
            grid=(n_tiles,),
            in_specs=[
                pl.BlockSpec((None, 1, tile_e), lambda i: (i, 0, 0)),   # dst indices (lane-dense)
                pl.BlockSpec((None, 1, tile_e), lambda i: (i, 0, 0)),   # src indices (lane-dense)
                pl.BlockSpec((H, N), full2),                            # hidden^T, resident
                pl.BlockSpec((f1, H), full2),                           # W01 dst half (transposed)
                pl.BlockSpec((f1, H), full2),                           # W01 src half (transposed)
                pl.BlockSpec((f1, 1), full2),                           # B01^T
                pl.BlockSpec((d_out, f1), full2),                       # w2^T
                pl.BlockSpec((d_out, 1), full2),                        # b2^T
            ],
            out_specs=pl.BlockSpec((None, d_out, tile_e), lambda i: (i, 0, 0)),
        ),
        compiler_params=pltpu.CompilerParams(dimension_semantics=("parallel",)),
    )(dst_p, src_p, hidden_t, fused["w01d_t"], fused["w01s_t"],
      fused["b01_t"], fused["w2_t"], fused["b2_t"])

    # (n_tiles, d_out, tile_e) -> (E, d_out)
    return jnp.transpose(out, (0, 2, 1)).reshape(e_pad, d_out)[:E]


# ----------------------------------------------------------------------------
# EdgeNetwork wrapper (parameter init + graph gather glue in plain JAX)
# ----------------------------------------------------------------------------
class EdgeNetworkPallas:
    def __init__(self, layers, key):
        # layers = [input_size, f0, f1, output_size]; build_layers(layers[0], layers[-1], layers[1:-1])
        assert len(layers) == 4, "this setup uses one hidden feature pair: [in, f0, f1, out]"
        d_in, f0, f1, d_out = layers
        assert d_in % 2 == 0
        k0, k1, k2, k3, k4, k5 = jax.random.split(key, 6)
        scale = 0.1
        # weights stored (in, out) == PyTorch nn.Linear weight transposed
        self.params = {
            "w0": scale * jax.random.normal(k0, (d_in, f0), jnp.float32),
            "b0": scale * jax.random.normal(k1, (1, f0), jnp.float32),
            "w1": scale * jax.random.normal(k2, (f0, f1), jnp.float32),
            "b1": scale * jax.random.normal(k3, (1, f1), jnp.float32),
            "w2": scale * jax.random.normal(k4, (f1, d_out), jnp.float32),
            "b2": scale * jax.random.normal(k5, (1, d_out), jnp.float32),
        }
        self.inputs = ("node features",)  # self.inputs in the original class

        # Pre-fuse Linear0/Linear1 (exact up to fp reordering) and pre-transpose to the
        # feature-on-sublane / edge-on-lane layout the kernel uses.  Done once.
        H = d_in // 2
        w01 = jnp.dot(self.params["w0"], self.params["w1"], precision=HIGHEST)      # (2H, f1)
        b01 = jnp.dot(self.params["b0"], self.params["w1"], precision=HIGHEST) + self.params["b1"]
        self.fused = {
            "w01d_t": jnp.transpose(w01[:H]),                 # (f1, H)  -- dst half
            "w01s_t": jnp.transpose(w01[H:]),                 # (f1, H)  -- src half
            "b01_t": jnp.transpose(b01),                      # (f1, 1)
            "w2_t": jnp.transpose(self.params["w2"]),         # (d_out, f1)
            "b2_t": jnp.transpose(self.params["b2"]),         # (d_out, 1)
        }

    def forward(self, node_data, src_idx, dst_idx, *, tile_e=512):
        """node_data: dict with 'node hidden rep' (N, H) and 'node features' (N, F).
        src_idx, dst_idx: (E,) int32 edge endpoints."""
        hidden = node_data["node hidden rep"].astype(jnp.float32)
        # dst/src gather + concat + MLP + sigmoid all fused in the Pallas kernel
        edge_weight = edge_weight_pallas(hidden, dst_idx, src_idx, self.fused, tile_e=tile_e)
        # edge message = concat of src node input features (pure gather/concat, no hot compute)
        edge_message = jnp.concatenate(
            [node_data[name][src_idx] for name in self.inputs], axis=1
        )
        return {"edge weight": edge_weight, "edge message": edge_message}


# ----------------------------------------------------------------------------
# Reference (pure JAX) for a sanity check
# ----------------------------------------------------------------------------
def reference_mlp(x, p):
    h0 = jnp.dot(x, p["w0"], precision=HIGHEST) + p["b0"]
    h1 = jnp.maximum(jnp.dot(h0, p["w1"], precision=HIGHEST) + p["b1"], 0.0)
    return jax.nn.sigmoid(jnp.dot(h1, p["w2"], precision=HIGHEST) + p["b2"])


if __name__ == "__main__":
    key = jax.random.PRNGKey(0)
    k_net, k_hid, k_feat, k_src, k_dst = jax.random.split(key, 5)

    N_NODES = 64      # nodes in the graph
    HIDDEN = 32       # 'node hidden rep' dim
    FEAT = 8          # 'node features' dim (edge message source)
    N_EDGES = 2000    # edges (NOT a multiple of tile_e -> exercises the pad/slice path)
    TILE_E = 512      # grid = cdiv(2000, 512) = 4 tiles (even -> balanced on v7x's 2 TCs)

    layers = [2 * HIDDEN, 32, 32, 1]   # EdgeNetwork(layers): in=2H, features=[32,32], out=1
    net = EdgeNetworkPallas(layers, k_net)

    node_data = {
        "node hidden rep": jax.random.normal(k_hid, (N_NODES, HIDDEN), jnp.float32),
        "node features": jax.random.normal(k_feat, (N_NODES, FEAT), jnp.float32),
    }
    src_idx = jax.random.randint(k_src, (N_EDGES,), 0, N_NODES)
    dst_idx = jax.random.randint(k_dst, (N_EDGES,), 0, N_NODES)

    out = net.forward(node_data, src_idx, dst_idx, tile_e=TILE_E)
    jax.block_until_ready(out)

    # sanity check against pure-JAX reference (un-fused MLP on materialized edge_input)
    hidden = node_data["node hidden rep"]
    edge_input = jnp.concatenate([hidden[dst_idx], hidden[src_idx]], axis=1)
    ref = reference_mlp(edge_input, net.params)
    assert out["edge weight"].shape == (N_EDGES, 1)
    assert out["edge message"].shape == (N_EDGES, FEAT)
    assert jnp.allclose(out["edge weight"], ref, atol=1e-4, rtol=1e-4)

    print("KERNEL_OK")
</pallas_src>

<mosaic_0001>
module attributes {stable_mosaic.version = 11 : i64} {
  func.func @edge_mlp_kernel(%arg0: i32, %arg1: memref<1x1x512xi32, #tpu.memory_space<vmem>>, %arg2: memref<1x1x512xi32, #tpu.memory_space<vmem>>, %arg3: memref<32x64xf32, #tpu.memory_space<vmem>>, %arg4: memref<32x32xf32, #tpu.memory_space<vmem>>, %arg5: memref<32x32xf32, #tpu.memory_space<vmem>>, %arg6: memref<32x1xf32, #tpu.memory_space<vmem>>, %arg7: memref<1x32xf32, #tpu.memory_space<vmem>>, %arg8: memref<1x1xf32, #tpu.memory_space<vmem>>, %arg9: memref<1x1x512xf32, #tpu.memory_space<vmem>>) attributes {dimension_semantics = [#tpu.dimension_semantics<parallel>], iteration_bounds = array<i64: 4>, scalar_prefetch = 0 : i64, scratch_operands = 0 : i64, tpu.core_type = #tpu.core_type<tc>, window_params = [{transform_indices = @transform_0, window_bounds = array<i64: 1, 1, 512>}, {transform_indices = @transform_1, window_bounds = array<i64: 1, 1, 512>}, {pipeline_mode = #tpu.pipeline_mode<synchronous>, transform_indices = @transform_2, window_bounds = array<i64: 32, 64>}, {pipeline_mode = #tpu.pipeline_mode<synchronous>, transform_indices = @transform_3, window_bounds = array<i64: 32, 32>}, {pipeline_mode = #tpu.pipeline_mode<synchronous>, transform_indices = @transform_4, window_bounds = array<i64: 32, 32>}, {pipeline_mode = #tpu.pipeline_mode<synchronous>, transform_indices = @transform_5, window_bounds = array<i64: 32, 1>}, {pipeline_mode = #tpu.pipeline_mode<synchronous>, transform_indices = @transform_6, window_bounds = array<i64: 1, 32>}, {pipeline_mode = #tpu.pipeline_mode<synchronous>, transform_indices = @transform_7, window_bounds = array<i64: 1, 1>}, {transform_indices = @transform_8, window_bounds = array<i64: 1, 1, 512>}]} {
    %0 = tpu.iota {dimensions = array<i32: 0>} : vector<64x512xi32>
    %c0 = arith.constant 0 : index
    %c0_0 = arith.constant 0 : index
    %c0_1 = arith.constant 0 : index
    %1 = vector.load %arg1[%c0, %c0_0, %c0_1] : memref<1x1x512xi32, #tpu.memory_space<vmem>>, vector<1x1x512xi32>
    %2 = vector.shape_cast %1 : vector<1x1x512xi32> to vector<1x512xi32>
    %3 = vector.broadcast %2 : vector<1x512xi32> to vector<64x512xi32>
    %4 = arith.cmpi eq, %0, %3 : vector<64x512xi32>
    %5 = arith.extui %4 : vector<64x512xi1> to vector<64x512xi32>
    %6 = arith.sitofp %5 : vector<64x512xi32> to vector<64x512xf32>
    %c0_2 = arith.constant 0 : index
    %c0_3 = arith.constant 0 : index
    %c0_4 = arith.constant 0 : index
    %7 = vector.load %arg2[%c0_2, %c0_3, %c0_4] : memref<1x1x512xi32, #tpu.memory_space<vmem>>, vector<1x1x512xi32>
    %8 = vector.shape_cast %7 : vector<1x1x512xi32> to vector<1x512xi32>
    %9 = vector.broadcast %8 : vector<1x512xi32> to vector<64x512xi32>
    %10 = arith.cmpi eq, %0, %9 : vector<64x512xi32>
    %11 = arith.extui %10 : vector<64x512xi1> to vector<64x512xi32>
    %12 = arith.sitofp %11 : vector<64x512xi32> to vector<64x512xf32>
    %c0_5 = arith.constant 0 : index
    %c0_6 = arith.constant 0 : index
    %13 = vector.load %arg3[%c0_5, %c0_6] : memref<32x64xf32, #tpu.memory_space<vmem>>, vector<32x64xf32>
    %cst = arith.constant dense<0.000000e+00> : vector<32x512xf32>
    %14 = tpu.matmul %13, %6, %cst {dimension_numbers = #tpu.dot_dimension_numbers<[1], [0], [0], [1], [0, 0, 1, 1], [], []>, precision = #tpu.contract_precision<fp32>} : vector<32x64xf32>, vector<64x512xf32>, vector<32x512xf32> -> vector<32x512xf32>
    %c0_7 = arith.constant 0 : index
    %c0_8 = arith.constant 0 : index
    %15 = vector.load %arg3[%c0_7, %c0_8] : memref<32x64xf32, #tpu.memory_space<vmem>>, vector<32x64xf32>
    %cst_9 = arith.constant dense<0.000000e+00> : vector<32x512xf32>
    %16 = tpu.matmul %15, %12, %cst_9 {dimension_numbers = #tpu.dot_dimension_numbers<[1], [0], [0], [1], [0, 0, 1, 1], [], []>, precision = #tpu.contract_precision<fp32>} : vector<32x64xf32>, vector<64x512xf32>, vector<32x512xf32> -> vector<32x512xf32>
    %c0_10 = arith.constant 0 : index
    %c0_11 = arith.constant 0 : index
    %17 = vector.load %arg4[%c0_10, %c0_11] : memref<32x32xf32, #tpu.memory_space<vmem>>, vector<32x32xf32>
    %cst_12 = arith.constant dense<0.000000e+00> : vector<32x512xf32>
    %18 = tpu.matmul %17, %14, %cst_12 {dimension_numbers = #tpu.dot_dimension_numbers<[1], [0], [0], [1], [0, 0, 1, 1], [], []>, precision = #tpu.contract_precision<fp32>} : vector<32x32xf32>, vector<32x512xf32>, vector<32x512xf32> -> vector<32x512xf32>
    %c0_13 = arith.constant 0 : index
    %c0_14 = arith.constant 0 : index
    %19 = vector.load %arg5[%c0_13, %c0_14] : memref<32x32xf32, #tpu.memory_space<vmem>>, vector<32x32xf32>
    %cst_15 = arith.constant dense<0.000000e+00> : vector<32x512xf32>
    %20 = tpu.matmul %19, %16, %cst_15 {dimension_numbers = #tpu.dot_dimension_numbers<[1], [0], [0], [1], [0, 0, 1, 1], [], []>, precision = #tpu.contract_precision<fp32>} : vector<32x32xf32>, vector<32x512xf32>, vector<32x512xf32> -> vector<32x512xf32>
    %21 = arith.addf %18, %20 : vector<32x512xf32>
    %c0_16 = arith.constant 0 : index
    %c0_17 = arith.constant 0 : index
    %22 = vector.load %arg6[%c0_16, %c0_17] : memref<32x1xf32, #tpu.memory_space<vmem>>, vector<32x1xf32>
    %23 = vector.broadcast %22 : vector<32x1xf32> to vector<32x512xf32>
    %24 = arith.addf %21, %23 : vector<32x512xf32>
    %cst_18 = arith.constant 0.000000e+00 : f32
    %25 = vector.broadcast %cst_18 : f32 to vector<32x512xf32>
    %26 = arith.maximumf %24, %25 : vector<32x512xf32>
    %c0_19 = arith.constant 0 : index
    %c0_20 = arith.constant 0 : index
    %27 = vector.load %arg7[%c0_19, %c0_20] : memref<1x32xf32, #tpu.memory_space<vmem>>, vector<1x32xf32>
    %cst_21 = arith.constant dense<0.000000e+00> : vector<1x512xf32>
    %28 = tpu.matmul %27, %26, %cst_21 {dimension_numbers = #tpu.dot_dimension_numbers<[1], [0], [0], [1], [0, 0, 1, 1], [], []>, precision = #tpu.contract_precision<fp32>} : vector<1x32xf32>, vector<32x512xf32>, vector<1x512xf32> -> vector<1x512xf32>
    %c0_22 = arith.constant 0 : index
    %c0_23 = arith.constant 0 : index
    %29 = vector.load %arg8[%c0_22, %c0_23] : memref<1x1xf32, #tpu.memory_space<vmem>>, vector<1x1xf32>
    %30 = vector.broadcast %29 : vector<1x1xf32> to vector<1x512xf32>
    %31 = arith.addf %28, %30 : vector<1x512xf32>
    %32 = arith.negf %31 : vector<1x512xf32>
    %33 = math.exp %32 : vector<1x512xf32>
    %cst_24 = arith.constant 1.000000e+00 : f32
    %34 = vector.broadcast %cst_24 : f32 to vector<1x512xf32>
    %35 = arith.addf %34, %33 : vector<1x512xf32>
    %36 = arith.divf %34, %35 : vector<1x512xf32>
    %c0_25 = arith.constant 0 : index
    %c0_26 = arith.constant 0 : index
    %c0_27 = arith.constant 0 : index
    %37 = vector.load %arg9[%c0_25, %c0_26, %c0_27] : memref<1x1x512xf32, #tpu.memory_space<vmem>>, vector<1x1x512xf32>
    %38 = vector.shape_cast %37 : vector<1x1x512xf32> to vector<1x512xf32>
    %39 = vector.shape_cast %36 : vector<1x512xf32> to vector<1x1x512xf32>
    tpu.vector_store %arg9[%c0_25, %c0_26, %c0_27], %39 {strides = array<i32>} : memref<1x1x512xf32, #tpu.memory_space<vmem>>, vector<1x1x512xf32>,
    return
  }
  func.func @transform_0(%arg0: i32) -> (i32, i32, i32) {
    %c0_i32 = arith.constant 0 : i32
    %c0_i32_0 = arith.constant 0 : i32
    %c0_i32_1 = arith.constant 0 : i32
    return %arg0, %c0_i32, %c0_i32_0 : i32, i32, i32
  }
  func.func @transform_1(%arg0: i32) -> (i32, i32, i32) {
    %c0_i32 = arith.constant 0 : i32
    %c0_i32_0 = arith.constant 0 : i32
    %c0_i32_1 = arith.constant 0 : i32
    return %arg0, %c0_i32, %c0_i32_0 : i32, i32, i32
  }
  func.func @transform_2(%arg0: i32) -> (i32, i32) {
    %c0_i32 = arith.constant 0 : i32
    %c0_i32_0 = arith.constant 0 : i32
    %c0_i32_1 = arith.constant 0 : i32
    return %c0_i32, %c0_i32_0 : i32, i32
  }
  func.func @transform_3(%arg0: i32) -> (i32, i32) {
    %c0_i32 = arith.constant 0 : i32
    %c0_i32_0 = arith.constant 0 : i32
    %c0_i32_1 = arith.constant 0 : i32
    return %c0_i32, %c0_i32_0 : i32, i32
  }
  func.func @transform_4(%arg0: i32) -> (i32, i32) {
    %c0_i32 = arith.constant 0 : i32
    %c0_i32_0 = arith.constant 0 : i32
    %c0_i32_1 = arith.constant 0 : i32
    return %c0_i32, %c0_i32_0 : i32, i32
  }
  func.func @transform_5(%arg0: i32) -> (i32, i32) {
    %c0_i32 = arith.constant 0 : i32
    %c0_i32_0 = arith.constant 0 : i32
    %c0_i32_1 = arith.constant 0 : i32
    return %c0_i32, %c0_i32_0 : i32, i32
  }
  func.func @transform_6(%arg0: i32) -> (i32, i32) {
    %c0_i32 = arith.constant 0 : i32
    %c0_i32_0 = arith.constant 0 : i32
    %c0_i32_1 = arith.constant 0 : i32
    return %c0_i32, %c0_i32_0 : i32, i32
  }
  func.func @transform_7(%arg0: i32) -> (i32, i32) {
    %c0_i32 = arith.constant 0 : i32
    %c0_i32_0 = arith.constant 0 : i32
    %c0_i32_1 = arith.constant 0 : i32
    return %c0_i32, %c0_i32_0 : i32, i32
  }
  func.func @transform_8(%arg0: i32) -> (i32, i32, i32) {
    %c0_i32 = arith.constant 0 : i32
    %c0_i32_0 = arith.constant 0 : i32
    %c0_i32_1 = arith.constant 0 : i32
    return %arg0, %c0_i32, %c0_i32_0 : i32, i32, i32
  }
}

</mosaic_0001>

<bundles_post_ra>
// kernel: edge_weight_pallas.1
= control target key start
LH: loop header
LB: loop body
LE: loop exit
PB: predicated region body
PF: predicated region fallthrough
CT: control target
= control target key end

     0   :  { %s12173_s0 = inlined_call_operand.vmem [shape: s32[4,1,512], index: 0, kind: input, shape index: {}]   ;;  %s12174_s1 = inlined_call_operand.vmem [shape: s32[4,1,512], index: 1, kind: input, shape index: {}]   ;;  %s12175_s2 = inlined_call_operand.vmem [shape: f32[32,64], index: 2, kind: input, shape index: {}]   ;;  %s12176_s3 = inlined_call_operand.vmem [shape: f32[32,32], index: 3, kind: input, shape index: {}]   ;;  %s12177_s4 = inlined_call_operand.vmem [shape: f32[32,32], index: 4, kind: input, shape index: {}]   ;;  %s12178_s5 = inlined_call_operand.vmem [shape: f32[32,1], index: 5, kind: input, shape index: {}]   ;;  %s12179_s6 = inlined_call_operand.vmem [shape: f32[1,32], index: 6, kind: input, shape index: {}]   ;;  %s12180_s7 = inlined_call_operand.<no memory space> [shape: f32[1,1], index: 7, kind: input, shape index: {}]   ;;  %s12181_s8 = inlined_call_operand.hbm [shape: f32[4,1,512], index: 8, kind: output, shape index: {}]  }
   0x1   :  { %v13_v0 = vstv %s12180_s7 }
   0x2   :  { %14 = vst [vmem:[#allocation2] sm:$0x1] %v13_v0 }
   0x3   :  { %15 = vsyncpa [#allocation4], 0 }
   0x4   :  { %17 = vsyncpa [#allocation4 + $0x1], 0  ;;  %s9324_s29 = smov 0   ;;  %s9326_s30 = smov 0  }
   0x5   :  { %s9328_s9 = smov 0   ;;  %s9330_s10 = smov 0  }
   0x6 LB: > { %s9345_s7 = sadd.s32 4294967295, %s9269_s10   ;;  %s7841_s11 = sadd.s32 4294967294, %s9269_s10   ;;  %s9269_s10 = sphi %s9330_s10, %s12889_s10   ;;  %s9265_s9 = sphi %s9328_s9, %s12888_s9   ;;  %s9261_s30 = sphi %s9326_s30, %s12887_s30   ;;  %s9257_s29 = sphi %s9324_s29, %s12886_s29  }
   0x7   : > { %s9349_s12 = sadd.s32 1, %s9269_s10   ;;  %s208_s13 = sadd.s32 1, %s9265_s9 }
   0x8   : > { %s205_s14 = ssub.s32 %s9269_s10, %s9349_s12  ;;  %p218_p0 = scmp.ne.s32.totalorder %s9265_s9, %s9261_s30 }
   0x9   : > { %p206_p1 = scmp.eq.s32.totalorder %s205_s14, 0  ;;  %p219_p2 = scmp.eq.s32.totalorder %s9345_s7, 3 }
   0xa   : > { %p224_p3 = scmp.ne.s32.totalorder %s9261_s30, %s9257_s29  ;;  %p225_p4 = scmp.eq.s32.totalorder %s7841_s11, 3 }
   0xb   : > { %s9360_s15 = scalar_select %p206_p1, %s9265_s9, %s208_s13  }
   0xc   : > { %p9362_p5 = por %p219_p2, %p218_p0  ;;  %p9366_p6 = por %p225_p4, %p224_p3 }
   0xd   : > { %p7844_p7 = scmp.ge.s32.totalorder %s9269_s10, 1  ;;  %p275_p8 = scmp.lt.s32.totalorder %s9269_s10, 5 }
   0xf   : > { %p276_p9 = pnand %p7844_p7, %p275_p8 }
  0x11   : > { %279 = sbr.rel (%p276_p9) target bundleno = 1238 (0x4d6), region = 52 }
  0x18   : > { %p312_p10 = scmp.lt.s32.totalorder %s9345_s7, 3  ;;  %v12182_v1 = vlaneseq  ;;  %v555_v2 = vld [vmem:[%s12175_s2] sm:$0xff]  ;;  %vm559_vm0 = vcmask 523264   ;;  %v12224_v3 = vmov 0.0   ;;  %v556_v5 = vld [vmem:[%s12175_s2 + $0x8] sm:$0xff]  ;;  %v557_v6 = vld [vmem:[%s12175_s2 + $0x10] sm:$0xff] }
  0x19   : > { %652 = vmatprep.mubr.f32.mxu0 %v12224_v3  ;;  %1446 = vmatprep.mubr.f32.mxu1 %v12224_v3  ;;  %v561_v4 = vsel %vm559_vm0, %v555_v2, 0  ;;  %v558_v7 = vld [vmem:[%s12175_s2 + $0x18] sm:$0xff]  ;;  %v564_v10 = vsel %vm559_vm0, %v556_v5, 0  ;;  %v567_v11 = vsel %vm559_vm0, %v557_v6, 0  ;;  %v12200_v41 = vmov 1.0|1.0  }
  0x1a   : > { %s9388_s26 = scalar_select %p312_p10, %s9345_s7, 3  ;;  %v9391_v8 = vshrl.u32 %v12182_v1, 7  ;;  %v9393_v9 = vand.u32 4294901760, %v561_v4  ;;  %v9395_v12 = vand.u32 4294901760, %v564_v10  ;;  %v9397_v13 = vand.u32 4294901760, %v567_v11 }
  0x1b   : > { %v9399_v14 = vsel %vm559_vm0, %v558_v7, 0  ;;  %v12442_v49 = vmov 0  ;;  %v12445_v54 = vmov 0  ;;  %v12448_v61 = vmov 0  ;;  %s309_s18 = sand.u32 1, %s9261_s30   ;;  %s8113_s20 = sshll.u32 %s9345_s7, 6 }
  0x1c   : > { %12424 = vst [vmem:[#allocation6_spill] sm:$0xff] %v9391_v8  ;;  %s7846_s27 = sshll.u32 %s9388_s26, 2  ;;  %v9403_v15 = vadd.s32 8, %v9391_v8  ;;  %v12189_v16 = vsub.s32 1, %v9391_v8  ;;  %v12184_v17 = vsub.s32 3, %v9391_v8  ;;  %v9408_v18 = vsub.s32 0, %v9391_v8  ;;  %s12131_s25 = scalar_lea.hbm %s12181_s8, %s8113_s20 }
  0x1d   : > { %s315_s13 = scalar_lea.vmem %s12173_s0, %s7846_s27  ;;  %v12183_v19 = vsub.s32 2, %v9391_v8  ;;  %v9417_v20 = vadd.s32 16, %v9391_v8  ;;  %v9420_v21 = vadd.s32 24, %v9391_v8  ;;  %v9423_v22 = vadd.s32 32, %v9391_v8  ;;  %s319_s19 = scalar_lea.vmem %s12174_s1, %s7846_s27 }
  0x1e   : > { %12425 = vst [vmem:[#allocation7_spill] sm:$0xff] %v9403_v15  ;;  %12426 = vst [vmem:[#allocation8_spill] sm:$0xff] %v9408_v18  ;;  %v329_v23 = vld [vmem:[%s315_s13] sm:$0xf]  ;;  %v9426_v24 = vadd.s32 40, %v9391_v8  ;;  %v9429_v25 = vadd.s32 48, %v9391_v8  ;;  %v9435_v27 = vsub.f32 %v561_v4, %v9393_v9  ;;  %v9456_v33 = vsub.f32 %v564_v10, %v9395_v12 }
  0x1f   : > { %12427 = vst [vmem:[#allocation9_spill] sm:$0xff] %v9417_v20  ;;  %12428 = vst [vmem:[#allocation10_spill] sm:$0xff] %v9420_v21  ;;  %v9432_v26 = vadd.s32 56, %v9391_v8  ;;  %v9439_v28 = vrot.slane %v329_v23, %v12189_v16  ;;  %v9443_v29 = vrot.slane %v329_v23, %v12184_v17  ;;  %v9446_v30 = vrot.slane %v329_v23, %v9408_v18  ;;  %s7756_s26 = scalar_lea.sflag [#allocation4], %s309_s18  ;;  %s9275_s7 = smov [#allocation3]  }
  0x20   : > { %12429 = vst [vmem:[#allocation11_spill] sm:$0xff] %v9423_v22  ;;  %12430 = vst [vmem:[#allocation12_spill] sm:$0xff] %v9426_v24  ;;  %v9450_v31 = vrot.slane %v329_v23, %v12183_v19  ;;  %v9453_v32 = vand.u32 4294901760, %v9435_v27  ;;  %v9459_v34 = vsub.f32 %v567_v11, %v9397_v13  ;;  %v9462_v35 = vand.u32 4294901760, %v9399_v14  ;;  %s9211_s28 = sshll.u32 %s9275_s7, 4  ;;  %s9212_s28 = int_to_ptr.vmem [resolvable:$false] %s9211_s28 }
  0x21   : > { %12431 = vst [vmem:[#allocation13_spill] sm:$0xff] %v9429_v25  ;;  %12432 = vst [vmem:[#allocation14_spill] sm:$0xff] %v9432_v26  ;;  %vm347_vm1 = vcmp.eq.s32.totalorder %v9391_v8, %v9439_v28  ;;  %vm351_vm2 = vcmp.eq.s32.totalorder %v9403_v15, %v9439_v28  ;;  %vm349_vm3 = vcmp.eq.s32.totalorder %v9391_v8, %v9443_v29  ;;  %v12451_v4 = vmov 0  ;;  %s9213_s11 = scalar_lea.vmem %s9212_s28, 128 }
  0x22   : > { %12433 = vst [vmem:[#allocation15_spill] sm:$0xff] %v9435_v27  ;;  %12434 = vst [vmem:[#allocation16_spill] sm:$0xff] %v9453_v32  ;;  %vm353_vm4 = vcmp.eq.s32.totalorder %v9403_v15, %v9443_v29  ;;  %v7849_v36 = vsel %vm347_vm1, 1.0, %v12224_v3  ;;  %v7853_v37 = vsel %vm351_vm2, 1.0, %v12224_v3  ;;  %v7851_v39 = vsel %vm349_vm3, 1.0, %v12224_v3 }
  0x23   : > { %12435 = vst [vmem:[#allocation17_spill] sm:$0xff] %v9456_v33  ;;  %12436 = vst [vmem:[#allocation18_spill] sm:$0xff] %v9459_v34  ;;  %v7855_v40 = vsel %vm353_vm4, 1.0, %v12224_v3  ;;  %v9483_v42 = vsub.f32 %v7849_v36, %v7849_v36  ;;  %v9485_v43 = vsub.f32 %v7853_v37, %v7853_v37  ;;  %v9491_v45 = vsub.f32 %v7851_v39, %v7851_v39 }
  0x24   : > { %12437 = vst [vmem:[#allocation19_spill] sm:$0xff] %v9462_v35  ;;  %vm9474_vm5 = vmpackc.low %vm351_vm2, %vm347_vm1  ;;  %v9493_v46 = vsub.f32 %v7855_v40, %v7855_v40  ;;  %vm346_vm7 = vcmp.eq.s32.totalorder %v9391_v8, %v9446_v30  ;;  %vm350_vm8 = vcmp.eq.s32.totalorder %v9403_v15, %v9446_v30  ;;  %vm348_vm9 = vcmp.eq.s32.totalorder %v9391_v8, %v9450_v31 }
  0x25   : > { %8115 = vmatprep.subr.msk.bf16.mxu0 %vm9474_vm5, %v12200_v41  ;;  %vm9487_vm6 = vmpackc.low %vm353_vm4, %vm349_vm3  ;;  %vm352_vm10 = vcmp.eq.s32.totalorder %v9403_v15, %v9450_v31  ;;  %v7848_v47 = vsel %vm346_vm7, 1.0, %v12224_v3  ;;  %v7852_v48 = vsel %vm350_vm8, 1.0, %v12224_v3  ;;  %v7850_v50 = vsel %vm348_vm9, 1.0, %v12224_v3 }
  0x26   : > { %8211 = vmatprep.subr.msk.bf16.mxu1 %vm9487_vm6, %v12200_v41  ;;  %vm9508_vm11 = vmpackc.low %vm350_vm8, %vm346_vm7  ;;  %v7854_v51 = vsel %vm352_vm10, 1.0, %v12224_v3  ;;  %v9517_v52 = vsub.f32 %v7848_v47, %v7848_v47  ;;  %v9519_v53 = vsub.f32 %v7852_v48, %v7852_v48  ;;  %v9525_v55 = vsub.f32 %v7850_v50, %v7850_v50 }
  0x27   : > { %v12443_v49 = vsel %vm9508_vm11, 4294967295, %v12442_v49  ;;  %8117 = vmatpush1.bf16.msk.msra.mxu0 %vm9508_vm11, %v12200_v41  ;;  %vm9521_vm12 = vmpackc.low %vm352_vm10, %vm348_vm9  ;;  %v9527_v56 = vsub.f32 %v7854_v51, %v7854_v51  ;;  %vm355_vm13 = vcmp.eq.s32.totalorder %v9417_v20, %v9439_v28  ;;  %vm359_vm14 = vcmp.eq.s32.totalorder %v9420_v21, %v9439_v28 }
  0x28   : > { %12444 = vst [vmem:[#allocation20_spill] sm:$0xff] %v12443_v49  ;;  %v12446_v54 = vsel %vm9521_vm12, 4294967295, %v12445_v54  ;;  %8213 = vmatpush1.bf16.msk.msra.mxu1 %vm9521_vm12, %v12200_v41  ;;  %vm357_vm15 = vcmp.eq.s32.totalorder %v9417_v20, %v9443_v29  ;;  %vm361_vm0 = vcmp.eq.s32.totalorder %v9420_v21, %v9443_v29  ;;  %v12188_v57 = vand.u32 4294901760, %v9517_v52  ;;  %vm9544_vm1 = vmpackc.low %vm359_vm14, %vm355_vm13 }
  0x29   : > { %12447 = vst [vmem:[#allocation21_spill] sm:$0xff] %v12446_v54  ;;  %v12187_v58 = vand.u32 4294901760, %v9519_v53  ;;  %v12186_v59 = vand.u32 4294901760, %v9525_v55  ;;  %v12185_v60 = vand.u32 4294901760, %v9527_v56  ;;  %v12449_v61 = vsel %vm9544_vm1, 4294967295, %v12448_v61  ;;  %8119 = vmatprep.subr.msk.bf16.mxu0 %vm9544_vm1, %v12200_v41  ;;  %vm9555_vm2 = vmpackc.low %vm361_vm0, %vm357_vm15 }
  0x2a   : > { %12450 = vst [vmem:[#allocation22_spill] sm:$0xff] %v12449_v61  ;;  %v7857_v62 = vsel %vm355_vm13, 1.0, %v12224_v3  ;;  %v7861_v63 = vsel %vm359_vm14, 1.0, %v12224_v3  ;;  %v7859_v0 = vsel %vm357_vm15, 1.0, %v12224_v3  ;;  %v7863_v2 = vsel %vm361_vm0, 1.0, %v12224_v3  ;;  %8215 = vmatprep.subr.msk.bf16.mxu1 %vm9555_vm2, %v12200_v41 }
  0x2b   : > { %v12452_v4 = vsel %vm9555_vm2, 4294967295, %v12451_v4  ;;  %v9562_v5 = vsub.f32 %v9517_v52, %v12188_v57  ;;  %v9567_v6 = vsub.f32 %v9519_v53, %v12187_v58  ;;  %v9572_v7 = vsub.f32 %v9525_v55, %v12186_v59 }
  0x2c   : > { %12453 = vst [vmem:[#allocation23_spill] sm:$0xff] %v12452_v4  ;;  %v9577_v10 = vsub.f32 %v9527_v56, %v12185_v60  ;;  %v9582_v11 = vsub.f32 %v7857_v62, %v7857_v62  ;;  %v9584_v23 = vsub.f32 %v7861_v63, %v7861_v63  ;;  %v9586_v36 = vsub.f32 %v7859_v0, %v7859_v0 }
  0x2d   : > { %v9588_v37 = vsub.f32 %v7863_v2, %v7863_v2  ;;  %vm354_vm3 = vcmp.eq.s32.totalorder %v9417_v20, %v9446_v30  ;;  %vm358_vm4 = vcmp.eq.s32.totalorder %v9420_v21, %v9446_v30  ;;  %vm356_vm7 = vcmp.eq.s32.totalorder %v9417_v20, %v9450_v31 }
  0x2e   : > { %vm360_vm8 = vcmp.eq.s32.totalorder %v9420_v21, %v9450_v31  ;;  %v7856_v50 = vsel %vm354_vm3, 1.0, %v12224_v3  ;;  %v7860_v51 = vsel %vm358_vm4, 1.0, %v12224_v3  ;;  %vm9604_vm9 = vmpackc.low %vm358_vm4, %vm354_vm3  ;;  %v12454_v62 = vmov 0 }
  0x2f   : > { %v12455_v62 = vsel %vm9604_vm9, 4294967295, %v12454_v62  ;;  %v7858_v63 = vsel %vm356_vm7, 1.0, %v12224_v3  ;;  %v7862_v0 = vsel %vm360_vm8, 1.0, %v12224_v3  ;;  %8121 = vmatpush1.bf16.msk.msra.mxu0 %vm9604_vm9, %v12200_v41  ;;  %v9613_v2 = vsub.f32 %v7856_v50, %v7856_v50  ;;  %vm9617_vm10 = vmpackc.low %vm360_vm8, %vm356_vm7 }
  0x30   : > { %12456 = vst [vmem:[#allocation24_spill] sm:$0xff] %v12455_v62  ;;  %v9615_v1 = vsub.f32 %v7860_v51, %v7860_v51  ;;  %v12457_v19 = vmov 0  ;;  %v9621_v17 = vsub.f32 %v7858_v63, %v7858_v63  ;;  %v9623_v60 = vsub.f32 %v7862_v0, %v7862_v0  ;;  %8217 = vmatpush1.bf16.msk.msra.mxu1 %vm9617_vm10, %v12200_v41 }
  0x31   : > { %v12458_v19 = vsel %vm9617_vm10, 4294967295, %v12457_v19  ;;  %vm363_vm13 = vcmp.eq.s32.totalorder %v9423_v22, %v9439_v28  ;;  %vm367_vm14 = vcmp.eq.s32.totalorder %v9426_v24, %v9439_v28  ;;  %vm365_vm15 = vcmp.eq.s32.totalorder %v9423_v22, %v9443_v29 }
  0x32   : > { %12459 = vst [vmem:[#allocation25_spill] sm:$0xff] %v12458_v19  ;;  %vm369_vm0 = vcmp.eq.s32.totalorder %v9426_v24, %v9443_v29  ;;  %vm9640_vm3 = vmpackc.low %vm367_vm14, %vm363_vm13  ;;  %v12460_v59 = vmov 0  ;;  %v7865_v58 = vsel %vm363_vm13, 1.0, %v12224_v3  ;;  %v7869_v57 = vsel %vm367_vm14, 1.0, %v12224_v3 }
  0x33   : > { %v12461_v59 = vsel %vm9640_vm3, 4294967295, %v12460_v59  ;;  %8123 = vmatprep.subr.msk.bf16.mxu0 %vm9640_vm3, %v12200_v41  ;;  %v7867_v16 = vsel %vm365_vm15, 1.0, %v12224_v3  ;;  %v7871_v51 = vsel %vm369_vm0, 1.0, %v12224_v3  ;;  %vm9651_vm4 = vmpackc.low %vm369_vm0, %vm365_vm15  ;;  %v12463_v63 = vmov 0 }
  0x34   : > { %12462 = vst [vmem:[#allocation26_spill] sm:$0xff] %v12461_v59  ;;  %v12464_v63 = vsel %vm9651_vm4, 4294967295, %v12463_v63  ;;  %v9655_v0 = vsub.f32 %v7865_v58, %v7865_v58  ;;  %v9657_v50 = vsub.f32 %v7869_v57, %v7869_v57  ;;  %8219 = vmatprep.subr.msk.bf16.mxu1 %vm9651_vm4, %v12200_v41  ;;  %v9662_v48 = vsub.f32 %v7867_v16, %v7867_v16 }
  0x35   : > { %12465 = vst [vmem:[#allocation27_spill] sm:$0xff] %v12464_v63  ;;  %v9664_v47 = vsub.f32 %v7871_v51, %v7871_v51  ;;  %vm362_vm7 = vcmp.eq.s32.totalorder %v9423_v22, %v9446_v30  ;;  %vm366_vm8 = vcmp.eq.s32.totalorder %v9426_v24, %v9446_v30  ;;  %vm364_vm13 = vcmp.eq.s32.totalorder %v9423_v22, %v9450_v31 }
  0x36   : > { %vm368_vm14 = vcmp.eq.s32.totalorder %v9426_v24, %v9450_v31  ;;  %v7864_v57 = vsel %vm362_vm7, 1.0, %v12224_v3  ;;  %v7868_v58 = vsel %vm366_vm8, 1.0, %v12224_v3  ;;  %vm9676_vm15 = vmpackc.low %vm366_vm8, %vm362_vm7  ;;  %v12466_v16 = vmov 0 }
  0x37   : > { %v12467_v16 = vsel %vm9676_vm15, 4294967295, %v12466_v16  ;;  %v7866_v51 = vsel %vm364_vm13, 1.0, %v12224_v3  ;;  %v7870_v40 = vsel %vm368_vm14, 1.0, %v12224_v3  ;;  %8125 = vmatpush1.bf16.msk.msra.mxu0 %vm9676_vm15, %v12200_v41  ;;  %v9685_v39 = vsub.f32 %v7864_v57, %v7864_v57  ;;  %vm9689_vm0 = vmpackc.low %vm368_vm14, %vm364_vm13 }
  0x38   : > { %12468 = vst [vmem:[#allocation28_spill] sm:$0xff] %v12467_v16  ;;  %v9687_v22 = vsub.f32 %v7868_v58, %v7868_v58  ;;  %v12469_v24 = vmov 0  ;;  %v9693_v21 = vsub.f32 %v7866_v51, %v7866_v51  ;;  %v9695_v20 = vsub.f32 %v7870_v40, %v7870_v40  ;;  %8221 = vmatpush1.bf16.msk.msra.mxu1 %vm9689_vm0, %v12200_v41 }
  0x39   : > { %v12470_v24 = vsel %vm9689_vm0, 4294967295, %v12469_v24  ;;  %vm371_vm7 = vcmp.eq.s32.totalorder %v9429_v25, %v9439_v28  ;;  %vm375_vm8 = vcmp.eq.s32.totalorder %v9432_v26, %v9439_v28  ;;  %vm373_vm13 = vcmp.eq.s32.totalorder %v9429_v25, %v9443_v29 }
  0x3a   : > { %12471 = vst [vmem:[#allocation29_spill] sm:$0xff] %v12470_v24  ;;  %vm377_vm14 = vcmp.eq.s32.totalorder %v9432_v26, %v9443_v29  ;;  %vm9712_vm0 = vmpackc.low %vm375_vm8, %vm371_vm7  ;;  %v12472_v41 = vmov 0  ;;  %v7873_v28 = vsel %vm371_vm7, 1.0, %v12224_v3  ;;  %v7877_v15 = vsel %vm375_vm8, 1.0, %v12224_v3 }
  0x3b   : > { %v12473_v41 = vsel %vm9712_vm0, 4294967295, %v12472_v41  ;;  %v12475_v18 = vmov 1.0|1.0   ;;  %v7875_v29 = vsel %vm373_vm13, 1.0, %v12224_v3  ;;  %v7879_v40 = vsel %vm377_vm14, 1.0, %v12224_v3  ;;  %vm9723_vm15 = vmpackc.low %vm377_vm14, %vm373_vm13 }
  0x3c   : > { %12474 = vst [vmem:[#allocation30_spill] sm:$0xff] %v12473_v41  ;;  %8127 = vmatprep.subr.msk.bf16.mxu0 %vm9712_vm0, %v12475_v18  ;;  %v12476_v58 = vmov 0  ;;  %v9727_v51 = vsub.f32 %v7873_v28, %v7873_v28  ;;  %v9729_v57 = vsub.f32 %v7877_v15, %v7877_v15  ;;  %8223 = vmatprep.subr.msk.bf16.mxu1 %vm9723_vm15, %v12475_v18  ;;  %v12487_v63 = vand.u32 4294901760, %v9567_v6 }
  0x3d   : > { %v12477_v58 = vsel %vm9723_vm15, 4294967295, %v12476_v58  ;;  %v9734_v8 = vsub.f32 %v7875_v29, %v7875_v29  ;;  %v9736_v24 = vsub.f32 %v7879_v40, %v7879_v40  ;;  %vm370_vm7 = vcmp.eq.s32.totalorder %v9429_v25, %v9446_v30 }
  0x3e   : > { %12478 = vst [vmem:[#allocation31_spill] sm:$0xff] %v12477_v58  ;;  %vm374_vm8 = vcmp.eq.s32.totalorder %v9432_v26, %v9446_v30  ;;  %vm372_vm13 = vcmp.eq.s32.totalorder %v9429_v25, %v9450_v31  ;;  %vm376_vm14 = vcmp.eq.s32.totalorder %v9432_v26, %v9450_v31  ;;  %v7872_v15 = vsel %vm370_vm7, 1.0, %v12224_v3 }
  0x3f   : > { %v7876_v28 = vsel %vm374_vm8, 1.0, %v12224_v3  ;;  %vm9748_vm15 = vmpackc.low %vm374_vm8, %vm370_vm7  ;;  %v12479_v29 = vmov 0  ;;  %v7874_v40 = vsel %vm372_vm13, 1.0, %v12224_v3  ;;  %v7878_v58 = vsel %vm376_vm14, 1.0, %v12224_v3 }
  0x40   : > { %v12480_v29 = vsel %vm9748_vm15, 4294967295, %v12479_v29  ;;  %8129 = vmatpush1.bf16.msk.msra.mxu0 %vm9748_vm15, %v12475_v18  ;;  %v9757_v30 = vsub.f32 %v7872_v15, %v7872_v15  ;;  %v9759_v25 = vsub.f32 %v7876_v28, %v7876_v28  ;;  %vm9761_vm0 = vmpackc.low %vm376_vm14, %vm372_vm13  ;;  %v12482_v31 = vmov 0 }
  0x41   : > { %12481 = vst [vmem:[#allocation32_spill] sm:$0xff] %v12480_v29  ;;  %v12483_v31 = vsel %vm9761_vm0, 4294967295, %v12482_v31  ;;  %v9765_v26 = vsub.f32 %v7874_v40, %v7874_v40  ;;  %v9767_v41 = vsub.f32 %v7878_v58, %v7878_v58  ;;  %8225 = vmatpush1.bf16.msk.msra.mxu1 %vm9761_vm0, %v12475_v18  ;;  %v656_v3 = vsub.f32 %v9435_v27, %v9453_v32 }
  0x42   : > { %12484 = vst [vmem:[#allocation33_spill] sm:$0xff] %v12483_v31  ;;  %v12242_v15 = vand.u32 4294901760, %v9483_v42  ;;  %v12245_v28 = vand.u32 4294901760, %v9485_v43  ;;  %v12248_v29 = vand.u32 4294901760, %v9491_v45  ;;  %v12249_v40 = vand.u32 4294901760, %v9493_v46 }
  0x43   : > { %v9781_v19 = vand.u32 4294901760, %v656_v3  ;;  %v12486_v58 = vand.u32 4294901760, %v9562_v5  ;;  %v12488_v59 = vand.u32 4294901760, %v9572_v7  ;;  %v12489_v62 = vand.u32 4294901760, %v9577_v10 }
  0x44   : > { %v700_v32 = vsub.f32 %v9483_v42, %v12242_v15  ;;  %v712_v31 = vsub.f32 %v9485_v43, %v12245_v28  ;;  %v1494_v16 = vsub.f32 %v9491_v45, %v12248_v29  ;;  %v9802_v4 = vand.u32 4294901760, %v9456_v33 }
  0x45   : > { %12485 = vst [vmem:[#allocation34_spill] sm:$0xff] %v9781_v19  ;;  %v8132_v3 = vpack.c.bf16 %v12487_v63, %v12486_v58  ;;  %v8228_v15 = vpack.c.bf16 %v12489_v62, %v12488_v59  ;;  %658 = vmatmul.mubr.f32.vlgmr.msra.gmra.mrb[0].mxu0 %v9781_v19  ;;  %1452 = vmatmul.mubr.f32.vlgmr.msra.gmra.mrb[0].mxu1 %v9781_v19  ;;  %v12254_v5 = vand.u32 4294901760, %v9582_v11  ;;  %v12491_v7 = vmov 0.0  }
  0x46   : > { %12490 = vst [vmem:[#allocation35_spill] sm:$0xff] %v9802_v4  ;;  %v701_v28 = vand.u32 4294901760, %v700_v32  ;;  %v713_v54 = vand.u32 4294901760, %v712_v31  ;;  %v1495_v29 = vand.u32 4294901760, %v1494_v16  ;;  %v1506_v6 = vsub.f32 %v9493_v46, %v12249_v40  ;;  %663 = vmatprep.mubr.f32.mxu0 %v12491_v7  ;;  %1457 = vmatprep.mubr.f32.mxu1 %v12491_v7 }
  0x47   : > { %v667_v59 = vsub.f32 %v9456_v33, %v9802_v4  ;;  %v12259_v10 = vand.u32 4294901760, %v9584_v23  ;;  %v12262_v32 = vand.u32 4294901760, %v9586_v36  ;;  %v724_v63 = vsub.f32 %v9582_v11, %v12254_v5 }
  0x48   : > { %v8130_v62 = vpack.c.bf16 %v713_v54, %v701_v28  ;;  %v12263_v16 = vand.u32 4294901760, %v9588_v37  ;;  %v12492_v31 = vand.u32 4294901760, %v9613_v2  ;;  %v1507_v40 = vand.u32 4294901760, %v1506_v6 }
  0x49   : > { %v9823_v19 = vand.u32 4294901760, %v667_v59  ;;  %v736_v4 = vsub.f32 %v9584_v23, %v12259_v10  ;;  %v1518_v54 = vsub.f32 %v9586_v36, %v12262_v32  ;;  %v725_v28 = vand.u32 4294901760, %v724_v63 }
  0x4a   : > { %v730_v58 = vsub.f32 %v9613_v2, %v12492_v31  ;;  %8131 = vmatprep.subr.bf16.mxu0 %v8130_v62  ;;  %v1530_v5 = vsub.f32 %v9588_v37, %v12263_v16  ;;  %v12494_v31 = vand.u32 4294901760, %v9615_v1  ;;  %v8226_v59 = vpack.c.bf16 %v1507_v40, %v1495_v29 }
  0x4b   : > { %12493 = vst [vmem:[#allocation36_spill] sm:$0xff] %v9823_v19  ;;  %8133 = vmatpush1.bf16.msra.mxu0 %v8132_v3  ;;  %v737_v61 = vand.u32 4294901760, %v736_v4  ;;  %1463 = vmatmul.mubr.f32.gmra.mrb[2].mxu1 %v9823_v19  ;;  %v1519_v10 = vand.u32 4294901760, %v1518_v54  ;;  %v12495_v49 = vand.u32 4294901760, %v9621_v17  ;;  %v9847_v29 = vand.u32 4294901760, %v9459_v34 }
  0x4c   : > { %v731_v33 = vand.u32 4294901760, %v730_v58  ;;  %v742_v6 = vsub.f32 %v9615_v1, %v12494_v31  ;;  %669 = vmatmul.mubr.f32.gmra.mrb[2].mxu0 %v9823_v19  ;;  %v1531_v63 = vand.u32 4294901760, %v1530_v5  ;;  %v12496_v58 = vand.u32 4294901760, %v9623_v60  ;;  %1468 = vmatprep.mubr.f32.mxu1 %v12491_v7 }
  0x4d   : > { %v1524_v62 = vsub.f32 %v9621_v17, %v12495_v49  ;;  %12497 = vst [vmem:[#allocation37_spill] sm:$0xff] %v9847_v29  ;;  %8227 = vmatprep.subr.bf16.mxu1 %v8226_v59  ;;  %v8134_v4 = vpack.c.bf16 %v737_v61, %v725_v28  ;;  %674 = vmatprep.mubr.f32.mxu0 %v12491_v7  ;;  %v12269_v49 = vand.u32 4294901760, %v9655_v0  ;;  %v12264_v3 = vand.u32 4294901760, %v9657_v50 }
  0x4e   : > { %v743_v32 = vand.u32 4294901760, %v742_v6  ;;  %v1536_v16 = vsub.f32 %v9623_v60, %v12496_v58  ;;  %8229 = vmatpush1.bf16.msra.mxu1 %v8228_v15  ;;  %v8230_v5 = vpack.c.bf16 %v1531_v63, %v1519_v10  ;;  %v678_v6 = vsub.f32 %v9459_v34, %v9847_v29 }
  0x4f   : > { %v1525_v40 = vand.u32 4294901760, %v1524_v62  ;;  %8135 = vmatprep.subr.bf16.mxu0 %v8134_v4  ;;  %v748_v59 = vsub.f32 %v9655_v0, %v12269_v49  ;;  %v760_v61 = vsub.f32 %v9657_v50, %v12264_v3  ;;  %v12265_v28 = vand.u32 4294901760, %v9662_v48 }
  0x50   : > { %v8136_v54 = vpack.c.bf16 %v743_v32, %v731_v33  ;;  %v1537_v31 = vand.u32 4294901760, %v1536_v16  ;;  %v12266_v62 = vand.u32 4294901760, %v9664_v47  ;;  %8231 = vmatprep.subr.bf16.mxu1 %v8230_v5  ;;  %v9862_v15 = vand.u32 4294901760, %v678_v6 }
  0x51   : > { %v12499_v10 = vand.u32 4294901760, %v9685_v39  ;;  %v12500_v16 = vand.u32 4294901760, %v9687_v22  ;;  %v749_v58 = vand.u32 4294901760, %v748_v59  ;;  %v761_v4 = vand.u32 4294901760, %v760_v61 }
  0x52   : > { %8137 = vmatpush1.bf16.msra.mxu0 %v8136_v54  ;;  %v8232_v33 = vpack.c.bf16 %v1537_v31, %v1525_v40  ;;  %12498 = vst [vmem:[#allocation38_spill] sm:$0xff] %v9862_v15  ;;  %v1542_v3 = vsub.f32 %v9662_v48, %v12265_v28  ;;  %v1554_v40 = vsub.f32 %v9664_v47, %v12266_v62  ;;  %v12501_v31 = vand.u32 4294901760, %v9693_v21 }
  0x53   : > { %v754_v32 = vsub.f32 %v9685_v39, %v12499_v10  ;;  %v766_v63 = vsub.f32 %v9687_v22, %v12500_v16  ;;  %680 = vmatmul.mubr.f32.gmra.mrb[4].mxu0 %v9862_v15  ;;  %v12502_v59 = vand.u32 4294901760, %v9695_v20  ;;  %v8138_v10 = vpack.c.bf16 %v761_v4, %v749_v58  ;;  %1474 = vmatmul.mubr.f32.gmra.mrb[4].mxu1 %v9862_v15 }
  0x54   : > { %8233 = vmatpush1.bf16.msra.mxu1 %v8232_v33  ;;  %v1548_v6 = vsub.f32 %v9693_v21, %v12501_v31  ;;  %v1543_v16 = vand.u32 4294901760, %v1542_v3  ;;  %v1555_v28 = vand.u32 4294901760, %v1554_v40  ;;  %685 = vmatprep.mubr.f32.mxu0 %v12491_v7  ;;  %v9887_v33 = vsub.f32 %v9399_v14, %v9462_v35 }
  0x55   : > { %v755_v5 = vand.u32 4294901760, %v754_v32  ;;  %v767_v54 = vand.u32 4294901760, %v766_v63  ;;  %v1560_v61 = vsub.f32 %v9695_v20, %v12502_v59  ;;  %1479 = vmatprep.mubr.f32.mxu1 %v12491_v7  ;;  %v12267_v31 = vand.u32 4294901760, %v9727_v51  ;;  %8139 = vmatprep.subr.bf16.mxu0 %v8138_v10 }
  0x56   : > { %12503 = vst [vmem:[#allocation39_spill] sm:$0xff] %v9887_v33  ;;  %v1549_v63 = vand.u32 4294901760, %v1548_v6  ;;  %v8234_v59 = vpack.c.bf16 %v1555_v28, %v1543_v16  ;;  %v9892_v58 = vand.u32 4294901760, %v9887_v33  ;;  %v12268_v3 = vand.u32 4294901760, %v9729_v57 }
  0x57   : > { %v8140_v32 = vpack.c.bf16 %v767_v54, %v755_v5  ;;  %v1561_v62 = vand.u32 4294901760, %v1560_v61  ;;  %v12272_v4 = vand.u32 4294901760, %v9734_v8  ;;  %v772_v14 = vsub.f32 %v9727_v51, %v12267_v31 }
  0x58   : > { %12504 = vst [vmem:[#allocation40_spill] sm:$0xff] %v9892_v58  ;;  %v12277_v5 = vand.u32 4294901760, %v9736_v24  ;;  %v12505_v54 = vand.u32 4294901760, %v9757_v30  ;;  %8235 = vmatprep.subr.bf16.mxu1 %v8234_v59  ;;  %v689_v28 = vsub.f32 %v9887_v33, %v9892_v58  ;;  %v784_v61 = vsub.f32 %v9729_v57, %v12268_v3 }
  0x59   : > { %8141 = vmatpush1.bf16.msra.mxu0 %v8140_v32  ;;  %v8236_v40 = vpack.c.bf16 %v1561_v62, %v1549_v63  ;;  %v1566_v62 = vsub.f32 %v9734_v8, %v12272_v4  ;;  %v12506_v10 = vand.u32 4294901760, %v9759_v25  ;;  %v773_v32 = vand.u32 4294901760, %v772_v14 }
  0x5a   : > { %v778_v6 = vsub.f32 %v9757_v30, %v12505_v54  ;;  %v1578_v63 = vsub.f32 %v9736_v24, %v12277_v5  ;;  %v12507_v54 = vand.u32 4294901760, %v9765_v26  ;;  %v9920_v3 = vand.u32 4294901760, %v689_v28 }
  0x5b   : > { %v790_v16 = vsub.f32 %v9759_v25, %v12506_v10  ;;  %8237 = vmatpush1.bf16.msra.mxu1 %v8236_v40  ;;  %v785_v49 = vand.u32 4294901760, %v784_v61  ;;  %v1567_v15 = vand.u32 4294901760, %v1566_v62  ;;  %v12509_v10 = vand.u32 4294901760, %v9767_v41 }
  0x5c   : > { %v779_v59 = vand.u32 4294901760, %v778_v6  ;;  %v1572_v31 = vsub.f32 %v9765_v26, %v12507_v54  ;;  %12508 = vst [vmem:[#allocation41_spill] sm:$0xff] %v9920_v3  ;;  %v1579_v19 = vand.u32 4294901760, %v1578_v63  ;;  %691 = vmatmul.mubr.f32.gmra.mrb[6].mxu0 %v9920_v3  ;;  %1485 = vmatmul.mubr.f32.gmra.mrb[6].mxu1 %v9920_v3  ;;  %v8146_v54 = vpack.c.bf16 %v9485_v43, %v9483_v42 }
  0x5d   : > { %v791_v4 = vand.u32 4294901760, %v790_v16  ;;  %v1584_v40 = vsub.f32 %v9767_v41, %v12509_v10  ;;  %v8142_v14 = vpack.c.bf16 %v785_v49, %v773_v32  ;;  %841 = vmatprep.mubr.f32.mxu0 %v12491_v7  ;;  %1635 = vmatprep.mubr.f32.mxu1 %v12491_v7  ;;  %v8148_v49 = vpack.c.bf16 %v9519_v53, %v9517_v52 }
  0x5e   : > { %v1573_v58 = vand.u32 4294901760, %v1572_v31  ;;  %v8238_v28 = vpack.c.bf16 %v1579_v19, %v1567_v15  ;;  %v8242_v31 = vpack.c.bf16 %v9493_v46, %v9491_v45  ;;  %v8244_v19 = vpack.c.bf16 %v9527_v56, %v9525_v55 }
  0x5f   : > { %v8144_v6 = vpack.c.bf16 %v791_v4, %v779_v59  ;;  %v1585_v5 = vand.u32 4294901760, %v1584_v40  ;;  %8143 = vmatprep.subr.bf16.mxu0 %v8142_v14  ;;  %v8150_v4 = vpack.c.bf16 %v9584_v23, %v9582_v11  ;;  %v8246_v15 = vpack.c.bf16 %v9588_v37, %v9586_v36 }
  0x60   : > { %8239 = vmatprep.subr.bf16.mxu1 %v8238_v28  ;;  %v8248_v62 = vpack.c.bf16 %v9623_v60, %v9621_v17  ;;  %v8250_v16 = vpack.c.bf16 %v9664_v47, %v9662_v48  ;;  %v8156_v32 = vpack.c.bf16 %v9687_v22, %v9685_v39  ;;  %v8158_v63 = vpack.c.bf16 %v9729_v57, %v9727_v51 }
  0x61   : > { %8145 = vmatpush1.bf16.msra.mxu0 %v8144_v6  ;;  %v8240_v61 = vpack.c.bf16 %v1585_v5, %v1573_v58  ;;  %v8152_v58 = vpack.c.bf16 %v9615_v1, %v9613_v2  ;;  %v8154_v5 = vpack.c.bf16 %v9657_v50, %v9655_v0  ;;  %v8252_v59 = vpack.c.bf16 %v9695_v20, %v9693_v21 }
  0x62   : > { %8147 = vmatprep.subr.bf16.mxu0 %v8146_v54  ;;  %v8254_v10 = vpack.c.bf16 %v9736_v24, %v9734_v8  ;;  %v8160_v40 = vpack.c.bf16 %v9759_v25, %v9757_v30  ;;  %v8256_v14 = vpack.c.bf16 %v9767_v41, %v9765_v26 }
  0x63   : > { %8241 = vmatpush1.bf16.msra.mxu1 %v8240_v61  ;;  %v12582_v61 = vld [vmem:[#allocation14_spill] sm:$0xff] }
  0x64   : > { %843 = vmatmul.mubr.f32.vlgmr.msra.gmra.mrb[0].mxu0 %v9393_v9  ;;  %8243 = vmatprep.subr.bf16.mxu1 %v8242_v31  ;;  %v12513_v31 = vld [vmem:[#allocation17_spill] sm:$0xff] }
  0x65   : > { %8149 = vmatpush1.bf16.msra.mxu0 %v8148_v49  ;;  %848 = vmatprep.mubr.f32.mxu0 %v12491_v7 }
  0x66   : > { %1637 = vmatmul.mubr.f32.vlgmr.msra.gmra.mrb[0].mxu1 %v9393_v9  ;;  %8151 = vmatprep.subr.bf16.mxu0 %v8150_v4 }
  0x67   : > { %8245 = vmatpush1.bf16.msra.mxu1 %v8244_v19  ;;  %1642 = vmatprep.mubr.f32.mxu1 %v12491_v7 }
  0x68   : > { %850 = vmatmul.mubr.f32.gmra.mrb[2].mxu0 %v9395_v12  ;;  %8247 = vmatprep.subr.bf16.mxu1 %v8246_v15 }
  0x69   : > { %8153 = vmatpush1.bf16.msra.mxu0 %v8152_v58  ;;  %855 = vmatprep.mubr.f32.mxu0 %v12491_v7  ;;  %v12519_v58 = vld [vmem:[#allocation28_spill] sm:$0xff] }
  0x6a   : > { %1644 = vmatmul.mubr.f32.gmra.mrb[2].mxu1 %v9395_v12  ;;  %8155 = vmatprep.subr.bf16.mxu0 %v8154_v5  ;;  %vm12520_vm7 = vnez %v12519_v58  ;;  %v442_v5 = vld [vmem:[%s319_s19] sm:$0xf]  ;;  %s7845_s19 = sshll.u32 %s309_s18, 2 }
  0x6b   : > { %8249 = vmatpush1.bf16.msra.mxu1 %v8248_v62  ;;  %1649 = vmatprep.mubr.f32.mxu1 %v12491_v7  ;;  %v12521_v62 = vld [vmem:[#allocation30_spill] sm:$0xff]  ;;  %s311_s21 = scalar_lea.vmem [#allocation3], %s7845_s19 }
  0x6c   : > { %857 = vmatmul.mubr.f32.gmra.mrb[4].mxu0 %v9397_v13  ;;  %8251 = vmatprep.subr.bf16.mxu1 %v8250_v16  ;;  %vm12522_vm8 = vnez %v12521_v62  ;;  %v12523_v16 = vand.u32 4294901760, %v9483_v42  ;;  %v12586_v62 = vmov 0  ;;  %s7770_s22 = sshll.u32 %s311_s21, 4  ;;  %s12133_s22 = int_to_ptr.vmem [resolvable:$true] %s7770_s22 }
  0x6d   : > { %8157 = vmatpush1.bf16.msra.mxu0 %v8156_v32  ;;  %862 = vmatprep.mubr.f32.mxu0 %v12491_v7  ;;  %v12524_v32 = vand.u32 4294901760, %v9485_v43  ;;  %s9207_s27 = scalar_lea.vmem %s12133_s22, 64  ;;  %p9214_p0 = scmp.lt.s32.totalorder %s12133_s22, %s9212_s28 }
  0x6e   : > { %1651 = vmatmul.mubr.f32.gmra.mrb[4].mxu1 %v9397_v13  ;;  %8159 = vmatprep.subr.bf16.mxu0 %v8158_v63  ;;  %p9208_p11 = scmp.ne.s32.totalorder %s12133_s22, %s9207_s27  ;;  %p9215_p1 = scmp.lt.s32.totalorder %s9213_s11, %s9207_s27 }
  0x6f   : > { %8253 = vmatpush1.bf16.msra.mxu1 %v8252_v59  ;;  %1656 = vmatprep.mubr.f32.mxu1 %v12491_v7  ;;  %v8178_v63 = vpack.c.bf16 %v12524_v32, %v12523_v16  ;;  %v12525_v59 = vld [vmem:[#allocation29_spill] sm:$0xff] }
  0x70   : > { %864 = vmatmul.mubr.f32.gmra.mrb[6].mxu0 %v9462_v35  ;;  %8255 = vmatprep.subr.bf16.mxu1 %v8254_v10  ;;  %vm12526_vm13 = vnez %v12525_v59  ;;  %v12527_v10 = vld [vmem:[#allocation31_spill] sm:$0xff]  ;;  %p9209_p12 = pnand %p9208_p11, %p9362_p5  ;;  %p9216_p2 = por %p9215_p1, %p9214_p0 }
  0x71   : > { %8161 = vmatpush1.bf16.msra.mxu0 %v8160_v40  ;;  %966 = vmatprep.mubr.f32.mxu0 %v12491_v7  ;;  %vm12528_vm14 = vnez %v12527_v10  ;;  %v12529_v40 = vand.u32 4294901760, %v9491_v45  ;;  %v12536_v45 = vand.u32 4294901760, %v9525_v55  ;;  %v12540_v10 = vand.u32 4294901760, %v9586_v36 }
  0x72   : > { %1658 = vmatmul.mubr.f32.gmra.mrb[6].mxu1 %v9462_v35  ;;  %8163 = vmatprep.subr.msk.bf16.mxu0 %vm9474_vm5, %v12475_v18  ;;  %v12547_v36 = vand.u32 4294901760, %v9655_v0  ;;  %p9210_p13 = pneg %p9209_p12 }
  0x73   : > { %8257 = vmatpush1.bf16.msra.mxu1 %v8256_v14  ;;  %1760 = vmatprep.mubr.f32.mxu1 %v12491_v7  ;;  %v12530_v14 = vand.u32 4294901760, %v9493_v46  ;;  %v12537_v46 = vand.u32 4294901760, %v9527_v56  ;;  %v12544_v56 = vld [vmem:[#allocation33_spill] sm:$0xff] }
  0x74   : > { %969 = vmatmul.mubr.f32.vlgmr.msra.gmra.mrb[0].mxu0 %v9435_v27  ;;  %8259 = vmatprep.subr.msk.bf16.mxu1 %vm9487_vm6, %v12475_v18  ;;  %p9217_p3 = pnand %p9216_p2, %p9210_p13 }
  0x75   : > { %8165 = vmatpush1.bf16.msk.msra.mxu0 %vm9508_vm11, %v12475_v18  ;;  %974 = vmatprep.mubr.f32.mxu0 %v12491_v7  ;;  %v8274_v42 = vpack.c.bf16 %v12530_v14, %v12529_v40  ;;  %v8276_v40 = vpack.c.bf16 %v12537_v46, %v12536_v45  ;;  %v12538_v14 = vand.u32 4294901760, %v9582_v11  ;;  %v12545_v11 = vand.u32 4294901760, %v9621_v17  ;;  %v12551_v45 = vld [vmem:[#allocation16_spill] sm:$0xff] }
  0x76   : > { %1763 = vmatmul.mubr.f32.vlgmr.msra.gmra.mrb[0].mxu1 %v9435_v27  ;;  %8167 = vmatprep.subr.msk.bf16.mxu0 %vm9544_vm1, %v12475_v18  ;;  %v12535_v27 = vand.u32 4294901760, %v9519_v53  ;;  %v12543_v53 = vand.u32 4294901760, %v9615_v1  ;;  %v12550_v1 = vand.u32 4294901760, %v9664_v47  ;;  %v12552_v46 = vand.u32 4294901760, %v9685_v39 }
  0x77   : > { %8261 = vmatpush1.bf16.msk.msra.mxu1 %vm9521_vm12, %v12475_v18  ;;  %1768 = vmatprep.mubr.f32.mxu1 %v12491_v7  ;;  %v12553_v17 = vand.u32 4294901760, %v9687_v22  ;;  %v12555_v47 = vand.u32 4294901760, %v9693_v21  ;;  %v12557_v39 = vand.u32 4294901760, %v9727_v51  ;;  %v12558_v22 = vand.u32 4294901760, %v9729_v57 }
  0x78   : > { %977 = vmatmul.mubr.f32.gmra.mrb[2].mxu0 %v12513_v31  ;;  %8263 = vmatprep.subr.msk.bf16.mxu1 %vm9555_vm2, %v12475_v18  ;;  %v12560_v21 = vand.u32 4294901760, %v9734_v8  ;;  %v12562_v51 = vand.u32 4294901760, %v9757_v30  ;;  %v12563_v57 = vand.u32 4294901760, %v9759_v25  ;;  %v12568_v30 = vld [vmem:[#allocation9_spill] sm:$0xff]  ;;  %v12569_v25 = vld [vmem:[#allocation35_spill] sm:$0xff] }
  0x79   : > { %8169 = vmatpush1.bf16.msk.msra.mxu0 %vm9604_vm9, %v12475_v18  ;;  %982 = vmatprep.mubr.f32.mxu0 %v12491_v7 }
  0x7a   : > { %1771 = vmatmul.mubr.f32.gmra.mrb[2].mxu1 %v12513_v31  ;;  %8171 = vmatprep.subr.msk.bf16.mxu0 %vm9640_vm3, %v12475_v18  ;;  %v12534_v31 = vand.u32 4294901760, %v9517_v52  ;;  %v12541_v52 = vand.u32 4294901760, %v9588_v37  ;;  %v12548_v37 = vand.u32 4294901760, %v9657_v50 }
  0x7b   : > { %8265 = vmatpush1.bf16.msk.msra.mxu1 %vm9617_vm10, %v12475_v18  ;;  %1776 = vmatprep.mubr.f32.mxu1 %v12491_v7 }
  0x7c   : > { %985 = vmatmul.mubr.f32.gmra.mrb[4].mxu0 %v9459_v34  ;;  %8267 = vmatprep.subr.msk.bf16.mxu1 %vm9651_vm4, %v12475_v18  ;;  %v8180_v3 = vpack.c.bf16 %v12535_v27, %v12534_v31  ;;  %v8278_v35 = vpack.c.bf16 %v12541_v52, %v12540_v10  ;;  %v12542_v27 = vand.u32 4294901760, %v9613_v2  ;;  %v12549_v2 = vand.u32 4294901760, %v9662_v48  ;;  %v12559_v52 = vld [vmem:[#allocation8_spill] sm:$0xff] }
  0x7d   : > { %8173 = vmatpush1.bf16.msk.msra.mxu0 %vm12520_vm7, %v12475_v18  ;;  %990 = vmatprep.mubr.f32.mxu0 %v12491_v7  ;;  %v12556_v48 = vand.u32 4294901760, %v9695_v20  ;;  %v12561_v20 = vand.u32 4294901760, %v9736_v24  ;;  %v12567_v24 = vld [vmem:[#allocation7_spill] sm:$0xff] }
  0x7e   : > { %1779 = vmatmul.mubr.f32.gmra.mrb[4].mxu1 %v9459_v34  ;;  %8175 = vmatprep.subr.msk.bf16.mxu0 %vm12522_vm8, %v12475_v18  ;;  %v12531_v34 = vld [vmem:[#allocation6_spill] sm:$0xff]  ;;  %v8184_v55 = vpack.c.bf16 %v12543_v53, %v12542_v27  ;;  %v8282_v10 = vpack.c.bf16 %v12550_v1, %v12549_v2  ;;  %v10115_v27 = vrot.slane %v442_v5, %v12559_v52  ;;  %v12592_v52 = vld [vmem:[#allocation32_spill] sm:$0xff] }
  0x7f   : > { %8269 = vmatpush1.bf16.msk.msra.mxu1 %vm12526_vm13, %v12475_v18  ;;  %1784 = vmatprep.mubr.f32.mxu1 %v12491_v7  ;;  %v12532_v43 = vsub.s32 1, %v12531_v34  ;;  %v8284_v0 = vpack.c.bf16 %v12556_v48, %v12555_v47  ;;  %v8192_v53 = vpack.c.bf16 %v12563_v57, %v12562_v51  ;;  %v12570_v1 = vld [vmem:[#allocation10_spill] sm:$0xff] }
  0x80   : > { %993 = vmatmul.mubr.f32.gmra.mrb[6].mxu0 %v9887_v33  ;;  %8271 = vmatprep.subr.msk.bf16.mxu1 %vm12528_vm14, %v12475_v18 }
  0x81   : > { %v10047_v16 = vrot.slane %v442_v5, %v12532_v43  ;;  %8177 = vmatpush1.bf16.msk.msra.mxu0 %vm9748_vm15, %v12475_v18  ;;  %1079 = vmatprep.mubr.f32.mxu0 %v12491_v7  ;;  %v12539_v43 = vand.u32 4294901760, %v9584_v23  ;;  %v12546_v23 = vand.u32 4294901760, %v9623_v60  ;;  %v12554_v60 = vsub.s32 3, %v12531_v34 }
  0x82   : > { %1787 = vmatmul.mubr.f32.gmra.mrb[6].mxu1 %v9887_v33  ;;  %8179 = vmatprep.subr.bf16.mxu0 %v8178_v63  ;;  %v8186_v63 = vpack.c.bf16 %v12548_v37, %v12547_v36  ;;  %v12565_v36 = vand.u32 4294901760, %v9765_v26  ;;  %vm12293_vm15 = vcmp.eq.s32.totalorder %v12567_v24, %v10115_v27 }
  0x83   : > { %v8182_v32 = vpack.c.bf16 %v12539_v43, %v12538_v14  ;;  %8273 = vmatpush1.bf16.msk.msra.mxu1 %vm9761_vm0, %v12475_v18  ;;  %1873 = vmatprep.mubr.f32.mxu1 %v12491_v7  ;;  %v8280_v31 = vpack.c.bf16 %v12546_v23, %v12545_v11  ;;  %v8188_v14 = vpack.c.bf16 %v12553_v17, %v12552_v46  ;;  %v12564_v11 = vsub.s32 2, %v12531_v34 }
  0x84   : > { %1083 = vmatmul.mubr.f32.vlgmr.msra.gmra.mrb[0].mxu0 %v12551_v45  ;;  %8275 = vmatprep.subr.bf16.mxu1 %v8274_v42  ;;  %vm12288_vm0 = vcmp.eq.s32.totalorder %v12531_v34, %v10047_v16  ;;  %v10099_v50 = vrot.slane %v442_v5, %v12554_v60  ;;  %v8190_v42 = vpack.c.bf16 %v12558_v22, %v12557_v39 }
  0x85   : > { %8181 = vmatpush1.bf16.msra.mxu0 %v8180_v3  ;;  %1088 = vmatprep.mubr.f32.mxu0 %v12491_v7  ;;  %v7881_v43 = vsel %vm12288_vm0, 1.0, %v12491_v7  ;;  %v8286_v3 = vpack.c.bf16 %v12561_v20, %v12560_v21  ;;  %v10128_v23 = vrot.slane %v442_v5, %v12564_v11  ;;  %vm12290_vm0 = vcmp.eq.s32.totalorder %v12567_v24, %v10047_v16  ;;  %v12575_v20 = vld [vmem:[#allocation40_spill] sm:$0xff]  ;;  %v12577_v11 = vld [vmem:[#allocation11_spill] sm:$0xff] }
  0x86   : > { %1877 = vmatmul.mubr.f32.vlgmr.msra.gmra.mrb[0].mxu1 %v12551_v45  ;;  %8183 = vmatprep.subr.bf16.mxu0 %v8182_v32  ;;  %v12566_v32 = vand.u32 4294901760, %v9767_v41  ;;  %v7885_v5 = vsel %vm12290_vm0, 1.0, %v12491_v7  ;;  %vm12292_vm14 = vcmp.eq.s32.totalorder %v12531_v34, %v10099_v50  ;;  %vm12291_vm13 = vcmp.eq.s32.totalorder %v12567_v24, %v10099_v50 }
  0x87   : > { %8277 = vmatpush1.bf16.msra.mxu1 %v8276_v40  ;;  %1882 = vmatprep.mubr.f32.mxu1 %v12491_v7  ;;  %v10146_v40 = vsub.f32 %v7881_v43, %v7881_v43  ;;  %v7883_v26 = vsel %vm12292_vm14, 1.0, %v12491_v7  ;;  %vm12294_vm0 = vcmp.eq.s32.totalorder %v12531_v34, %v10115_v27  ;;  %vm12295_vm14 = vcmp.eq.s32.totalorder %v12567_v24, %v10128_v23 }
  0x88   : > { %v10135_v8 = vpack.c.bf16 %v12566_v32, %v12565_v36  ;;  %1092 = vmatmul.mubr.f32.gmra.mrb[2].mxu0 %v12569_v25  ;;  %8279 = vmatprep.subr.bf16.mxu1 %v8278_v35  ;;  %v7887_v35 = vsel %vm12291_vm13, 1.0, %v12491_v7  ;;  %v7880_v41 = vsel %vm12294_vm0, 1.0, %v12491_v7  ;;  %vm12297_vm13 = vcmp.eq.s32.totalorder %v12531_v34, %v10128_v23  ;;  %v12578_v36 = vld [vmem:[#allocation12_spill] sm:$0xff] }
  0x89   : > { %8185 = vmatpush1.bf16.msra.mxu0 %v8184_v55  ;;  %1097 = vmatprep.mubr.f32.mxu0 %v12491_v7  ;;  %v7884_v55 = vsel %vm12293_vm15, 1.0, %v12491_v7  ;;  %v10179_v37 = vsub.f32 %v7885_v5, %v7885_v5  ;;  %v7886_v2 = vsel %vm12295_vm14, 1.0, %v12491_v7  ;;  %vm12298_vm15 = vcmp.eq.s32.totalorder %v12570_v1, %v10047_v16 }
  0x8a   : > { %1886 = vmatmul.mubr.f32.gmra.mrb[2].mxu1 %v12569_v25  ;;  %8187 = vmatprep.subr.bf16.mxu0 %v8186_v63  ;;  %v7882_v63 = vsel %vm12297_vm13, 1.0, %v12491_v7  ;;  %vm12571_vm0 = vcmp.eq.s32.totalorder %v12568_v30, %v10047_v16  ;;  %v7893_v17 = vsel %vm12298_vm15, 1.0, %v12491_v7  ;;  %vm12296_vm14 = vcmp.eq.s32.totalorder %v12568_v30, %v10099_v50 }
  0x8b   : > { %8281 = vmatpush1.bf16.msra.mxu1 %v8280_v31  ;;  %1891 = vmatprep.mubr.f32.mxu1 %v12491_v7  ;;  %v10192_v31 = vsub.f32 %v7883_v26, %v7883_v26  ;;  %v7889_v46 = vsel %vm12571_vm0, 1.0, %v12491_v7  ;;  %v10205_v60 = vsub.f32 %v7887_v35, %v7887_v35  ;;  %v10209_v47 = vsub.f32 %v7884_v55, %v7884_v55 }
  0x8c   : > { %1101 = vmatmul.mubr.f32.gmra.mrb[4].mxu0 %v9847_v29  ;;  %8283 = vmatprep.subr.bf16.mxu1 %v8282_v10  ;;  %v10207_v10 = vsub.f32 %v7880_v41, %v7880_v41  ;;  %v7891_v48 = vsel %vm12296_vm14, 1.0, %v12491_v7  ;;  %v10216_v39 = vsub.f32 %v7882_v63, %v7882_v63  ;;  %v10218_v22 = vsub.f32 %v7886_v2, %v7886_v2 }
  0x8d   : > { %8189 = vmatpush1.bf16.msra.mxu0 %v8188_v14  ;;  %1106 = vmatprep.mubr.f32.mxu0 %v12491_v7  ;;  %vm12299_vm0 = vcmp.eq.s32.totalorder %v12570_v1, %v10099_v50  ;;  %v10224_v43 = vsub.f32 %v7889_v46, %v7889_v46  ;;  %v10226_v21 = vsub.f32 %v7893_v17, %v7893_v17  ;;  %v12607_v17 = vand.u32 4294901760, %v10205_v60 }
  0x8e   : > { %1895 = vmatmul.mubr.f32.gmra.mrb[4].mxu1 %v9847_v29  ;;  %8191 = vmatprep.subr.bf16.mxu0 %v8190_v42  ;;  %12572 = vst [vmem:[#allocation20_spill] sm:$0xff] %v10216_v39  ;;  %12573 = vst [vmem:[#allocation22_spill] sm:$0xff] %v10218_v22  ;;  %v7895_v42 = vsel %vm12299_vm0, 1.0, %v12491_v7  ;;  %vm12300_vm14 = vcmp.eq.s32.totalorder %v12568_v30, %v10115_v27  ;;  %v10235_v51 = vsub.f32 %v7891_v48, %v7891_v48 }
  0x8f   : > { %8285 = vmatpush1.bf16.msra.mxu1 %v8284_v0  ;;  %1900 = vmatprep.mubr.f32.mxu1 %v12491_v7  ;;  %12574 = vst [vmem:[#allocation21_spill] sm:$0xff] %v10226_v21  ;;  %vm12301_vm13 = vcmp.eq.s32.totalorder %v12570_v1, %v10115_v27  ;;  %v7888_v0 = vsel %vm12300_vm14, 1.0, %v12491_v7  ;;  %vm12302_vm15 = vcmp.eq.s32.totalorder %v12568_v30, %v10128_v23  ;;  %v12616_v25 = vand.u32 4294901760, %v10216_v39 }
  0x90   : > { %1110 = vmatmul.mubr.f32.gmra.mrb[6].mxu0 %v12575_v20  ;;  %8287 = vmatprep.subr.bf16.mxu1 %v8286_v3  ;;  %12576 = vst [vmem:[#allocation23_spill] sm:$0xff] %v10235_v51  ;;  %v7892_v3 = vsel %vm12301_vm13, 1.0, %v12491_v7  ;;  %vm12303_vm0 = vcmp.eq.s32.totalorder %v12570_v1, %v10128_v23  ;;  %v7890_v57 = vsel %vm12302_vm15, 1.0, %v12491_v7  ;;  %vm476_vm14 = vcmp.eq.s32.totalorder %v12577_v11, %v10047_v16 }
  0x91   : > { %8193 = vmatpush1.bf16.msra.mxu0 %v8192_v53  ;;  %1228 = vmatprep.mubr.f32.mxu0 %v12491_v7  ;;  %v7894_v53 = vsel %vm12303_vm0, 1.0, %v12491_v7  ;;  %vm480_vm13 = vcmp.eq.s32.totalorder %v12578_v36, %v10047_v16  ;;  %v7897_v32 = vsel %vm476_vm14, 1.0, %v12491_v7  ;;  %vm478_vm15 = vcmp.eq.s32.totalorder %v12577_v11, %v10099_v50 }
  0x92   : > { %1904 = vmatmul.mubr.f32.gmra.mrb[6].mxu1 %v12575_v20  ;;  %8195 = vmatprep.subr.msk.bf16.mxu0 %vm9474_vm5, %v12475_v18  ;;  %v10276_v38 = vsub.f32 %v7895_v42, %v7895_v42  ;;  %v7901_v5 = vsel %vm480_vm13, 1.0, %v12491_v7  ;;  %vm482_vm5 = vcmp.eq.s32.totalorder %v12578_v36, %v10099_v50  ;;  %v7899_v26 = vsel %vm478_vm15, 1.0, %v12491_v7 }
  0x93   : > { %8289 = vmatpush1.bf16.msra.mxu1 %v10135_v8  ;;  %2022 = vmatprep.mubr.f32.mxu1 %v12491_v7  ;;  %v10292_v8 = vsub.f32 %v7888_v0, %v7888_v0  ;;  %v10294_v35 = vsub.f32 %v7892_v3, %v7892_v3  ;;  %v7903_v41 = vsel %vm482_vm5, 1.0, %v12491_v7  ;;  %vm475_vm0 = vcmp.eq.s32.totalorder %v12577_v11, %v10115_v27  ;;  %v12581_v3 = vld [vmem:[#allocation13_spill] sm:$0xff] }
  0x94   : > { %12579 = vst [vmem:[#allocation24_spill] sm:$0xff] %v10276_v38  ;;  %1230 = vmatmul.mubr.f32.vlgmr.msra.gmra.mrb[0].mxu0 %v9393_v9  ;;  %8291 = vmatprep.subr.msk.bf16.mxu1 %vm9487_vm6, %v12475_v18  ;;  %v10306_v44 = vsub.f32 %v7890_v57, %v7890_v57  ;;  %v10308_v55 = vsub.f32 %v7894_v53, %v7894_v53  ;;  %v7896_v2 = vsel %vm475_vm0, 1.0, %v12491_v7  ;;  %v12608_v20 = vand.u32 4294901760, %v10207_v10 }
  0x95   : > { %12580 = vst [vmem:[#allocation26_spill] sm:$0xff] %v10294_v35  ;;  %8197 = vmatpush1.bf16.msk.msra.mxu0 %vm9508_vm11, %v12475_v18  ;;  %1235 = vmatprep.mubr.f32.mxu0 %v12491_v7  ;;  %v10310_v63 = vsub.f32 %v7897_v32, %v7897_v32  ;;  %v10320_v6 = vsub.f32 %v7901_v5, %v7901_v5  ;;  %v12622_v33 = vand.u32 4294901760, %v10218_v22 }
  0x96   : > { %2024 = vmatmul.mubr.f32.vlgmr.msra.gmra.mrb[0].mxu1 %v9393_v9  ;;  %8199 = vmatprep.subr.msk.bf16.mxu0 %vm9544_vm1, %v12475_v18  ;;  %v10322_v46 = vsub.f32 %v7899_v26, %v7899_v26  ;;  %vm479_vm6 = vcmp.eq.s32.totalorder %v12578_v36, %v10115_v27  ;;  %v10331_v48 = vsub.f32 %v7903_v41, %v7903_v41 }
  0x97   : > { %8293 = vmatpush1.bf16.msk.msra.mxu1 %vm9521_vm12, %v12475_v18  ;;  %2029 = vmatprep.mubr.f32.mxu1 %v12491_v7  ;;  %v7900_v54 = vsel %vm479_vm6, 1.0, %v12491_v7  ;;  %vm12305_vm11 = vcmp.eq.s32.totalorder %v12577_v11, %v10128_v23  ;;  %vm12304_vm1 = vcmp.eq.s32.totalorder %v12578_v36, %v10128_v23  ;;  %v10345_v28 = vsub.f32 %v7896_v2, %v7896_v2 }
  0x98   : > { %1237 = vmatmul.mubr.f32.gmra.mrb[2].mxu0 %v9395_v12  ;;  %8295 = vmatprep.subr.msk.bf16.mxu1 %vm9555_vm2, %v12475_v18  ;;  %v7898_v42 = vsel %vm12305_vm11, 1.0, %v12491_v7  ;;  %v7902_v0 = vsel %vm12304_vm1, 1.0, %v12491_v7  ;;  %vm484_vm12 = vcmp.eq.s32.totalorder %v12581_v3, %v10047_v16  ;;  %vm12332_vm2 = vcmp.eq.s32.totalorder %v12582_v61, %v10047_v16 }
  0x99   : > { %8201 = vmatpush1.bf16.msk.msra.mxu0 %vm9604_vm9, %v12475_v18  ;;  %1242 = vmatprep.mubr.f32.mxu0 %v12491_v7  ;;  %v7905_v57 = vsel %vm484_vm12, 1.0, %v12491_v7  ;;  %vm12313_vm1 = vcmp.eq.s32.totalorder %v12581_v3, %v10099_v50  ;;  %vm12312_vm11 = vcmp.eq.s32.totalorder %v12582_v61, %v10099_v50  ;;  %v7909_v49 = vsel %vm12332_vm2, 1.0, %v12491_v7 }
  0x9a   : > { %2031 = vmatmul.mubr.f32.gmra.mrb[2].mxu1 %v9395_v12  ;;  %8203 = vmatprep.subr.msk.bf16.mxu0 %vm9640_vm3, %v12475_v18  ;;  %v7907_v53 = vsel %vm12313_vm1, 1.0, %v12491_v7  ;;  %v7911_v32 = vsel %vm12312_vm11, 1.0, %v12491_v7  ;;  %vm12308_vm9 = vcmp.eq.s32.totalorder %v12581_v3, %v10115_v27  ;;  %v10393_v4 = vsub.f32 %v7900_v54, %v7900_v54 }
  0x9b   : > { %8297 = vmatpush1.bf16.msk.msra.mxu1 %vm9617_vm10, %v12475_v18  ;;  %2036 = vmatprep.mubr.f32.mxu1 %v12491_v7  ;;  %v10395_v5 = vsub.f32 %v7898_v42, %v7898_v42  ;;  %vm12307_vm3 = vcmp.eq.s32.totalorder %v12582_v61, %v10115_v27  ;;  %v7904_v26 = vsel %vm12308_vm9, 1.0, %v12491_v7  ;;  %v10407_v19 = vsub.f32 %v7902_v0, %v7902_v0 }
  0x9c   : > { %1244 = vmatmul.mubr.f32.gmra.mrb[4].mxu0 %v9397_v13  ;;  %8299 = vmatprep.subr.msk.bf16.mxu1 %vm9651_vm4, %v12475_v18  ;;  %v10409_v41 = vsub.f32 %v7905_v57, %v7905_v57  ;;  %v7908_v2 = vsel %vm12307_vm3, 1.0, %v12491_v7  ;;  %vm12306_vm10 = vcmp.eq.s32.totalorder %v12581_v3, %v10128_v23  ;;  %v10421_v15 = vsub.f32 %v7909_v49, %v7909_v49  ;;  %v12590_v49 = vld [vmem:[#allocation31_spill] sm:$0xff] }
  0x9d   : > { %8205 = vmatpush1.bf16.msk.msra.mxu0 %vm12520_vm7, %v12475_v18  ;;  %1249 = vmatprep.mubr.f32.mxu0 %v12491_v7  ;;  %v10423_v54 = vsub.f32 %v7907_v53, %v7907_v53  ;;  %v10425_v42 = vsub.f32 %v7911_v32, %v7911_v32  ;;  %v7906_v0 = vsel %vm12306_vm10, 1.0, %v12491_v7  ;;  %v10435_v58 = vsub.f32 %v7904_v26, %v7904_v26  ;;  %v12589_v53 = vld [vmem:[#allocation19_spill] sm:$0xff] }
  0x9e   : > { %2038 = vmatmul.mubr.f32.gmra.mrb[4].mxu1 %v9397_v13  ;;  %8207 = vmatprep.subr.msk.bf16.mxu0 %vm12522_vm8, %v12475_v18  ;;  %vm12583_vm4 = vnez %v12525_v59  ;;  %vm12584_vm7 = vcmp.eq.s32.totalorder %v12531_v34, %v10047_v16  ;;  %vm12585_vm8 = vcmp.eq.s32.totalorder %v12567_v24, %v10047_v16  ;;  %v10454_v32 = vsub.f32 %v7908_v2, %v7908_v2 }
  0x9f   : > { %8301 = vmatpush1.bf16.msk.msra.mxu1 %vm12583_vm4, %v12475_v18  ;;  %2043 = vmatprep.mubr.f32.mxu1 %v12491_v7  ;;  %vm10450_vm10 = vmpackc.low %vm12585_vm8, %vm12584_vm7  ;;  %vm12323_vm3 = vcmp.eq.s32.totalorder %v12582_v61, %v10128_v23  ;;  %vm12591_vm4 = vnez %v12590_v49  ;;  %v10464_v57 = vsub.f32 %v7906_v0, %v7906_v0  ;;  %vm12593_vm7 = vnez %v12592_v52 }
  0xa0   : > { %v12587_v62 = vsel %vm10450_vm10, 4294967295, %v12586_v62  ;;  %1251 = vmatmul.mubr.f32.gmra.mrb[6].mxu0 %v12589_v53  ;;  %8303 = vmatprep.subr.msk.bf16.mxu1 %vm12591_vm4, %v12475_v18  ;;  %vm12594_vm8 = vcmp.eq.s32.totalorder %v12531_v34, %v10099_v50  ;;  %vm12595_vm4 = vcmp.eq.s32.totalorder %v12567_v24, %v10099_v50  ;;  %v12596_v0 = vmov 0 }
  0xa1   : > { %12588 = vst [vmem:[#allocation25_spill] sm:$0xff] %v12587_v62  ;;  %8209 = vmatpush1.bf16.msk.msra.mxu0 %vm12593_vm7, %v12475_v18  ;;  %1337 = vmatprep.mubr.f32.mxu0 %v12491_v7  ;;  %vm10479_vm9 = vmpackc.low %vm12595_vm4, %vm12594_vm8  ;;  %v12599_v49 = vand.u32 4294901760, %v10146_v40  ;;  %v12600_v52 = vand.u32 4294901760, %v10179_v37  ;;  %vm12601_vm7 = vcmp.eq.s32.totalorder %v12531_v34, %v10115_v27  ;;  %vm12602_vm8 = vcmp.eq.s32.totalorder %v12567_v24, %v10115_v27 }
  0xa2   : > { %v12597_v0 = vsel %vm10479_vm9, 4294967295, %v12596_v0  ;;  %2045 = vmatmul.mubr.f32.gmra.mrb[6].mxu1 %v12589_v53  ;;  %8307 = vmatprep.subr.msk.bf16.mxu0 %vm10450_vm10, %v12475_v18  ;;  %vm10503_vm4 = vmpackc.low %vm12602_vm8, %vm12601_vm7  ;;  %v3094_v59 = vsub.f32 %v10205_v60, %v12607_v17  ;;  %v2294_v29 = vsub.f32 %v10207_v10, %v12608_v20  ;;  %vm12609_vm11 = vnez %v12544_v56 }
  0xa3   : > { %12598 = vst [vmem:[#allocation27_spill] sm:$0xff] %v12597_v0  ;;  %v10486_v14 = vsub.f32 %v10146_v40, %v12599_v49  ;;  %v2300_v2 = vsub.f32 %v10179_v37, %v12600_v52  ;;  %v12603_v49 = vmov 0  ;;  %v12606_v52 = vand.u32 4294901760, %v10192_v31  ;;  %8305 = vmatpush1.bf16.msk.msra.mxu1 %vm12609_vm11, %v12475_v18  ;;  %2131 = vmatprep.mubr.f32.mxu1 %v12491_v7 }
  0xa4   : > { %v12604_v49 = vsel %vm10503_vm4, 4294967295, %v12603_v49  ;;  %vm12610_vm7 = vcmp.eq.s32.totalorder %v12568_v30, %v10047_v16  ;;  %vm12611_vm8 = vcmp.eq.s32.totalorder %v12570_v1, %v10047_v16  ;;  %v12615_v17 = vand.u32 4294901760, %v10209_v47  ;;  %1339 = vmatmul.mubr.f32.vlgmr.msra.gmra.mrb[0].mxu0 %v9393_v9  ;;  %8403 = vmatprep.subr.msk.bf16.mxu1 %vm10479_vm9, %v12475_v18 }
  0xa5   : > { %12605 = vst [vmem:[#allocation28_spill] sm:$0xff] %v12604_v49  ;;  %v3082_v26 = vsub.f32 %v10192_v31, %v12606_v52  ;;  %vm10526_vm1 = vmpackc.low %vm12611_vm8, %vm12610_vm7  ;;  %v12612_v52 = vmov 0  ;;  %v10536_v56 = vsub.f32 %v10216_v39, %v12616_v25  ;;  %vm12617_vm11 = vcmp.eq.s32.totalorder %v12531_v34, %v10128_v23  ;;  %8309 = vmatpush1.bf16.msk.msra.mxu0 %vm10503_vm4, %v12475_v18 }
  0xa6   : > { %v12613_v52 = vsel %vm10526_vm1, 4294967295, %v12612_v52  ;;  %v2306_v20 = vsub.f32 %v10209_v47, %v12615_v17  ;;  %vm12618_vm7 = vcmp.eq.s32.totalorder %v12567_v24, %v10128_v23  ;;  %v12619_v17 = vmov 0  ;;  %1344 = vmatprep.mubr.f32.mxu0 %v12491_v7  ;;  %2133 = vmatmul.mubr.f32.vlgmr.msra.gmra.mrb[0].mxu1 %v9393_v9 }
  0xa7   : > { %12614 = vst [vmem:[#allocation30_spill] sm:$0xff] %v12613_v52  ;;  %vm10550_vm8 = vmpackc.low %vm12618_vm7, %vm12617_vm11  ;;  %v7910_v25 = vsel %vm12323_vm3, 1.0, %v12491_v7  ;;  %v3100_v45 = vsub.f32 %v10218_v22, %v12622_v33  ;;  %v12623_v0 = vand.u32 4294901760, %v10224_v43  ;;  %v12624_v62 = vand.u32 4294901760, %v10226_v21  ;;  %8311 = vmatprep.subr.msk.bf16.mxu0 %vm10526_vm1, %v12475_v18  ;;  %2138 = vmatprep.mubr.f32.mxu1 %v12491_v7 }
  0xa8   : > { %v12620_v17 = vsel %vm10550_vm8, 4294967295, %v12619_v17  ;;  %vm12625_vm11 = vcmp.eq.s32.totalorder %v12568_v30, %v10099_v50  ;;  %vm12626_vm7 = vcmp.eq.s32.totalorder %v12570_v1, %v10099_v50  ;;  %v2301_v22 = vand.u32 4294901760, %v2300_v2  ;;  %8405 = vmatpush1.bf16.msk.msra.mxu1 %vm10550_vm8, %v12475_v18  ;;  %1346 = vmatmul.mubr.f32.gmra.mrb[2].mxu0 %v9395_v12 }
  0xa9   : > { %12621 = vst [vmem:[#allocation29_spill] sm:$0xff] %v12620_v17  ;;  %v2312_v34 = vsub.f32 %v10224_v43, %v12623_v0  ;;  %v2324_v24 = vsub.f32 %v10226_v21, %v12624_v62  ;;  %vm10577_vm3 = vmpackc.low %vm12626_vm7, %vm12625_vm11  ;;  %v2289_v0 = vand.u32 4294901760, %v10486_v14  ;;  %v12629_v62 = vand.u32 4294901760, %v10235_v51  ;;  %1351 = vmatprep.mubr.f32.mxu0 %v12491_v7 }
  0xaa   : > { %v12630_v39 = vand.u32 4294901760, %v10276_v38  ;;  %vm12631_vm11 = vcmp.eq.s32.totalorder %v12568_v30, %v10115_v27  ;;  %vm12632_vm7 = vcmp.eq.s32.totalorder %v12570_v1, %v10115_v27  ;;  %v12633_v14 = vmov 0  ;;  %8407 = vmatprep.subr.msk.bf16.mxu1 %vm10577_vm3, %v12475_v18  ;;  %2140 = vmatmul.mubr.f32.gmra.mrb[2].mxu1 %v9395_v12 }
  0xab   : > { %v3106_v49 = vsub.f32 %v10235_v51, %v12629_v62  ;;  %vm10598_vm2 = vmpackc.low %vm12632_vm7, %vm12631_vm11  ;;  %v3083_v2 = vand.u32 4294901760, %v3082_v26  ;;  %v3095_v62 = vand.u32 4294901760, %v3094_v59  ;;  %v2295_v51 = vand.u32 4294901760, %v2294_v29  ;;  %2145 = vmatprep.mubr.f32.mxu1 %v12491_v7 }
  0xac   : > { %v3118_v21 = vsub.f32 %v10276_v38, %v12630_v39  ;;  %v12634_v14 = vsel %vm10598_vm2, 4294967295, %v12633_v14  ;;  %vm10613_vm11 = vmpackc.low %vm480_vm13, %vm476_vm14  ;;  %v12636_v52 = vmov 0  ;;  %v2307_v59 = vand.u32 4294901760, %v2306_v20  ;;  %8313 = vmatpush1.bf16.msk.msra.mxu0 %vm10598_vm2, %v12475_v18 }
  0xad   : > { %12635 = vst [vmem:[#allocation33_spill] sm:$0xff] %v12634_v14  ;;  %v12637_v52 = vsel %vm10613_vm11, 4294967295, %v12636_v52  ;;  %v12639_v29 = vand.u32 4294901760, %v10292_v8  ;;  %v12640_v39 = vand.u32 4294901760, %v10294_v35  ;;  %vm12641_vm13 = vcmp.eq.s32.totalorder %v12568_v30, %v10128_v23  ;;  %8315 = vmatprep.subr.msk.bf16.mxu0 %vm10613_vm11, %v12475_v18  ;;  %1353 = vmatmul.mubr.f32.gmra.mrb[4].mxu0 %v9397_v13 }
  0xae   : > { %12638 = vst [vmem:[#allocation7_spill] sm:$0xff] %v12637_v52  ;;  %vm12642_vm14 = vcmp.eq.s32.totalorder %v12570_v1, %v10128_v23  ;;  %v12643_v20 = vmov 0  ;;  %v2313_v38 = vand.u32 4294901760, %v2312_v34  ;;  %v12646_v30 = vmov 0  ;;  %1358 = vmatprep.mubr.f32.mxu0 %v12491_v7  ;;  %2147 = vmatmul.mubr.f32.gmra.mrb[4].mxu1 %v9397_v13 }
  0xaf   : > { %v2318_v26 = vsub.f32 %v10292_v8, %v12639_v29  ;;  %v2330_v17 = vsub.f32 %v10294_v35, %v12640_v39  ;;  %vm10634_vm7 = vmpackc.low %vm12642_vm14, %vm12641_vm13  ;;  %v3089_v39 = vand.u32 4294901760, %v10536_v56  ;;  %v3101_v29 = vand.u32 4294901760, %v3100_v45  ;;  %2152 = vmatprep.mubr.f32.mxu1 %v12491_v7 }
  0xb0   : > { %v12644_v20 = vsel %vm10634_vm7, 4294967295, %v12643_v20  ;;  %v2325_v35 = vand.u32 4294901760, %v2324_v24  ;;  %vm10649_vm13 = vmpackc.low %vm482_vm5, %vm478_vm15  ;;  %v10653_v1 = vsub.f32 %v7910_v25, %v7910_v25  ;;  %v3107_v34 = vand.u32 4294901760, %v3106_v49  ;;  %8409 = vmatpush1.bf16.msk.msra.mxu1 %vm10634_vm7, %v12475_v18 }
  0xb1   : > { %12645 = vst [vmem:[#allocation9_spill] sm:$0xff] %v12644_v20  ;;  %v12647_v30 = vsel %vm10649_vm13, 4294967295, %v12646_v30  ;;  %v3119_v45 = vand.u32 4294901760, %v3118_v21  ;;  %vm10666_vm15 = vmpackc.low %vm479_vm6, %vm475_vm0  ;;  %v12649_v24 = vmov 0  ;;  %v8322_v49 = vpack.c.bf16 %v2301_v22, %v2289_v0  ;;  %8411 = vmatprep.subr.msk.bf16.mxu1 %vm10649_vm13, %v12475_v18  ;;  %1360 = vmatmul.mubr.f32.gmra.mrb[6].mxu0 %v12589_v53 }
  0xb2   : > { %12648 = vst [vmem:[#allocation10_spill] sm:$0xff] %v12647_v30  ;;  %v12650_v24 = vsel %vm10666_vm15, 4294967295, %v12649_v24  ;;  %v8418_v21 = vpack.c.bf16 %v3095_v62, %v3083_v2  ;;  %v12652_v25 = vand.u32 4294901760, %v10306_v44  ;;  %vm12653_vm0 = vcmp.eq.s32.totalorder %v12582_v61, %v10047_v16  ;;  %8317 = vmatpush1.bf16.msk.msra.mxu0 %vm10666_vm15, %v12475_v18  ;;  %2240 = vmatprep.mubr.f32.mxu0 %v12491_v7 }
  0xb3   : > { %12651 = vst [vmem:[#allocation11_spill] sm:$0xff] %v12650_v24  ;;  %vm10686_vm5 = vmpackc.low %vm12653_vm0, %vm484_vm12  ;;  %v12654_v22 = vmov 0  ;;  %v8324_v0 = vpack.c.bf16 %v2307_v59, %v2295_v51  ;;  %v2319_v2 = vand.u32 4294901760, %v2318_v26  ;;  %v2331_v62 = vand.u32 4294901760, %v2330_v17  ;;  %2154 = vmatmul.mubr.f32.gmra.mrb[6].mxu1 %v12589_v53 }
  0xb4   : > { %v10673_v56 = vsub.f32 %v10306_v44, %v12652_v25  ;;  %v12655_v22 = vsel %vm10686_vm5, 4294967295, %v12654_v22  ;;  %v12657_v25 = vand.u32 4294901760, %v10308_v55  ;;  %vm12658_vm6 = vcmp.eq.s32.totalorder %v12577_v11, %v10128_v23  ;;  %8319 = vmatprep.subr.msk.bf16.mxu0 %vm10686_vm5, %v12475_v18  ;;  %3034 = vmatprep.mubr.f32.mxu1 %v12491_v7 }
  0xb5   : > { %12656 = vst [vmem:[#allocation12_spill] sm:$0xff] %v12655_v22  ;;  %vm12659_vm12 = vcmp.eq.s32.totalorder %v12578_v36, %v10128_v23  ;;  %v12660_v16 = vmov 0  ;;  %v10709_v51 = vpack.c.bf16 %v3101_v29, %v3089_v39  ;;  %v8326_v17 = vpack.c.bf16 %v2325_v35, %v2313_v38 }
  0xb6   : > { %v10693_v52 = vsub.f32 %v10308_v55, %v12657_v25  ;;  %vm10705_vm14 = vmpackc.low %vm12659_vm12, %vm12658_vm6  ;;  %v12349_v59 = vand.u32 4294901760, %v10322_v46  ;;  %vm12663_vm0 = vcmp.eq.s32.totalorder %v12581_v3, %v10099_v50  ;;  %vm12664_vm6 = vcmp.eq.s32.totalorder %v12582_v61, %v10099_v50 }
  0xb7   : > { %v12661_v16 = vsel %vm10705_vm14, 4294967295, %v12660_v16  ;;  %vm10723_vm12 = vmpackc.low %vm12664_vm6, %vm12663_vm0  ;;  %v12665_v11 = vmov 0  ;;  %v10727_v36 = vpack.c.bf16 %v3119_v45, %v3107_v34  ;;  %v12668_v38 = vand.u32 4294901760, %v10310_v63  ;;  %8413 = vmatpush1.bf16.msk.msra.mxu1 %vm10705_vm14, %v12475_v18 }
  0xb8   : > { %12662 = vst [vmem:[#allocation13_spill] sm:$0xff] %v12661_v16  ;;  %v12666_v11 = vsel %vm10723_vm12, 4294967295, %v12665_v11  ;;  %vm12669_vm0 = vcmp.eq.s32.totalorder %v12581_v3, %v10115_v27  ;;  %vm12670_vm6 = vcmp.eq.s32.totalorder %v12582_v61, %v10115_v27  ;;  %v12671_v50 = vmov 0  ;;  %8415 = vmatprep.subr.msk.bf16.mxu1 %vm10723_vm12, %v12475_v18 }
  0xb9   : > { %12667 = vst [vmem:[#allocation14_spill] sm:$0xff] %v12666_v11  ;;  %v2336_v35 = vsub.f32 %v10310_v63, %v12668_v38  ;;  %vm10744_vm15 = vmpackc.low %vm12670_vm6, %vm12669_vm0  ;;  %v3113_v34 = vand.u32 4294901760, %v10673_v56  ;;  %v12674_v45 = vand.u32 4294901760, %v10320_v6  ;;  %v12354_v38 = vand.u32 4294901760, %v10409_v41 }
  0xba   : > { %v12672_v50 = vsel %vm10744_vm15, 4294967295, %v12671_v50  ;;  %v8328_v27 = vpack.c.bf16 %v2331_v62, %v2319_v2  ;;  %v3125_v39 = vand.u32 4294901760, %v10693_v52  ;;  %vm12675_vm0 = vcmp.eq.s32.totalorder %v12581_v3, %v10128_v23  ;;  %8321 = vmatpush1.bf16.msk.msra.mxu0 %vm10744_vm15, %v12475_v18 }
  0xbb   : > { %12673 = vst [vmem:[#allocation19_spill] sm:$0xff] %v12672_v50  ;;  %v2348_v25 = vsub.f32 %v10320_v6, %v12674_v45  ;;  %vm12676_vm6 = vcmp.eq.s32.totalorder %v12582_v61, %v10128_v23  ;;  %v12677_v2 = vmov 0  ;;  %v3130_v52 = vsub.f32 %v10322_v46, %v12349_v59  ;;  %8323 = vmatprep.subr.bf16.mxu0 %v8322_v49 }
  0xbc   : > { %vm10771_vm14 = vmpackc.low %vm12676_vm6, %vm12675_vm0  ;;  %v12680_v62 = vand.u32 4294901760, %v10331_v48  ;;  %v12681_v23 = vand.u32 4294901760, %v10345_v28  ;;  %v12682_v61 = vand.u32 4294901760, %v10393_v4  ;;  %v2337_v26 = vand.u32 4294901760, %v2336_v35 }
  0xbd   : > { %v12678_v2 = vsel %vm10771_vm14, 4294967295, %v12677_v2  ;;  %v2349_v29 = vand.u32 4294901760, %v2348_v25  ;;  %v2360_v50 = vsub.f32 %v10409_v41, %v12354_v38  ;;  %v12683_v11 = vand.u32 4294901760, %v10421_v15  ;;  %8417 = vmatpush1.bf16.msk.msra.mxu1 %vm10771_vm14, %v12475_v18 }
  0xbe   : > { %12679 = vst [vmem:[#allocation31_spill] sm:$0xff] %v12678_v2  ;;  %v3142_v45 = vsub.f32 %v10331_v48, %v12680_v62  ;;  %v2342_v3 = vsub.f32 %v10345_v28, %v12681_v23  ;;  %v2354_v59 = vsub.f32 %v10393_v4, %v12682_v61  ;;  %v12684_v61 = vand.u32 4294901760, %v10395_v5  ;;  %v12686_v62 = vld [vmem:[#allocation34_spill] sm:$0xff]  ;;  %8419 = vmatprep.subr.bf16.mxu1 %v8418_v21 }
  0xbf   : > { %v2372_v23 = vsub.f32 %v10421_v15, %v12683_v11  ;;  %v12685_v35 = vand.u32 4294901760, %v10407_v19  ;;  %2246 = vmatmul.mubr.f32.vlgmr.msra.gmra.mrb[8].mxu0 %v12686_v62  ;;  %v3131_v11 = vand.u32 4294901760, %v3130_v52  ;;  %v12687_v16 = vand.u32 4294901760, %v10423_v54 }
  0xc0   : > { %v3136_v49 = vsub.f32 %v10395_v5, %v12684_v61  ;;  %v3143_v2 = vand.u32 4294901760, %v3142_v45  ;;  %v12688_v24 = vand.u32 4294901760, %v10425_v42  ;;  %8325 = vmatpush1.bf16.msra.mxu0 %v8324_v0  ;;  %2251 = vmatprep.mubr.f32.mxu0 %v12491_v7  ;;  %v2355_v38 = vand.u32 4294901760, %v2354_v59 }
  0xc1   : > { %v3148_v25 = vsub.f32 %v10407_v19, %v12685_v35  ;;  %v3154_v22 = vsub.f32 %v10423_v54, %v12687_v16  ;;  %v2343_v35 = vand.u32 4294901760, %v2342_v3  ;;  %v12689_v56 = vand.u32 4294901760, %v10435_v58  ;;  %3040 = vmatmul.mubr.f32.vlgmr.msra.gmra.mrb[8].mxu1 %v12686_v62  ;;  %8327 = vmatprep.subr.bf16.mxu0 %v8326_v17  ;;  %v12693_v62 = vld [vmem:[#allocation36_spill] sm:$0xff] }
  0xc2   : > { %v3166_v61 = vsub.f32 %v10425_v42, %v12688_v24  ;;  %v12690_v21 = vand.u32 4294901760, %v10454_v32  ;;  %v8424_v16 = vpack.c.bf16 %v3125_v39, %v3113_v34  ;;  %v8330_v45 = vpack.c.bf16 %v2349_v29, %v2337_v26  ;;  %8421 = vmatpush1.bf16.msra.mxu1 %v10709_v51  ;;  %3045 = vmatprep.mubr.f32.mxu1 %v12491_v7 }
  0xc3   : > { %v2366_v30 = vsub.f32 %v10435_v58, %v12689_v56  ;;  %v2361_v20 = vand.u32 4294901760, %v2360_v50  ;;  %v2373_v24 = vand.u32 4294901760, %v2372_v23  ;;  %v3137_v0 = vand.u32 4294901760, %v3136_v49  ;;  %2257 = vmatmul.mubr.f32.gmra.mrb[10].mxu0 %v12693_v62  ;;  %8423 = vmatprep.subr.bf16.mxu1 %v10727_v36  ;;  %v12694_v36 = vld [vmem:[#allocation38_spill] sm:$0xff] }
  0xc4   : > { %v2378_v52 = vsub.f32 %v10454_v32, %v12690_v21  ;;  %v3149_v59 = vand.u32 4294901760, %v3148_v25  ;;  %v12691_v3 = vand.u32 4294901760, %v10464_v57  ;;  %v12692_v14 = vand.u32 4294901760, %v10653_v1  ;;  %8329 = vmatpush1.bf16.msra.mxu0 %v8328_v27  ;;  %2262 = vmatprep.mubr.f32.mxu0 %v12491_v7  ;;  %v12695_v27 = vld [vmem:[#allocation41_spill] sm:$0xff] }
  0xc5   : > { %v8426_v17 = vpack.c.bf16 %v3143_v2, %v3131_v11  ;;  %v3155_v26 = vand.u32 4294901760, %v3154_v22  ;;  %v3167_v39 = vand.u32 4294901760, %v3166_v61  ;;  %v8332_v51 = vpack.c.bf16 %v2355_v38, %v2343_v35  ;;  %3051 = vmatmul.mubr.f32.gmra.mrb[10].mxu1 %v12693_v62  ;;  %8331 = vmatprep.subr.bf16.mxu0 %v8330_v45  ;;  %v12696_v11 = vld [vmem:[#allocation21_spill] sm:$0xff]  ;;  %v12697_v35 = vld [vmem:[#allocation20_spill] sm:$0xff]  ;;  %v12699_v45 = vld [vmem:[#allocation23_spill] sm:$0xff] }
  0xc6   : > { %v3160_v56 = vsub.f32 %v10464_v57, %v12691_v3  ;;  %v3172_v21 = vsub.f32 %v10653_v1, %v12692_v14  ;;  %v2367_v29 = vand.u32 4294901760, %v2366_v30  ;;  %v2379_v50 = vand.u32 4294901760, %v2378_v52  ;;  %8425 = vmatpush1.bf16.msra.mxu1 %v8424_v16  ;;  %3056 = vmatprep.mubr.f32.mxu1 %v12491_v7  ;;  %v12698_v52 = vld [vmem:[#allocation22_spill] sm:$0xff] }
  0xc7   : > { %v8334_v34 = vpack.c.bf16 %v2373_v24, %v2361_v20  ;;  %v8428_v14 = vpack.c.bf16 %v3149_v59, %v3137_v0  ;;  %2268 = vmatmul.mubr.f32.gmra.mrb[12].mxu0 %v12694_v36  ;;  %8427 = vmatprep.subr.bf16.mxu1 %v8426_v17  ;;  %v8430_v22 = vpack.c.bf16 %v3167_v39, %v3155_v26  ;;  %v12700_v24 = vld [vmem:[#allocation24_spill] sm:$0xff]  ;;  %v12701_v59 = vld [vmem:[#allocation26_spill] sm:$0xff] }
  0xc8   : > { %v3161_v23 = vand.u32 4294901760, %v3160_v56  ;;  %v3173_v49 = vand.u32 4294901760, %v3172_v21  ;;  %8333 = vmatpush1.bf16.msra.mxu0 %v8332_v51  ;;  %2273 = vmatprep.mubr.f32.mxu0 %v12491_v7  ;;  %v8336_v38 = vpack.c.bf16 %v2379_v50, %v2367_v29  ;;  %v8338_v20 = vpack.c.bf16 %v10179_v37, %v10146_v40 }
  0xc9   : > { %3062 = vmatmul.mubr.f32.gmra.mrb[12].mxu1 %v12694_v36  ;;  %8335 = vmatprep.subr.bf16.mxu0 %v8334_v34  ;;  %v8434_v2 = vpack.c.bf16 %v10205_v60, %v10192_v31  ;;  %v8340_v25 = vpack.c.bf16 %v10209_v47, %v10207_v10  ;;  %v8342_v61 = vpack.c.bf16 %v12696_v11, %v10224_v43 }
  0xca   : > { %8429 = vmatpush1.bf16.msra.mxu1 %v8428_v14  ;;  %3067 = vmatprep.mubr.f32.mxu1 %v12491_v7  ;;  %v8432_v30 = vpack.c.bf16 %v3173_v49, %v3161_v23  ;;  %v8436_v16 = vpack.c.bf16 %v12698_v52, %v12697_v35  ;;  %v8438_v0 = vpack.c.bf16 %v12700_v24, %v12699_v45  ;;  %v12703_v14 = vld [vmem:[#allocation15_spill] sm:$0xff] }
  0xcb   : > { %2279 = vmatmul.mubr.f32.gmra.mrb[14].mxu0 %v12695_v27  ;;  %8431 = vmatprep.subr.bf16.mxu1 %v8430_v22  ;;  %v8344_v3 = vpack.c.bf16 %v12701_v59, %v10292_v8  ;;  %v8346_v56 = vpack.c.bf16 %v10320_v6, %v10310_v63  ;;  %v8440_v21 = vpack.c.bf16 %v10308_v55, %v10306_v44 }
  0xcc   : > { %8337 = vmatpush1.bf16.msra.mxu0 %v8336_v38  ;;  %2429 = vmatprep.mubr.f32.mxu0 %v12491_v7  ;;  %v8442_v62 = vpack.c.bf16 %v10331_v48, %v10322_v46  ;;  %v8348_v17 = vpack.c.bf16 %v10393_v4, %v10345_v28  ;;  %v8350_v26 = vpack.c.bf16 %v10421_v15, %v10409_v41  ;;  %v12708_v38 = vld [vmem:[#allocation17_spill] sm:$0xff] }
  0xcd   : > { %3073 = vmatmul.mubr.f32.gmra.mrb[14].mxu1 %v12695_v27  ;;  %8339 = vmatprep.subr.bf16.mxu0 %v8338_v20  ;;  %v8444_v39 = vpack.c.bf16 %v10407_v19, %v10395_v5  ;;  %v8446_v51 = vpack.c.bf16 %v10425_v42, %v10423_v54  ;;  %v8352_v29 = vpack.c.bf16 %v10454_v32, %v10435_v58 }
  0xce   : > { %8433 = vmatpush1.bf16.msra.mxu1 %v8432_v30  ;;  %3223 = vmatprep.mubr.f32.mxu1 %v12491_v7  ;;  %v8448_v50 = vpack.c.bf16 %v10653_v1, %v10464_v57 }
  0xcf   : > { %2431 = vmatmul.mubr.f32.vlgmr.msra.gmra.mrb[8].mxu0 %v9393_v9  ;;  %8435 = vmatprep.subr.bf16.mxu1 %v8434_v2  ;;  %v12712_v2 = vld [vmem:[#allocation18_spill] sm:$0xff] }
  0xd0   : > { %8341 = vmatpush1.bf16.msra.mxu0 %v8340_v25  ;;  %2436 = vmatprep.mubr.f32.mxu0 %v12491_v7 }
  0xd1   : > { %3225 = vmatmul.mubr.f32.vlgmr.msra.gmra.mrb[8].mxu1 %v9393_v9  ;;  %8343 = vmatprep.subr.bf16.mxu0 %v8342_v61  ;;  %v12714_v61 = vld [vmem:[#allocation11_spill] sm:$0xff] }
  0xd2   : > { %8437 = vmatpush1.bf16.msra.mxu1 %v8436_v16  ;;  %3230 = vmatprep.mubr.f32.mxu1 %v12491_v7  ;;  %vm12715_vm0 = vnez %v12714_v61 }
  0xd3   : > { %2438 = vmatmul.mubr.f32.gmra.mrb[10].mxu0 %v9395_v12  ;;  %8439 = vmatprep.subr.bf16.mxu1 %v8438_v0  ;;  %v12717_v0 = vand.u32 4294901760, %v10146_v40 }
  0xd4   : > { %8345 = vmatpush1.bf16.msra.mxu0 %v8344_v3  ;;  %2443 = vmatprep.mubr.f32.mxu0 %v12491_v7  ;;  %v12718_v3 = vand.u32 4294901760, %v10179_v37 }
  0xd5   : > { %3232 = vmatmul.mubr.f32.gmra.mrb[10].mxu1 %v9395_v12  ;;  %8347 = vmatprep.subr.bf16.mxu0 %v8346_v56 }
  0xd6   : > { %8441 = vmatpush1.bf16.msra.mxu1 %v8440_v21  ;;  %3237 = vmatprep.mubr.f32.mxu1 %v12491_v7  ;;  %v8370_v56 = vpack.c.bf16 %v12718_v3, %v12717_v0  ;;  %v12719_v21 = vld [vmem:[#allocation13_spill] sm:$0xff]  ;;  %v12733_v0 = vld [vmem:[#allocation16_spill] sm:$0xff]  ;;  %v12734_v3 = vand.u32 4294901760, %v12699_v45  ;;  %v12740_v45 = vand.u32 4294901760, %v10306_v44  ;;  %v12747_v44 = vand.u32 4294901760, %v10409_v41 }
  0xd7   : > { %2445 = vmatmul.mubr.f32.gmra.mrb[12].mxu0 %v9397_v13  ;;  %8443 = vmatprep.subr.bf16.mxu1 %v8442_v62  ;;  %vm12720_vm6 = vnez %v12719_v21  ;;  %v12721_v62 = vld [vmem:[#allocation39_spill] sm:$0xff]  ;;  %v12754_v41 = vand.u32 4294901760, %v10435_v58 }
  0xd8   : > { %8349 = vmatpush1.bf16.msra.mxu0 %v8348_v17  ;;  %2450 = vmatprep.mubr.f32.mxu0 %v12491_v7 }
  0xd9   : > { %3239 = vmatmul.mubr.f32.gmra.mrb[12].mxu1 %v9397_v13  ;;  %8351 = vmatprep.subr.bf16.mxu0 %v8350_v26  ;;  %v12723_v26 = vand.u32 4294901760, %v10192_v31  ;;  %v12729_v31 = vand.u32 4294901760, %v12696_v11 }
  0xda   : > { %8445 = vmatpush1.bf16.msra.mxu1 %v8444_v39  ;;  %3244 = vmatprep.mubr.f32.mxu1 %v12491_v7  ;;  %v12724_v39 = vand.u32 4294901760, %v10205_v60 }
  0xdb   : > { %2452 = vmatmul.mubr.f32.gmra.mrb[14].mxu0 %v12589_v53  ;;  %8447 = vmatprep.subr.bf16.mxu1 %v8446_v51  ;;  %v12726_v51 = vand.u32 4294901760, %v10207_v10  ;;  %v12732_v10 = vand.u32 4294901760, %v12698_v52  ;;  %v12739_v52 = vand.u32 4294901760, %v10320_v6  ;;  %v12746_v6 = vand.u32 4294901760, %v10393_v4 }
  0xdc   : > { %8353 = vmatpush1.bf16.msra.mxu0 %v8352_v29  ;;  %2554 = vmatprep.mubr.f32.mxu0 %v12491_v7  ;;  %v8466_v40 = vpack.c.bf16 %v12724_v39, %v12723_v26  ;;  %v12727_v29 = vand.u32 4294901760, %v10209_v47  ;;  %v12752_v4 = vand.u32 4294901760, %v10423_v54 }
  0xdd   : > { %3246 = vmatmul.mubr.f32.gmra.mrb[14].mxu1 %v12589_v53  ;;  %8355 = vmatprep.subr.msk.bf16.mxu0 %vm10450_vm10, %v12475_v18 }
  0xde   : > { %8449 = vmatpush1.bf16.msra.mxu1 %v8448_v50  ;;  %3348 = vmatprep.mubr.f32.mxu1 %v12491_v7  ;;  %v8372_v50 = vpack.c.bf16 %v12727_v29, %v12726_v51  ;;  %v12744_v51 = vand.u32 4294901760, %v10331_v48  ;;  %v12750_v48 = vand.u32 4294901760, %v10407_v19  ;;  %v12757_v19 = vand.u32 4294901760, %v10653_v1 }
  0xdf   : > { %2557 = vmatmul.mubr.f32.vlgmr.msra.gmra.mrb[8].mxu0 %v12703_v14  ;;  %8451 = vmatprep.subr.msk.bf16.mxu1 %vm10479_vm9, %v12475_v18 }
  0xe0   : > { %8357 = vmatpush1.bf16.msk.msra.mxu0 %vm10503_vm4, %v12475_v18  ;;  %2562 = vmatprep.mubr.f32.mxu0 %v12491_v7 }
  0xe1   : > { %3351 = vmatmul.mubr.f32.vlgmr.msra.gmra.mrb[8].mxu1 %v12703_v14  ;;  %8359 = vmatprep.subr.msk.bf16.mxu0 %vm10526_vm1, %v12475_v18  ;;  %v12728_v14 = vand.u32 4294901760, %v10224_v43  ;;  %v12735_v43 = vand.u32 4294901760, %v12700_v24  ;;  %v12741_v24 = vand.u32 4294901760, %v10308_v55  ;;  %v12748_v55 = vand.u32 4294901760, %v10421_v15 }
  0xe2   : > { %8453 = vmatpush1.bf16.msk.msra.mxu1 %vm10550_vm8, %v12475_v18  ;;  %3356 = vmatprep.mubr.f32.mxu1 %v12491_v7  ;;  %v12755_v15 = vand.u32 4294901760, %v10454_v32 }
  0xe3   : > { %2565 = vmatmul.mubr.f32.gmra.mrb[10].mxu0 %v12708_v38  ;;  %8455 = vmatprep.subr.msk.bf16.mxu1 %vm10577_vm3, %v12475_v18  ;;  %v8374_v60 = vpack.c.bf16 %v12729_v31, %v12728_v14  ;;  %v8470_v11 = vpack.c.bf16 %v12735_v43, %v12734_v3  ;;  %v8382_v14 = vpack.c.bf16 %v12748_v55, %v12747_v44 }
  0xe4   : > { %8361 = vmatpush1.bf16.msk.msra.mxu0 %vm10598_vm2, %v12475_v18  ;;  %2570 = vmatprep.mubr.f32.mxu0 %v12491_v7 }
  0xe5   : > { %3359 = vmatmul.mubr.f32.gmra.mrb[10].mxu1 %v12708_v38  ;;  %8363 = vmatprep.subr.msk.bf16.mxu0 %vm10613_vm11, %v12475_v18 }
  0xe6   : > { %8457 = vmatpush1.bf16.msk.msra.mxu1 %vm10634_vm7, %v12475_v18  ;;  %3364 = vmatprep.mubr.f32.mxu1 %v12491_v7 }
  0xe7   : > { %2573 = vmatmul.mubr.f32.gmra.mrb[12].mxu0 %v12712_v2  ;;  %8459 = vmatprep.subr.msk.bf16.mxu1 %vm10649_vm13, %v12475_v18 }
  0xe8   : > { %8365 = vmatpush1.bf16.msk.msra.mxu0 %vm12715_vm0, %v12475_v18  ;;  %2578 = vmatprep.mubr.f32.mxu0 %v12491_v7 }
  0xe9   : > { %3367 = vmatmul.mubr.f32.gmra.mrb[12].mxu1 %v12712_v2  ;;  %8367 = vmatprep.subr.msk.bf16.mxu0 %vm10686_vm5, %v12475_v18  ;;  %v12731_v2 = vand.u32 4294901760, %v12697_v35  ;;  %v12738_v35 = vand.u32 4294901760, %v10310_v63  ;;  %v12745_v63 = vand.u32 4294901760, %v10345_v28  ;;  %v12751_v28 = vld [vmem:[#allocation37_spill] sm:$0xff] }
  0xea   : > { %8461 = vmatpush1.bf16.msk.msra.mxu1 %vm12720_vm6, %v12475_v18  ;;  %3372 = vmatprep.mubr.f32.mxu1 %v12491_v7 }
  0xeb   : > { %2581 = vmatmul.mubr.f32.gmra.mrb[14].mxu0 %v12721_v62  ;;  %8463 = vmatprep.subr.msk.bf16.mxu1 %vm10723_vm12, %v12475_v18  ;;  %v8468_v47 = vpack.c.bf16 %v12732_v10, %v12731_v2  ;;  %v8378_v39 = vpack.c.bf16 %v12739_v52, %v12738_v35  ;;  %v8384_v10 = vpack.c.bf16 %v12755_v15, %v12754_v41 }
  0xec   : > { %8369 = vmatpush1.bf16.msk.msra.mxu0 %vm10744_vm15, %v12475_v18  ;;  %2667 = vmatprep.mubr.f32.mxu0 %v12491_v7 }
  0xed   : > { %3375 = vmatmul.mubr.f32.gmra.mrb[14].mxu1 %v12721_v62  ;;  %8371 = vmatprep.subr.bf16.mxu0 %v8370_v56  ;;  %v12736_v56 = vand.u32 4294901760, %v10292_v8  ;;  %v12737_v62 = vand.u32 4294901760, %v12701_v59  ;;  %v12742_v8 = vld [vmem:[#allocation35_spill] sm:$0xff]  ;;  %v12743_v59 = vand.u32 4294901760, %v10322_v46  ;;  %v12749_v46 = vand.u32 4294901760, %v10395_v5 }
  0xee   : > { %8465 = vmatpush1.bf16.msk.msra.mxu1 %vm10771_vm14, %v12475_v18  ;;  %3461 = vmatprep.mubr.f32.mxu1 %v12491_v7  ;;  %v12756_v5 = vand.u32 4294901760, %v10464_v57 }
  0xef   : > { %2671 = vmatmul.mubr.f32.vlgmr.msra.gmra.mrb[8].mxu0 %v12733_v0  ;;  %8467 = vmatprep.subr.bf16.mxu1 %v8466_v40  ;;  %v8376_v26 = vpack.c.bf16 %v12737_v62, %v12736_v56  ;;  %v8472_v40 = vpack.c.bf16 %v12741_v24, %v12740_v45  ;;  %v8474_v29 = vpack.c.bf16 %v12744_v51, %v12743_v59 }
  0xf0   : > { %8373 = vmatpush1.bf16.msra.mxu0 %v8372_v50  ;;  %2676 = vmatprep.mubr.f32.mxu0 %v12491_v7  ;;  %v8380_v50 = vpack.c.bf16 %v12746_v6, %v12745_v63  ;;  %v8476_v31 = vpack.c.bf16 %v12750_v48, %v12749_v46  ;;  %v8480_v54 = vpack.c.bf16 %v12757_v19, %v12756_v5 }
  0xf1   : > { %3465 = vmatmul.mubr.f32.vlgmr.msra.gmra.mrb[8].mxu1 %v12733_v0  ;;  %8375 = vmatprep.subr.bf16.mxu0 %v8374_v60  ;;  %v12753_v60 = vand.u32 4294901760, %v10425_v42  ;;  %v12758_v42 = vld [vmem:[#allocation40_spill] sm:$0xff] }
  0xf2   : > { %8469 = vmatpush1.bf16.msra.mxu1 %v8468_v47  ;;  %3470 = vmatprep.mubr.f32.mxu1 %v12491_v7 }
  0xf3   : > { %2680 = vmatmul.mubr.f32.gmra.mrb[10].mxu0 %v12742_v8  ;;  %8471 = vmatprep.subr.bf16.mxu1 %v8470_v11  ;;  %v8478_v2 = vpack.c.bf16 %v12753_v60, %v12752_v4 }
  0xf4   : > { %8377 = vmatpush1.bf16.msra.mxu0 %v8376_v26  ;;  %2685 = vmatprep.mubr.f32.mxu0 %v12491_v7 }
  0xf5   : > { %3474 = vmatmul.mubr.f32.gmra.mrb[10].mxu1 %v12742_v8  ;;  %8379 = vmatprep.subr.bf16.mxu0 %v8378_v39 }
  0xf6   : > { %8473 = vmatpush1.bf16.msra.mxu1 %v8472_v40  ;;  %3479 = vmatprep.mubr.f32.mxu1 %v12491_v7 }
  0xf7   : > { %2689 = vmatmul.mubr.f32.gmra.mrb[12].mxu0 %v12751_v28  ;;  %8475 = vmatprep.subr.bf16.mxu1 %v8474_v29 }
  0xf8   : > { %8381 = vmatpush1.bf16.msra.mxu0 %v8380_v50  ;;  %2694 = vmatprep.mubr.f32.mxu0 %v12491_v7 }
  0xf9   : > { %3483 = vmatmul.mubr.f32.gmra.mrb[12].mxu1 %v12751_v28  ;;  %8383 = vmatprep.subr.bf16.mxu0 %v8382_v14 }
  0xfa   : > { %8477 = vmatpush1.bf16.msra.mxu1 %v8476_v31  ;;  %3488 = vmatprep.mubr.f32.mxu1 %v12491_v7 }
  0xfb   : > { %2698 = vmatmul.mubr.f32.gmra.mrb[14].mxu0 %v12758_v42  ;;  %8479 = vmatprep.subr.bf16.mxu1 %v8478_v2 }
  0xfc   : > { %8385 = vmatpush1.bf16.msra.mxu0 %v8384_v10  ;;  %2816 = vmatprep.mubr.f32.mxu0 %v12491_v7 }
  0xfd   : > { %3492 = vmatmul.mubr.f32.gmra.mrb[14].mxu1 %v12758_v42  ;;  %8387 = vmatprep.subr.msk.bf16.mxu0 %vm10450_vm10, %v12475_v18 }
  0xfe   : > { %8481 = vmatpush1.bf16.msra.mxu1 %v8480_v54  ;;  %3610 = vmatprep.mubr.f32.mxu1 %v12491_v7 }
  0xff   : > { %2818 = vmatmul.mubr.f32.vlgmr.msra.gmra.mrb[8].mxu0 %v9393_v9  ;;  %8483 = vmatprep.subr.msk.bf16.mxu1 %vm10479_vm9, %v12475_v18 }
 0x100   : > { %8389 = vmatpush1.bf16.msk.msra.mxu0 %vm10503_vm4, %v12475_v18  ;;  %2823 = vmatprep.mubr.f32.mxu0 %v12491_v7 }
 0x101   : > { %3612 = vmatmul.mubr.f32.vlgmr.msra.gmra.mrb[8].mxu1 %v9393_v9  ;;  %8391 = vmatprep.subr.msk.bf16.mxu0 %vm10526_vm1, %v12475_v18  ;;  %vm3756_vm1 = vcmask 261120  }
 0x102   : > { %8485 = vmatpush1.bf16.msk.msra.mxu1 %vm10550_vm8, %v12475_v18  ;;  %3617 = vmatprep.mubr.f32.mxu1 %v12491_v7 }
 0x103   : > { %2825 = vmatmul.mubr.f32.gmra.mrb[10].mxu0 %v9395_v12  ;;  %8487 = vmatprep.subr.msk.bf16.mxu1 %vm10577_vm3, %v12475_v18 }
 0x104   : > { %8393 = vmatpush1.bf16.msk.msra.mxu0 %vm10598_vm2, %v12475_v18  ;;  %2830 = vmatprep.mubr.f32.mxu0 %v12491_v7 }
 0x105   : > { %3619 = vmatmul.mubr.f32.gmra.mrb[10].mxu1 %v9395_v12  ;;  %8395 = vmatprep.subr.msk.bf16.mxu0 %vm10613_vm11, %v12475_v18 }
 0x106   : > { %8489 = vmatpush1.bf16.msk.msra.mxu1 %vm10634_vm7, %v12475_v18  ;;  %3624 = vmatprep.mubr.f32.mxu1 %v12491_v7 }
 0x107   : > { %2832 = vmatmul.mubr.f32.gmra.mrb[12].mxu0 %v9397_v13  ;;  %8491 = vmatprep.subr.msk.bf16.mxu1 %vm10649_vm13, %v12475_v18 }
 0x108   : > { %8397 = vmatpush1.bf16.msk.msra.mxu0 %vm12715_vm0, %v12475_v18  ;;  %2837 = vmatprep.mubr.f32.mxu0 %v12491_v7 }
 0x109   : > { %3626 = vmatmul.mubr.f32.gmra.mrb[12].mxu1 %v9397_v13  ;;  %8399 = vmatprep.subr.msk.bf16.mxu0 %vm10686_vm5, %v12475_v18 }
 0x10a   : > { %8493 = vmatpush1.bf16.msk.msra.mxu1 %vm12720_vm6, %v12475_v18  ;;  %3631 = vmatprep.mubr.f32.mxu1 %v12491_v7 }
 0x10b   : > { %2839 = vmatmul.mubr.f32.gmra.mrb[14].mxu0 %v12589_v53  ;;  %8495 = vmatprep.subr.msk.bf16.mxu1 %vm10723_vm12, %v12475_v18 }
 0x10c   : > { %8401 = vmatpush1.bf16.msk.msra.mxu0 %vm10744_vm15, %v12475_v18  ;;  %2925 = vmatprep.mubr.f32.mxu0 %v12491_v7 }
 0x10d   : > { %3633 = vmatmul.mubr.f32.gmra.mrb[14].mxu1 %v12589_v53 }
 0x10e   : > { %8497 = vmatpush1.bf16.msk.msra.mxu1 %vm10771_vm14, %v12475_v18  ;;  %3719 = vmatprep.mubr.f32.mxu1 %v12491_v7 }
 0x10f   : > { %2927 = vmatmul.mubr.f32.vlgmr.msra.gmra.mrb[8].mxu0 %v9393_v9 }
 0x110   : > { %2932 = vmatprep.mubr.f32.mxu0 %v12491_v7 }
 0x111   : > { %3721 = vmatmul.mubr.f32.vlgmr.msra.gmra.mrb[8].mxu1 %v9393_v9 }
 0x112   : > { %3726 = vmatprep.mubr.f32.mxu1 %v12491_v7 }
 0x113   : > { %2934 = vmatmul.mubr.f32.gmra.mrb[10].mxu0 %v9395_v12 }
 0x114   : > { %2939 = vmatprep.mubr.f32.mxu0 %v12491_v7 }
 0x115   : > { %3728 = vmatmul.mubr.f32.gmra.mrb[10].mxu1 %v9395_v12 }
 0x116   : > { %3733 = vmatprep.mubr.f32.mxu1 %v12491_v7 }
 0x117   : > { %2941 = vmatmul.mubr.f32.gmra.mrb[12].mxu0 %v9397_v13 }
 0x118   : > { %2946 = vmatprep.mubr.f32.mxu0 %v12491_v7 }
 0x119   : > { %3735 = vmatmul.mubr.f32.gmra.mrb[12].mxu1 %v9397_v13 }
 0x11a   : > { %3740 = vmatprep.mubr.f32.mxu1 %v12491_v7 }
 0x11b   : > { %2948 = vmatmul.mubr.f32.gmra.mrb[14].mxu0 %v12589_v53 }
 0x11c   : > { %3841 = vmatprep.mubr.f32.mxu0 %v12491_v7 }
 0x11d   : > { %3742 = vmatmul.mubr.f32.gmra.mrb[14].mxu1 %v12589_v53 }
 0x11e   : > { %4531 = vmatprep.mubr.f32.mxu1 %v12491_v7 }
 0x177   : > { %v1340_v9 = vpop.f32.mrb[0].mxu0 }
 0x178   : > { %v5163_v12 = vand.u32 4294901760, %v1340_v9  ;;  %v1342_v18 = vpop.f32.mrb[1].mxu0 }
 0x179   : > { %v2134_v58 = vpop.f32.mrb[0].mxu1  ;;  %v5161_v57 = vand.u32 4294901760, %v1342_v18 }
 0x17a   : > { %v11122_v32 = vsub.f32 %v1340_v9, %v5163_v12  ;;  %v5853_v33 = vand.u32 4294901760, %v2134_v58  ;;  %v2136_v1 = vpop.f32.mrb[1].mxu1 }
 0x17b   : > { %v11124_v13 = vsub.f32 %v1342_v18, %v5161_v57  ;;  %v5851_v34 = vand.u32 4294901760, %v2136_v1  ;;  %v1347_v23 = vpop.f32.mrb[2].mxu0 }
 0x17c   : > { %12759 = vst [vmem:[#allocation32_spill] sm:$0xff] %v11122_v32  ;;  %v11126_v49 = vsub.f32 %v2134_v58, %v5853_v33  ;;  %v5167_v36 = vand.u32 4294901760, %v1347_v23  ;;  %v1349_v22 = vpop.f32.mrb[3].mxu0  ;;  %v12372_v53 = vand.u32 4294901760, %v11122_v32 }
 0x17d   : > { %12760 = vst [vmem:[#allocation34_spill] sm:$0xff] %v11124_v13  ;;  %v2141_v20 = vpop.f32.mrb[2].mxu1  ;;  %v5165_v30 = vand.u32 4294901760, %v1349_v22  ;;  %v5280_v27 = vand.u32 4294901760, %v11124_v13  ;;  %v11134_v21 = vsub.f32 %v2136_v1, %v5851_v34 }
 0x17e   : > { %12761 = vst [vmem:[#allocation36_spill] sm:$0xff] %v11126_v49  ;;  %v11130_v25 = vpack.c.bf16 %v5167_v36, %v5163_v12  ;;  %v11132_v61 = vsub.f32 %v1347_v23, %v5167_v36  ;;  %v2143_v16 = vpop.f32.mrb[3].mxu1  ;;  %v5857_v17 = vand.u32 4294901760, %v2141_v20  ;;  %v12370_v47 = vand.u32 4294901760, %v11126_v49 }
 0x17f   : > { %12764 = vst [vmem:[#allocation21_spill] sm:$0xff] %v11134_v21  ;;  %v11136_v37 = vpack.c.bf16 %v5165_v30, %v5161_v57  ;;  %v11145_v11 = vsub.f32 %v11122_v32, %v12372_v53  ;;  %v11151_v26 = vsub.f32 %v1349_v22, %v5165_v30  ;;  %v11156_v52 = vsub.f32 %v11124_v13, %v5280_v27 }
 0x180   : > { %12762 = vst [vmem:[#allocation38_spill] sm:$0xff] %v11130_v25  ;;  %12763 = vst [vmem:[#allocation41_spill] sm:$0xff] %v11132_v61  ;;  %v1354_v38 = vpop.f32.mrb[4].mxu0  ;;  %v12371_v0 = vand.u32 4294901760, %v11132_v61  ;;  %v11147_v56 = vpack.c.bf16 %v5857_v17, %v5853_v33  ;;  %v11149_v62 = vsub.f32 %v2141_v20, %v5857_v17  ;;  %v5855_v39 = vand.u32 4294901760, %v2143_v16 }
 0x181   : > { %12765 = vst [vmem:[#allocation20_spill] sm:$0xff] %v11136_v37  ;;  %v1356_v43 = vpop.f32.mrb[5].mxu0  ;;  %12768 = vst [vmem:[#allocation24_spill] sm:$0xff] %v11151_v26  ;;  %v2148_v35 = vpop.f32.mrb[4].mxu1  ;;  %v5171_v45 = vand.u32 4294901760, %v1354_v38  ;;  %v12373_v40 = vand.u32 4294901760, %v11134_v21  ;;  %v11165_v63 = vsub.f32 %v11126_v49, %v12370_v47 }
 0x182   : > { %12766 = vst [vmem:[#allocation22_spill] sm:$0xff] %v11147_v56  ;;  %12767 = vst [vmem:[#allocation23_spill] sm:$0xff] %v11149_v62  ;;  %v2150_v24 = vpop.f32.mrb[5].mxu1  ;;  %v12369_v8 = vand.u32 4294901760, %v11149_v62  ;;  %v5861_v51 = vand.u32 4294901760, %v2148_v35  ;;  %v5299_v6 = vsub.f32 %v11132_v61, %v12371_v0  ;;  %v11170_v50 = vpack.c.bf16 %v5855_v39, %v5851_v34 }
 0x183   : > { %v11172_v44 = vsub.f32 %v2143_v16, %v5855_v39  ;;  %v5288_v14 = vand.u32 4294901760, %v11145_v11  ;;  %v5292_v46 = vand.u32 4294901760, %v11151_v26  ;;  %v11176_v48 = vsub.f32 %v1354_v38, %v5171_v45 }
 0x184   : > { %v1361_v29 = vpop.f32.mrb[6].mxu0  ;;  %12769 = vst [vmem:[#allocation26_spill] sm:$0xff] %v11170_v50  ;;  %v5169_v31 = vand.u32 4294901760, %v1356_v43  ;;  %v5989_v4 = vsub.f32 %v11149_v62, %v12369_v8  ;;  %v11181_v60 = vsub.f32 %v2148_v35, %v5861_v51  ;;  %v5859_v2 = vand.u32 4294901760, %v2150_v24 }
 0x185   : > { %12770 = vst [vmem:[#allocation25_spill] sm:$0xff] %v11172_v44  ;;  %v1363_v55 = vpop.f32.mrb[7].mxu0  ;;  %12771 = vst [vmem:[#allocation15_spill] sm:$0xff] %v11176_v48  ;;  %v5175_v41 = vand.u32 4294901760, %v1361_v29  ;;  %v5971_v10 = vsub.f32 %v11134_v21, %v12373_v40  ;;  %v5982_v5 = vand.u32 4294901760, %v11172_v44  ;;  %v5978_v42 = vand.u32 4294901760, %v11165_v63 }
 0x186   : > { %v2155_v28 = vpop.f32.mrb[6].mxu1  ;;  %12772 = vst [vmem:[#allocation27_spill] sm:$0xff] %v11181_v60  ;;  %v11187_v19 = vsub.f32 %v1356_v43, %v5169_v31  ;;  %v5300_v9 = vand.u32 4294901760, %v5299_v6  ;;  %v11190_v12 = vsub.f32 %v2150_v24, %v5859_v2  ;;  %v5293_v58 = vsub.f32 %v11151_v26, %v5292_v46 }
 0x187   : > { %v2157_v15 = vpop.f32.mrb[7].mxu1  ;;  %v5865_v54 = vand.u32 4294901760, %v2155_v28  ;;  %v11192_v18 = vpack.c.bf16 %v5175_v41, %v5171_v45  ;;  %v5310_v57 = vand.u32 4294901760, %v11176_v48  ;;  %v11198_v33 = vsub.f32 %v1361_v29, %v5175_v41 }
 0x188   : > { %12773 = vst [vmem:[#allocation28_spill] sm:$0xff] %v11187_v19  ;;  %12774 = vst [vmem:[#allocation30_spill] sm:$0xff] %v11190_v12  ;;  %v5990_v34 = vand.u32 4294901760, %v5989_v4  ;;  %v6000_v23 = vand.u32 4294901760, %v11181_v60  ;;  %v5173_v22 = vand.u32 4294901760, %v1363_v55  ;;  %v5983_v20 = vsub.f32 %v11172_v44, %v5982_v5 }
 0x189   : > { %12775 = vst [vmem:[#allocation29_spill] sm:$0xff] %v11192_v18  ;;  %12776 = vst [vmem:[#allocation17_spill] sm:$0xff] %v11198_v33  ;;  %v11200_v1 = vpack.c.bf16 %v5865_v54, %v5861_v51  ;;  %v11203_v36 = vsub.f32 %v2155_v28, %v5865_v54  ;;  %v5304_v30 = vand.u32 4294901760, %v11187_v19  ;;  %v5322_v16 = vand.u32 4294901760, %v11198_v33 }
 0x18a   : > { %v5994_v38 = vand.u32 4294901760, %v11190_v12  ;;  %v11214_v35 = vpack.c.bf16 %v5173_v22, %v5169_v31  ;;  %v5311_v39 = vsub.f32 %v11176_v48, %v5310_v57  ;;  %v11218_v24 = vsub.f32 %v1363_v55, %v5173_v22 }
 0x18b   : > { %12777 = vst [vmem:[#allocation33_spill] sm:$0xff] %v11200_v1  ;;  %12778 = vst [vmem:[#allocation7_spill] sm:$0xff] %v11203_v36  ;;  %v6012_v43 = vand.u32 4294901760, %v11203_v36  ;;  %v5323_v45 = vsub.f32 %v11198_v33, %v5322_v16  ;;  %v5863_v51 = vand.u32 4294901760, %v2157_v15  ;;  %v6001_v29 = vsub.f32 %v11181_v60, %v6000_v23 }
 0x18c   : > { %12779 = vst [vmem:[#allocation9_spill] sm:$0xff] %v11214_v35  ;;  %12780 = vst [vmem:[#allocation18_spill] sm:$0xff] %v11218_v24  ;;  %v5282_v6 = vand.u32 4294901760, %v11156_v52  ;;  %v5294_v28 = vand.u32 4294901760, %v5293_v58  ;;  %v5305_v4 = vsub.f32 %v11187_v19, %v5304_v30  ;;  %v5316_v41 = vand.u32 4294901760, %v11218_v24 }
 0x18d   : > { %v6013_v63 = vsub.f32 %v11203_v36, %v6012_v43  ;;  %v11225_v31 = vpack.c.bf16 %v5863_v51, %v5859_v2  ;;  %v11227_v54 = vsub.f32 %v2157_v15, %v5863_v51  ;;  %v5995_v11 = vsub.f32 %v11190_v12, %v5994_v38 }
 0x18e   : > { %v5324_v55 = vand.u32 4294901760, %v5323_v45  ;;  %v11230_v17 = vpack.c.bf16 %v5294_v28, %v5282_v6  ;;  %v5317_v59 = vsub.f32 %v11218_v24, %v5316_v41  ;;  %v5972_v52 = vand.u32 4294901760, %v5971_v10 }
 0x18f   : > { %12781 = vst [vmem:[#allocation10_spill] sm:$0xff] %v11225_v31  ;;  %12782 = vst [vmem:[#allocation11_spill] sm:$0xff] %v11227_v54  ;;  %v6014_v22 = vand.u32 4294901760, %v6013_v63  ;;  %v6006_v3 = vand.u32 4294901760, %v11227_v54  ;;  %v5984_v58 = vand.u32 4294901760, %v5983_v20  ;;  %v5312_v8 = vand.u32 4294901760, %v5311_v39 }
 0x190   : > { %12783 = vst [vmem:[#allocation12_spill] sm:$0xff] %v11230_v17  ;;  %v6002_v47 = vand.u32 4294901760, %v6001_v29  ;;  %v11234_v0 = vpack.c.bf16 %v5300_v9, %v5288_v14  ;;  %v11236_v2 = vpack.c.bf16 %v5990_v34, %v5978_v42  ;;  %v5306_v45 = vand.u32 4294901760, %v5305_v4 }
 0x191   : > { %v6007_v15 = vsub.f32 %v11227_v54, %v6006_v3  ;;  %v11239_v51 = vpack.c.bf16 %v5984_v58, %v5972_v52  ;;  %v5318_v63 = vand.u32 4294901760, %v5317_v59  ;;  %v5996_v6 = vand.u32 4294901760, %v5995_v11  ;;  %v3752_v52 = vld [vmem:[%s12177_s4] sm:$0xff]  ;;  %v3753_v58 = vld [vmem:[%s12177_s4 + $0x8] sm:$0xff] }
 0x192   : > { %12784 = vst [vmem:[#allocation13_spill] sm:$0xff] %v11234_v0  ;;  %12785 = vst [vmem:[#allocation39_spill] sm:$0xff] %v11236_v2  ;;  %v11241_v28 = vpack.c.bf16 %v5324_v55, %v5312_v8  ;;  %v11245_v10 = vpack.c.bf16 %v6014_v22, %v6002_v47  ;;  %v11261_v47 = vpack.c.bf16 %v5292_v46, %v5280_v27  ;;  %v12792_v59 = vand.u32 4294901760, %v11134_v21 }
 0x193   : > { %12786 = vst [vmem:[#allocation14_spill] sm:$0xff] %v11239_v51  ;;  %v11243_v53 = vpack.c.bf16 %v5318_v63, %v5306_v45  ;;  %v6008_v40 = vand.u32 4294901760, %v6007_v15  ;;  %v12794_v11 = vand.u32 4294901760, %v11122_v32  ;;  %v12795_v39 = vand.u32 4294901760, %v11132_v61  ;;  %v3755_v45 = vld [vmem:[%s12177_s4 + $0x18] sm:$0xff] }
 0x194   : > { %12787 = vst [vmem:[#allocation19_spill] sm:$0xff] %v11241_v28  ;;  %12789 = vst [vmem:[#allocation16_spill] sm:$0xff] %v11245_v10  ;;  %v11265_v20 = vpack.c.bf16 %v5982_v5, %v12792_v59  ;;  %v12798_v4 = vand.u32 4294901760, %v11149_v62  ;;  %v11279_v22 = vpack.c.bf16 %v5316_v41, %v5304_v30  ;;  %v11281_v27 = vpack.c.bf16 %v6006_v3, %v5994_v38 }
 0x195   : > { %12788 = vst [vmem:[#allocation31_spill] sm:$0xff] %v11243_v53  ;;  %v11253_v34 = vpack.c.bf16 %v6008_v40, %v5996_v6  ;;  %12791 = vst [vmem:[#allocation37_spill] sm:$0xff] %v11261_v47  ;;  %v11271_v29 = vpack.c.bf16 %v12795_v39, %v12794_v11  ;;  %v12797_v40 = vand.u32 4294901760, %v11126_v49  ;;  %v11283_v46 = vpack.c.bf16 %v5322_v16, %v5310_v57  ;;  %v3754_v57 = vld [vmem:[%s12177_s4 + $0x10] sm:$0xff] }
 0x196   : > { %12793 = vst [vmem:[#allocation40_spill] sm:$0xff] %v11265_v20  ;;  %12800 = vst [vmem:[#allocation44_spill] sm:$0xff] %v11279_v22  ;;  %v11285_v5 = vpack.c.bf16 %v6012_v43, %v6000_v23  ;;  %v3758_v15 = vsel %vm3756_vm1, %v3752_v52, 0  ;;  %v3761_v30 = vsel %vm3756_vm1, %v3753_v58, 0  ;;  %v3764_v23 = vsel %vm3756_vm1, %v3754_v57, 0 }
 0x197   : > { %12790 = vst [vmem:[#allocation35_spill] sm:$0xff] %v11253_v34  ;;  %12796 = vst [vmem:[#allocation42_spill] sm:$0xff] %v11271_v29  ;;  %v11277_v55 = vpack.c.bf16 %v12798_v4, %v12797_v40  ;;  %v11295_v41 = vand.u32 4294901760, %v3758_v15  ;;  %v11297_v3 = vand.u32 4294901760, %v3761_v30  ;;  %v11309_v43 = vand.u32 4294901760, %v3764_v23 }
 0x198   : > { %12801 = vst [vmem:[#allocation45_spill] sm:$0xff] %v11281_v27  ;;  %12802 = vst [vmem:[#allocation46_spill] sm:$0xff] %v11283_v46  ;;  %v3767_v11 = vsel %vm3756_vm1, %v3755_v45, 0 }
 0x199   : > { %12799 = vst [vmem:[#allocation43_spill] sm:$0xff] %v11277_v55  ;;  %12803 = vst [vmem:[#allocation47_spill] sm:$0xff] %v11285_v5  ;;  %v11304_v16 = vsub.f32 %v3758_v15, %v11295_v41  ;;  %v11307_v38 = vsub.f32 %v3761_v30, %v11297_v3  ;;  %v11321_v59 = vsub.f32 %v3764_v23, %v11309_v43  ;;  %v11328_v15 = vand.u32 4294901760, %v3767_v11 }
 0x19b   : > { %12804 = vst [vmem:[#allocation48_spill] sm:$0xff] %v11307_v38  ;;  %v11315_v63 = vand.u32 4294901760, %v11304_v16  ;;  %v11318_v6 = vand.u32 4294901760, %v11307_v38  ;;  %v11331_v8 = vand.u32 4294901760, %v11321_v59  ;;  %v11345_v47 = vsub.f32 %v3767_v11, %v11328_v15 }
 0x19d   : > { %12805 = vst [vmem:[#allocation49_spill] sm:$0xff] %v11315_v63  ;;  %12806 = vst [vmem:[#allocation50_spill] sm:$0xff] %v11318_v6  ;;  %v3845_v40 = vsub.f32 %v11304_v16, %v11315_v63  ;;  %v3856_v4 = vsub.f32 %v11307_v38, %v11318_v6 }
 0x19f   : > { %v11337_v46 = vand.u32 4294901760, %v3845_v40  ;;  %v11339_v27 = vand.u32 4294901760, %v3856_v4 }
 0x1e2   : > { %v2928_v39 = vpop.f32.mrb[8].mxu0 }
 0x1e3   : > { %v3771_v52 = vand.u32 4294901760, %v2928_v39  ;;  %v2930_v58 = vpop.f32.mrb[9].mxu0 }
 0x1e4   : > { %v3722_v30 = vpop.f32.mrb[8].mxu1  ;;  %v3769_v57 = vand.u32 4294901760, %v2930_v58 }
 0x1e5   : > { %v11333_v23 = vsub.f32 %v2928_v39, %v3771_v52  ;;  %v4461_v9 = vand.u32 4294901760, %v3722_v30  ;;  %v3724_v45 = vpop.f32.mrb[9].mxu1 }
 0x1e6   : > { %v11335_v42 = vsub.f32 %v2930_v58, %v3769_v57  ;;  %v4459_v14 = vand.u32 4294901760, %v3724_v45  ;;  %v2935_v5 = vpop.f32.mrb[10].mxu0 }
 0x1e7   : > { %v12381_v22 = vand.u32 4294901760, %v11333_v23  ;;  %v11342_v55 = vsub.f32 %v3722_v30, %v4461_v9  ;;  %v3775_v29 = vand.u32 4294901760, %v2935_v5  ;;  %v2937_v20 = vpop.f32.mrb[11].mxu0 }
 0x1e8   : > { %v12382_v39 = vand.u32 4294901760, %v11335_v42  ;;  %v11348_v60 = vsub.f32 %v3724_v45, %v4459_v14  ;;  %v3729_v58 = vpop.f32.mrb[10].mxu1  ;;  %v3773_v36 = vand.u32 4294901760, %v2937_v20 }
 0x1e9   : > { %v11355_v4 = vsub.f32 %v11333_v23, %v12381_v22  ;;  %v12386_v30 = vand.u32 4294901760, %v11342_v55  ;;  %v11358_v48 = vpack.c.bf16 %v3775_v29, %v3771_v52  ;;  %v11360_v11 = vsub.f32 %v2935_v5, %v3775_v29  ;;  %v3731_v33 = vpop.f32.mrb[11].mxu1 }
 0x1ea   : > { %v11365_v45 = vsub.f32 %v11335_v42, %v12382_v39  ;;  %v12389_v12 = vand.u32 4294901760, %v11348_v60  ;;  %v4465_v40 = vand.u32 4294901760, %v3729_v58  ;;  %v11368_v54 = vpack.c.bf16 %v3773_v36, %v3769_v57  ;;  %v2942_v19 = vpop.f32.mrb[12].mxu0 }
 0x1eb   : > { %v11374_v52 = vsub.f32 %v11342_v55, %v12386_v30  ;;  %v12391_v29 = vand.u32 4294901760, %v11360_v11  ;;  %v2944_v39 = vpop.f32.mrb[13].mxu0  ;;  %v11388_v22 = vsub.f32 %v2937_v20, %v3773_v36  ;;  %v4463_v32 = vand.u32 4294901760, %v3731_v33 }
 0x1ec   : > { %v11382_v24 = vsub.f32 %v11348_v60, %v12389_v12  ;;  %v11384_v57 = vpack.c.bf16 %v4465_v40, %v4461_v9  ;;  %v11386_v49 = vsub.f32 %v3729_v58, %v4465_v40  ;;  %v3736_v62 = vpop.f32.mrb[12].mxu1  ;;  %8499 = vmatprep.subr.bf16.mxu0 %v11368_v54  ;;  %v3779_v61 = vand.u32 4294901760, %v2942_v19 }
 0x1ed   : > { %v11395_v5 = vsub.f32 %v11360_v11, %v12391_v29  ;;  %v3738_v12 = vpop.f32.mrb[13].mxu1  ;;  %8501 = vmatpush1.bf16.msra.mxu0 %v11358_v48  ;;  %v12396_v20 = vand.u32 4294901760, %v11388_v22  ;;  %v4469_v58 = vand.u32 4294901760, %v3736_v62  ;;  %v11403_v21 = vpack.c.bf16 %v4463_v32, %v4459_v14 }
 0x1ee   : > { %12807 = vst [vmem:[#allocation51_spill] sm:$0xff] %v11384_v57  ;;  %v12395_v9 = vand.u32 4294901760, %v11386_v49  ;;  %v2949_v40 = vpop.f32.mrb[14].mxu0  ;;  %v11405_v29 = vsub.f32 %v3731_v33, %v4463_v32  ;;  %v11407_v44 = vsub.f32 %v2942_v19, %v3779_v61  ;;  %v3777_v28 = vand.u32 4294901760, %v2944_v39 }
 0x1ef   : > { %v3908_v30 = vand.u32 4294901760, %v11395_v5  ;;  %v2951_v13 = vpop.f32.mrb[15].mxu0  ;;  %v3901_v36 = vsub.f32 %v11388_v22, %v12396_v20  ;;  %v11415_v10 = vsub.f32 %v3736_v62, %v4469_v58  ;;  %v4467_v33 = vand.u32 4294901760, %v3738_v12  ;;  %8547 = vmatprep.subr.bf16.mxu1 %v11403_v21 }
 0x1f0   : > { %v4597_v26 = vsub.f32 %v11386_v49, %v12395_v9  ;;  %v3743_v34 = vpop.f32.mrb[14].mxu1  ;;  %v12400_v14 = vand.u32 4294901760, %v11405_v29  ;;  %v12402_v32 = vand.u32 4294901760, %v11407_v44  ;;  %v3783_v19 = vand.u32 4294901760, %v2949_v40  ;;  %8549 = vmatpush1.bf16.msra.mxu1 %v11384_v57 }
 0x1f1   : > { %v3745_v5 = vpop.f32.mrb[15].mxu1  ;;  %v12404_v9 = vand.u32 4294901760, %v11415_v10  ;;  %v11421_v2 = vsub.f32 %v2944_v39, %v3777_v28  ;;  %v4473_v62 = vand.u32 4294901760, %v3743_v34  ;;  %v11430_v51 = vsub.f32 %v3738_v12, %v4467_v33 }
 0x1f2   : > { %v4598_v53 = vand.u32 4294901760, %v4597_v26  ;;  %v4591_v20 = vsub.f32 %v11405_v29, %v12400_v14  ;;  %v3919_v0 = vsub.f32 %v11407_v44, %v12402_v32  ;;  %v11432_v17 = vpack.c.bf16 %v3783_v19, %v3779_v61 }
 0x1f3   : > { %v4609_v26 = vsub.f32 %v11415_v10, %v12404_v9  ;;  %v12405_v39 = vand.u32 4294901760, %v11421_v2  ;;  %v11438_v1 = vsub.f32 %v2949_v40, %v3783_v19  ;;  %v11440_v18 = vpack.c.bf16 %v4473_v62, %v4469_v58 }
 0x1f4   : > { %v3920_v31 = vand.u32 4294901760, %v3919_v0  ;;  %v4602_v14 = vand.u32 4294901760, %v11430_v51  ;;  %v11443_v35 = vsub.f32 %v3743_v34, %v4473_v62  ;;  %v3781_v32 = vand.u32 4294901760, %v2951_v13 }
 0x1f5   : > { %v4610_v12 = vand.u32 4294901760, %v4609_v26  ;;  %v3913_v61 = vsub.f32 %v11421_v2, %v12405_v39  ;;  %v3930_v56 = vand.u32 4294901760, %v11438_v1  ;;  %v4471_v26 = vand.u32 4294901760, %v3745_v5 }
 0x1f6   : > { %v4603_v40 = vsub.f32 %v11430_v51, %v4602_v14  ;;  %v4620_v58 = vand.u32 4294901760, %v11443_v35  ;;  %v11455_v34 = vpack.c.bf16 %v3781_v32, %v3777_v28  ;;  %v11458_v62 = vsub.f32 %v2951_v13, %v3781_v32 }
 0x1f7   : > { %v3931_v19 = vsub.f32 %v11438_v1, %v3930_v56  ;;  %v3890_v39 = vand.u32 4294901760, %v11365_v45  ;;  %v3902_v9 = vand.u32 4294901760, %v3901_v36  ;;  %v4580_v50 = vand.u32 4294901760, %v11382_v24 }
 0x1f8   : > { %v4621_v25 = vsub.f32 %v11443_v35, %v4620_v58  ;;  %8503 = vmatprep.subr.bf16.mxu0 %v11455_v34  ;;  %v4592_v37 = vand.u32 4294901760, %v4591_v20  ;;  %v3924_v0 = vand.u32 4294901760, %v11458_v62  ;;  %v11465_v28 = vpack.c.bf16 %v4471_v26, %v4467_v33 }
 0x1f9   : > { %v3932_v6 = vand.u32 4294901760, %v3931_v19  ;;  %v11467_v63 = vsub.f32 %v3745_v5, %v4471_v26  ;;  %8505 = vmatpush1.bf16.msra.mxu0 %v11432_v17  ;;  %v8506_v32 = vpack.c.bf16 %v3902_v9, %v3890_v39  ;;  %v12808_v38 = vand.u32 4294901760, %v11355_v4 }
 0x1fa   : > { %v4622_v13 = vand.u32 4294901760, %v4621_v25  ;;  %v8554_v45 = vpack.c.bf16 %v4592_v37, %v4580_v50  ;;  %v3925_v36 = vsub.f32 %v11458_v62, %v3924_v0  ;;  %8551 = vmatprep.subr.bf16.mxu1 %v11465_v28  ;;  %v12809_v20 = vand.u32 4294901760, %v11374_v52 }
 0x1fb   : > { %v8508_v57 = vpack.c.bf16 %v3908_v30, %v12808_v38  ;;  %v4614_v24 = vand.u32 4294901760, %v11467_v63  ;;  %v11478_v5 = vand.u32 4294901760, %v11345_v47  ;;  %8553 = vmatpush1.bf16.msra.mxu1 %v11440_v18  ;;  %8507 = vmatprep.subr.bf16.mxu0 %v8506_v32  ;;  %v3914_v25 = vand.u32 4294901760, %v3913_v61 }
 0x1fc   : > { %v8556_v33 = vpack.c.bf16 %v4598_v53, %v12809_v20  ;;  %v8512_v37 = vpack.c.bf16 %v3932_v6, %v3920_v31  ;;  %v8560_v50 = vpack.c.bf16 %v4622_v13, %v4610_v12  ;;  %v8514_v38 = vpack.c.bf16 %v11388_v22, %v11335_v42  ;;  %8555 = vmatprep.subr.bf16.mxu1 %v8554_v45 }
 0x1fd   : > { %v4615_v4 = vsub.f32 %v11467_v63, %v4614_v24  ;;  %3847 = vmatmul.mubr.f32.vlgmr.msra.gmra.mrb[16].mxu0 %v11337_v46  ;;  %v3926_v30 = vand.u32 4294901760, %v3925_v36  ;;  %v8562_v53 = vpack.c.bf16 %v11405_v29, %v11348_v60  ;;  %v8518_v52 = vpack.c.bf16 %v11458_v62, %v11421_v2 }
 0x1fe   : > { %8509 = vmatpush1.bf16.msra.mxu0 %v8508_v57  ;;  %3852 = vmatprep.mubr.f32.mxu0 %v12491_v7  ;;  %v4604_v31 = vand.u32 4294901760, %v4603_v40  ;;  %v8566_v6 = vpack.c.bf16 %v11467_v63, %v11430_v51  ;;  %v12810_v9 = vand.u32 4294901760, %v11335_v42  ;;  %v12811_v39 = vand.u32 4294901760, %v11388_v22 }
 0x1ff   : > { %v12812_v61 = vand.u32 4294901760, %v11348_v60  ;;  %v12813_v19 = vand.u32 4294901760, %v11405_v29  ;;  %4537 = vmatmul.mubr.f32.vlgmr.msra.gmra.mrb[16].mxu1 %v11337_v46  ;;  %v8510_v57 = vpack.c.bf16 %v3926_v30, %v3914_v25  ;;  %v4616_v62 = vand.u32 4294901760, %v4615_v4  ;;  %v12834_v4 = vld [vmem:[#allocation9_spill] sm:$0xff]  ;;  %v3751_v30 = vld [vmem:[%s12176_s3 + $0x18] sm:$0xff] }
 0x200   : > { %v11496_v12 = vpack.c.bf16 %v12811_v39, %v12810_v9  ;;  %v12814_v40 = vand.u32 4294901760, %v11333_v23  ;;  %v12815_v51 = vand.u32 4294901760, %v11360_v11  ;;  %v12816_v42 = vand.u32 4294901760, %v11342_v55  ;;  %8557 = vmatpush1.bf16.msra.mxu1 %v8556_v33  ;;  %4542 = vmatprep.mubr.f32.mxu1 %v12491_v7  ;;  %v12837_v39 = vld [vmem:[#allocation33_spill] sm:$0xff] }
 0x201   : > { %v11502_v26 = vpack.c.bf16 %v12813_v19, %v12812_v61  ;;  %v12817_v22 = vand.u32 4294901760, %v11386_v49  ;;  %v12818_v60 = vand.u32 4294901760, %v11421_v2  ;;  %v11522_v29 = vpack.c.bf16 %v4614_v24, %v4602_v14  ;;  %3858 = vmatmul.mubr.f32.gmra.mrb[18].mxu0 %v11339_v27  ;;  %8511 = vmatprep.subr.bf16.mxu0 %v8510_v57  ;;  %v12839_v61 = vld [vmem:[#allocation14_spill] sm:$0xff] }
 0x202   : > { %v11509_v63 = vpack.c.bf16 %v12815_v51, %v12814_v40  ;;  %v12819_v32 = vand.u32 4294901760, %v11407_v44  ;;  %v8558_v36 = vpack.c.bf16 %v4616_v62, %v4604_v31  ;;  %v12820_v20 = vand.u32 4294901760, %v11415_v10  ;;  %8513 = vmatpush1.bf16.msra.mxu0 %v8512_v37  ;;  %3863 = vmatprep.mubr.f32.mxu0 %v12491_v7  ;;  %v12832_v37 = vld [vmem:[#allocation38_spill] sm:$0xff] }
 0x203   : > { %v11515_v13 = vpack.c.bf16 %v12817_v22, %v12816_v42  ;;  %v11520_v46 = vpack.c.bf16 %v3924_v0, %v12818_v60  ;;  %v12821_v2 = vsub.f32 %v11321_v59, %v11331_v8  ;;  %v3878_v0 = vsub.f32 %v11345_v47, %v11478_v5  ;;  %4548 = vmatmul.mubr.f32.gmra.mrb[18].mxu1 %v11339_v27  ;;  %v12841_v60 = vld [vmem:[#allocation39_spill] sm:$0xff] }
 0x204   : > { %v11526_v45 = vpack.c.bf16 %v3930_v56, %v12819_v32  ;;  %v11531_v25 = vpack.c.bf16 %v4620_v58, %v12820_v20  ;;  %8559 = vmatprep.subr.bf16.mxu1 %v8558_v36  ;;  %8515 = vmatprep.subr.bf16.mxu0 %v8514_v38  ;;  %v12822_v27 = vpack.c.bf16 %v11360_v11, %v11333_v23  ;;  %v12833_v38 = vld [vmem:[#allocation22_spill] sm:$0xff]  ;;  %v5159_v9 = vsel %vm3756_vm1, %v3751_v30, 0  ;;  %v12845_v36 = vld [vmem:[#allocation16_spill] sm:$0xff] }
 0x205   : > { %v3868_v14 = vand.u32 4294901760, %v12821_v2  ;;  %8561 = vmatpush1.bf16.msra.mxu1 %v8560_v50  ;;  %4553 = vmatprep.mubr.f32.mxu1 %v12491_v7  ;;  %v3879_v56 = vand.u32 4294901760, %v3878_v0  ;;  %v12823_v58 = vpack.c.bf16 %v11386_v49, %v11342_v55  ;;  %v12824_v24 = vpack.c.bf16 %v11438_v1, %v11407_v44  ;;  %v12826_v49 = vld [vmem:[#allocation51_spill] sm:$0xff]  ;;  %v12827_v44 = vld [vmem:[#allocation48_spill] sm:$0xff]  ;;  %v12828_v1 = vld [vmem:[#allocation49_spill] sm:$0xff] }
 0x206   : > { %8563 = vmatprep.subr.bf16.mxu1 %v8562_v53  ;;  %v12825_v23 = vpack.c.bf16 %v11443_v35, %v11415_v10  ;;  %v12829_v35 = vld [vmem:[#allocation50_spill] sm:$0xff]  ;;  %v11715_v57 = vand.u32 4294901760, %v5159_v9  ;;  %v12846_v20 = vld [vmem:[#allocation24_spill] sm:$0xff]  ;;  %v12850_v0 = vld [vmem:[#allocation21_spill] sm:$0xff] }
 0x207   : > { %3869 = vmatmul.mubr.f32.gmra.mrb[20].mxu0 %v3868_v14  ;;  %4559 = vmatmul.mubr.f32.gmra.mrb[20].mxu1 %v3868_v14  ;;  %v6543_v10 = vld [vmem:[%s12178_s5 + $0x10] sm:$0xff]  ;;  %v6542_v55 = vld [vmem:[%s12178_s5 + $0x8] sm:$0xff] }
 0x208   : > { %3874 = vmatprep.mubr.f32.mxu0 %v12491_v7  ;;  %4564 = vmatprep.mubr.f32.mxu1 %v12491_v7  ;;  %v12835_v53 = vld [vmem:[#allocation10_spill] sm:$0xff]  ;;  %v12849_v14 = vld [vmem:[#allocation25_spill] sm:$0xff] }
 0x209   : > { %v12872_v30 = vld [vmem:[#allocation42_spill] sm:$0xff] }
 0x20b   : > { %3880 = vmatmul.mubr.f32.gmra.mrb[22].mxu0 %v3879_v56  ;;  %4570 = vmatmul.mubr.f32.gmra.mrb[22].mxu1 %v3879_v56  ;;  %v12851_v56 = vpack.c.bf16 %v12849_v14, %v12850_v0 }
 0x20c   : > { %3990 = vmatprep.mubr.f32.mxu0 %v12491_v7  ;;  %4680 = vmatprep.mubr.f32.mxu1 %v12491_v7 }
 0x20f   : > { %3992 = vmatmul.mubr.f32.vlgmr.msra.gmra.mrb[16].mxu0 %v11295_v41  ;;  %4682 = vmatmul.mubr.f32.vlgmr.msra.gmra.mrb[16].mxu1 %v11295_v41 }
 0x210   : > { %8517 = vmatpush1.bf16.msra.mxu0 %v12822_v27  ;;  %8565 = vmatpush1.bf16.msra.mxu1 %v12823_v58  ;;  %v12852_v58 = vld [vmem:[#allocation41_spill] sm:$0xff] }
 0x211   : > { %8519 = vmatprep.subr.bf16.mxu0 %v8518_v52  ;;  %8567 = vmatprep.subr.bf16.mxu1 %v8566_v6  ;;  %v12836_v6 = vld [vmem:[#allocation29_spill] sm:$0xff] }
 0x212   : > { %3997 = vmatprep.mubr.f32.mxu0 %v12491_v7  ;;  %4687 = vmatprep.mubr.f32.mxu1 %v12491_v7 }
 0x213   : > { %3999 = vmatmul.mubr.f32.gmra.mrb[18].mxu0 %v11297_v3  ;;  %4689 = vmatmul.mubr.f32.gmra.mrb[18].mxu1 %v11297_v3 }
 0x214   : > { %8521 = vmatpush1.bf16.msra.mxu0 %v12824_v24  ;;  %8569 = vmatpush1.bf16.msra.mxu1 %v12825_v23  ;;  %v12853_v24 = vld [vmem:[#allocation32_spill] sm:$0xff] }
 0x215   : > { %8523 = vmatprep.subr.bf16.mxu0 %v11368_v54  ;;  %8571 = vmatprep.subr.bf16.mxu1 %v11403_v21  ;;  %v12854_v23 = vpack.c.bf16 %v12852_v58, %v12853_v24 }
 0x216   : > { %4004 = vmatprep.mubr.f32.mxu0 %v12491_v7  ;;  %4694 = vmatprep.mubr.f32.mxu1 %v12491_v7 }
 0x217   : > { %4006 = vmatmul.mubr.f32.gmra.mrb[20].mxu0 %v11309_v43  ;;  %4696 = vmatmul.mubr.f32.gmra.mrb[20].mxu1 %v11309_v43 }
 0x218   : > { %4011 = vmatprep.mubr.f32.mxu0 %v12491_v7  ;;  %4701 = vmatprep.mubr.f32.mxu1 %v12491_v7 }
 0x21b   : > { %4013 = vmatmul.mubr.f32.gmra.mrb[22].mxu0 %v11328_v15  ;;  %4703 = vmatmul.mubr.f32.gmra.mrb[22].mxu1 %v11328_v15 }
 0x21c   : > { %4099 = vmatprep.mubr.f32.mxu0 %v12491_v7  ;;  %4789 = vmatprep.mubr.f32.mxu1 %v12491_v7 }
 0x21f   : > { %4102 = vmatmul.mubr.f32.vlgmr.msra.gmra.mrb[16].mxu0 %v11304_v16  ;;  %4792 = vmatmul.mubr.f32.vlgmr.msra.gmra.mrb[16].mxu1 %v11304_v16  ;;  %v3749_v16 = vld [vmem:[%s12176_s3 + $0x8] sm:$0xff] }
 0x220   : > { %8525 = vmatpush1.bf16.msra.mxu0 %v11358_v48  ;;  %8573 = vmatpush1.bf16.msra.mxu1 %v12826_v49 }
 0x221   : > { %8527 = vmatprep.subr.bf16.mxu0 %v11455_v34  ;;  %8575 = vmatprep.subr.bf16.mxu1 %v11465_v28 }
 0x222   : > { %4107 = vmatprep.mubr.f32.mxu0 %v12491_v7  ;;  %4797 = vmatprep.mubr.f32.mxu1 %v12491_v7 }
 0x223   : > { %4110 = vmatmul.mubr.f32.gmra.mrb[18].mxu0 %v12827_v44  ;;  %4800 = vmatmul.mubr.f32.gmra.mrb[18].mxu1 %v12827_v44  ;;  %v12856_v44 = vld [vmem:[#allocation36_spill] sm:$0xff] }
 0x224   : > { %8529 = vmatpush1.bf16.msra.mxu0 %v11432_v17  ;;  %8577 = vmatpush1.bf16.msra.mxu1 %v11440_v18 }
 0x225   : > { %8531 = vmatprep.subr.bf16.mxu0 %v11496_v12  ;;  %8579 = vmatprep.subr.bf16.mxu1 %v11502_v26  ;;  %v12838_v12 = vld [vmem:[#allocation12_spill] sm:$0xff] }
 0x226   : > { %4115 = vmatprep.mubr.f32.mxu0 %v12491_v7  ;;  %4805 = vmatprep.mubr.f32.mxu1 %v12491_v7 }
 0x227   : > { %4118 = vmatmul.mubr.f32.gmra.mrb[20].mxu0 %v11321_v59  ;;  %4808 = vmatmul.mubr.f32.gmra.mrb[20].mxu1 %v11321_v59  ;;  %v6598_v59 = vld [vmem:[#allocation2] sm:$0x1] }
 0x228   : > { %4123 = vmatprep.mubr.f32.mxu0 %v12491_v7  ;;  %4813 = vmatprep.mubr.f32.mxu1 %v12491_v7 }
 0x22b   : > { %4126 = vmatmul.mubr.f32.gmra.mrb[22].mxu0 %v11345_v47  ;;  %4816 = vmatmul.mubr.f32.gmra.mrb[22].mxu1 %v11345_v47  ;;  %v12831_v47 = vld [vmem:[#allocation26_spill] sm:$0xff] }
 0x22c   : > { %4204 = vmatprep.mubr.f32.mxu0 %v12491_v7  ;;  %4894 = vmatprep.mubr.f32.mxu1 %v12491_v7 }
 0x22f   : > { %4208 = vmatmul.mubr.f32.vlgmr.msra.gmra.mrb[16].mxu0 %v12828_v1  ;;  %4898 = vmatmul.mubr.f32.vlgmr.msra.gmra.mrb[16].mxu1 %v12828_v1 }
 0x230   : > { %8533 = vmatpush1.bf16.msra.mxu0 %v11509_v63  ;;  %8581 = vmatpush1.bf16.msra.mxu1 %v11515_v13  ;;  %v11727_v63 = vsub.f32 %v5159_v9, %v11715_v57  ;;  %v12840_v13 = vld [vmem:[#allocation13_spill] sm:$0xff]  ;;  %v12874_v9 = vld [vmem:[#allocation44_spill] sm:$0xff] }
 0x231   : > { %8535 = vmatprep.subr.bf16.mxu0 %v11520_v46  ;;  %8583 = vmatprep.subr.bf16.mxu1 %v11522_v29  ;;  %v12842_v46 = vld [vmem:[#allocation31_spill] sm:$0xff] }
 0x232   : > { %4213 = vmatprep.mubr.f32.mxu0 %v12491_v7  ;;  %4903 = vmatprep.mubr.f32.mxu1 %v12491_v7  ;;  %v11735_v22 = vand.u32 4294901760, %v11727_v63 }
 0x233   : > { %4217 = vmatmul.mubr.f32.gmra.mrb[18].mxu0 %v12829_v35  ;;  %4907 = vmatmul.mubr.f32.gmra.mrb[18].mxu1 %v12829_v35  ;;  %v12858_v35 = vld [vmem:[#allocation18_spill] sm:$0xff] }
 0x234   : > { %8537 = vmatpush1.bf16.msra.mxu0 %v11526_v45  ;;  %8585 = vmatpush1.bf16.msra.mxu1 %v11531_v25  ;;  %v5270_v32 = vsub.f32 %v11727_v63, %v11735_v22  ;;  %v12844_v45 = vld [vmem:[#allocation19_spill] sm:$0xff]  ;;  %v12847_v25 = vld [vmem:[#allocation34_spill] sm:$0xff] }
 0x235   : > { %8539 = vmatprep.subr.bf16.mxu0 %v11368_v54  ;;  %8587 = vmatprep.subr.bf16.mxu1 %v11403_v21  ;;  %v6541_v21 = vld [vmem:[%s12178_s5] sm:$0xff]  ;;  %v9273_v54 = vmov 0   ;;  %v12848_v2 = vpack.c.bf16 %v12846_v20, %v12847_v25 }
 0x236   : > { %4222 = vmatprep.mubr.f32.mxu0 %v12491_v7  ;;  %4912 = vmatprep.mubr.f32.mxu1 %v12491_v7  ;;  %v5271_v27 = vand.u32 4294901760, %v5270_v32 }
 0x237   : > { %4226 = vmatmul.mubr.f32.gmra.mrb[20].mxu0 %v11331_v8  ;;  %4916 = vmatmul.mubr.f32.gmra.mrb[20].mxu1 %v11331_v8  ;;  %v3748_v8 = vld [vmem:[%s12176_s3] sm:$0xff] }
 0x238   : > { %4231 = vmatprep.mubr.f32.mxu0 %v12491_v7  ;;  %4921 = vmatprep.mubr.f32.mxu1 %v12491_v7 }
 0x239   : > { %9189 = vset.pattern.permute.xlu0 %v9273_v54  ;;  %9190 = vset.pattern.permute.xlu1 %v9273_v54 }
 0x23a   : > { %6547 = vperm.xlu0 %9189, %v6541_v21   ;;  %6557 = vperm.xlu1 %9190, %v6543_v10   ;;  %v12859_v21 = vld [vmem:[#allocation28_spill] sm:$0xff]  ;;  %v12861_v10 = vld [vmem:[#allocation11_spill] sm:$0xff] }
 0x23b   : > { %4235 = vmatmul.mubr.f32.gmra.mrb[22].mxu0 %v11478_v5  ;;  %4925 = vmatmul.mubr.f32.gmra.mrb[22].mxu1 %v11478_v5  ;;  %v12860_v54 = vpack.c.bf16 %v12858_v35, %v12859_v21 }
 0x23c   : > { %4329 = vmatprep.mubr.f32.mxu0 %v12491_v7  ;;  %5019 = vmatprep.mubr.f32.mxu1 %v12491_v7 }
 0x23e   : > { %6552 = vperm.xlu0 %9189, %v6542_v55  }
 0x23f   : > { %4331 = vmatmul.mubr.f32.vlgmr.msra.gmra.mrb[16].mxu0 %v11295_v41  ;;  %5021 = vmatmul.mubr.f32.vlgmr.msra.gmra.mrb[16].mxu1 %v11295_v41 }
 0x240   : > { %8541 = vmatpush1.bf16.msra.mxu0 %v11358_v48  ;;  %8589 = vmatpush1.bf16.msra.mxu1 %v12826_v49  ;;  %v12830_v48 = vld [vmem:[#allocation20_spill] sm:$0xff]  ;;  %v12855_v49 = vld [vmem:[#allocation23_spill] sm:$0xff] }
 0x241   : > { %8543 = vmatprep.subr.bf16.mxu0 %v11455_v34  ;;  %8591 = vmatprep.subr.bf16.mxu1 %v11465_v28  ;;  %v5153_v34 = vsel %vm3756_vm1, %v3749_v16, 0  ;;  %v3750_v28 = vld [vmem:[%s12176_s3 + $0x10] sm:$0xff]  ;;  %v12857_v1 = vpack.c.bf16 %v12855_v49, %v12856_v44 }
 0x242   : > { %4336 = vmatprep.mubr.f32.mxu0 %v12491_v7  ;;  %5026 = vmatprep.mubr.f32.mxu1 %v12491_v7  ;;  %v11676_v5 = vand.u32 4294901760, %v5153_v34  ;;  %v5156_v50 = vsel %vm3756_vm1, %v3750_v28, 0 }
 0x243   : > { %4338 = vmatmul.mubr.f32.gmra.mrb[18].mxu0 %v11297_v3  ;;  %5028 = vmatmul.mubr.f32.gmra.mrb[18].mxu1 %v11297_v3  ;;  %v11696_v31 = vand.u32 4294901760, %v5156_v50 }
 0x244   : > { %8545 = vmatpush1.bf16.msra.mxu0 %v11432_v17  ;;  %8593 = vmatpush1.bf16.msra.mxu1 %v11440_v18  ;;  %v6544_v18 = vld [vmem:[%s12178_s5 + $0x18] sm:$0xff]  ;;  %v5150_v17 = vsel %vm3756_vm1, %v3748_v8, 0  ;;  %v11694_v52 = vsub.f32 %v5153_v34, %v11676_v5  ;;  %v12862_v8 = vld [vmem:[#allocation30_spill] sm:$0xff] }
 0x245   : > { %8595 = vmatprep.subr.bf16.mxu0 %v12830_v48  ;;  %8643 = vmatprep.subr.bf16.mxu1 %v12831_v47  ;;  %v11663_v11 = vand.u32 4294901760, %v5150_v17  ;;  %v11713_v26 = vsub.f32 %v5156_v50, %v11696_v31  ;;  %v12863_v55 = vpack.c.bf16 %v12861_v10, %v12862_v8  ;;  %v12868_v34 = vld [vmem:[#allocation27_spill] sm:$0xff]  ;;  %v12870_v50 = vld [vmem:[#allocation37_spill] sm:$0xff] }
 0x246   : > { %4343 = vmatprep.mubr.f32.mxu0 %v12491_v7  ;;  %5033 = vmatprep.mubr.f32.mxu1 %v12491_v7 }
 0x247   : > { %4345 = vmatmul.mubr.f32.gmra.mrb[20].mxu0 %v11309_v43  ;;  %5035 = vmatmul.mubr.f32.gmra.mrb[20].mxu1 %v11309_v43  ;;  %v11674_v33 = vsub.f32 %v5150_v17, %v11663_v11  ;;  %v11724_v51 = vand.u32 4294901760, %v11713_v26  ;;  %v12865_v17 = vld [vmem:[#allocation15_spill] sm:$0xff] }
 0x248   : > { %4350 = vmatprep.mubr.f32.mxu0 %v12491_v7  ;;  %5040 = vmatprep.mubr.f32.mxu1 %v12491_v7 }
 0x249   : > { %6562 = vperm.xlu1 %9190, %v6544_v18   ;;  %6601 = vperm.xlu0 %9189, %v6598_v59   ;;  %v5259_v42 = vsub.f32 %v11713_v26, %v11724_v51  ;;  %v12864_v18 = vld [vmem:[#allocation17_spill] sm:$0xff]  ;;  %v12867_v59 = vld [vmem:[#allocation7_spill] sm:$0xff] }
 0x24a   : > { %v12866_v16 = vpack.c.bf16 %v12864_v18, %v12865_v17  ;;  %v12869_v28 = vpack.c.bf16 %v12867_v59, %v12868_v34 }
 0x24b   : > { %4352 = vmatmul.mubr.f32.gmra.mrb[22].mxu0 %v11328_v15  ;;  %5042 = vmatmul.mubr.f32.gmra.mrb[22].mxu1 %v11328_v15  ;;  %v5260_v29 = vand.u32 4294901760, %v5259_v42 }
 0x24c   : > { %4430 = vmatprep.mubr.f32.mxu0 %v12491_v7  ;;  %5120 = vmatprep.mubr.f32.mxu1 %v12491_v7 }
 0x24f   : > { %4432 = vmatmul.mubr.f32.vlgmr.msra.gmra.mrb[16].mxu0 %v11295_v41  ;;  %5122 = vmatmul.mubr.f32.vlgmr.msra.gmra.mrb[16].mxu1 %v11295_v41  ;;  %v11691_v41 = vand.u32 4294901760, %v11674_v33 }
 0x250   : > { %8597 = vmatpush1.bf16.msra.mxu0 %v12832_v37  ;;  %8645 = vmatpush1.bf16.msra.mxu1 %v12833_v38 }
 0x251   : > { %8599 = vmatprep.subr.bf16.mxu0 %v12834_v4  ;;  %8647 = vmatprep.subr.bf16.mxu1 %v12835_v53  ;;  %v5237_v19 = vsub.f32 %v11674_v33, %v11691_v41 }
 0x252   : > { %4437 = vmatprep.mubr.f32.mxu0 %v12491_v7  ;;  %5127 = vmatprep.mubr.f32.mxu1 %v12491_v7 }
 0x253   : > { %4439 = vmatmul.mubr.f32.gmra.mrb[18].mxu0 %v11297_v3  ;;  %5129 = vmatmul.mubr.f32.gmra.mrb[18].mxu1 %v11297_v3  ;;  %v11710_v3 = vand.u32 4294901760, %v11694_v52  ;;  %v5238_v62 = vand.u32 4294901760, %v5237_v19  ;;  %v12877_v19 = vld [vmem:[#allocation47_spill] sm:$0xff] }
 0x254   : > { %8601 = vmatpush1.bf16.msra.mxu0 %v12836_v6  ;;  %8649 = vmatpush1.bf16.msra.mxu1 %v12837_v39 }
 0x255   : > { %8603 = vmatprep.subr.bf16.mxu0 %v12838_v12  ;;  %8651 = vmatprep.subr.bf16.mxu1 %v12839_v61  ;;  %v5248_v40 = vsub.f32 %v11694_v52, %v11710_v3  ;;  %v12875_v12 = vld [vmem:[#allocation45_spill] sm:$0xff]  ;;  %v12876_v61 = vld [vmem:[#allocation46_spill] sm:$0xff] }
 0x256   : > { %4444 = vmatprep.mubr.f32.mxu0 %v12491_v7  ;;  %5134 = vmatprep.mubr.f32.mxu1 %v12491_v7 }
 0x257   : > { %4446 = vmatmul.mubr.f32.gmra.mrb[20].mxu0 %v11309_v43  ;;  %5136 = vmatmul.mubr.f32.gmra.mrb[20].mxu1 %v11309_v43  ;;  %v5249_v43 = vand.u32 4294901760, %v5248_v40 }
 0x258   : > { %4451 = vmatprep.mubr.f32.mxu0 %v12491_v7  ;;  %5141 = vmatprep.mubr.f32.mxu1 %v12491_v7 }
 0x25b   : > { %4453 = vmatmul.mubr.f32.gmra.mrb[22].mxu0 %v11328_v15  ;;  %5143 = vmatmul.mubr.f32.gmra.mrb[22].mxu1 %v11328_v15  ;;  %v12843_v15 = vld [vmem:[#allocation35_spill] sm:$0xff] }
 0x25c   : > { %5233 = vmatprep.mubr.f32.mxu0 %v12491_v7  ;;  %5923 = vmatprep.mubr.f32.mxu1 %v12491_v7 }
 0x25f   : > { %5239 = vmatmul.mubr.f32.vlgmr.msra.gmra.mrb[16].mxu0 %v5238_v62  ;;  %5929 = vmatmul.mubr.f32.vlgmr.msra.gmra.mrb[16].mxu1 %v5238_v62 }
 0x260   : > { %8605 = vmatpush1.bf16.msra.mxu0 %v12840_v13  ;;  %8653 = vmatpush1.bf16.msra.mxu1 %v12841_v60 }
 0x261   : > { %8607 = vmatprep.subr.bf16.mxu0 %v12842_v46  ;;  %8655 = vmatprep.subr.bf16.mxu1 %v12843_v15 }
 0x262   : > { %5244 = vmatprep.mubr.f32.mxu0 %v12491_v7  ;;  %5934 = vmatprep.mubr.f32.mxu1 %v12491_v7 }
 0x263   : > { %5250 = vmatmul.mubr.f32.gmra.mrb[18].mxu0 %v5249_v43  ;;  %5940 = vmatmul.mubr.f32.gmra.mrb[18].mxu1 %v5249_v43 }
 0x264   : > { %8609 = vmatpush1.bf16.msra.mxu0 %v12844_v45  ;;  %8657 = vmatpush1.bf16.msra.mxu1 %v12845_v36 }
 0x265   : > { %8611 = vmatprep.subr.bf16.mxu0 %v12848_v2  ;;  %8659 = vmatprep.subr.bf16.mxu1 %v12851_v56 }
 0x266   : > { %5255 = vmatprep.mubr.f32.mxu0 %v12491_v7  ;;  %5945 = vmatprep.mubr.f32.mxu1 %v12491_v7 }
 0x267   : > { %5261 = vmatmul.mubr.f32.gmra.mrb[20].mxu0 %v5260_v29  ;;  %5951 = vmatmul.mubr.f32.gmra.mrb[20].mxu1 %v5260_v29 }
 0x268   : > { %5266 = vmatprep.mubr.f32.mxu0 %v12491_v7  ;;  %5956 = vmatprep.mubr.f32.mxu1 %v12491_v7 }
 0x26b   : > { %5272 = vmatmul.mubr.f32.gmra.mrb[22].mxu0 %v5271_v27  ;;  %5962 = vmatmul.mubr.f32.gmra.mrb[22].mxu1 %v5271_v27 }
 0x26c   : > { %5382 = vmatprep.mubr.f32.mxu0 %v12491_v7  ;;  %6072 = vmatprep.mubr.f32.mxu1 %v12491_v7 }
 0x26f   : > { %5384 = vmatmul.mubr.f32.vlgmr.msra.gmra.mrb[16].mxu0 %v11663_v11  ;;  %6074 = vmatmul.mubr.f32.vlgmr.msra.gmra.mrb[16].mxu1 %v11663_v11 }
 0x270   : > { %8613 = vmatpush1.bf16.msra.mxu0 %v12854_v23  ;;  %8661 = vmatpush1.bf16.msra.mxu1 %v12857_v1 }
 0x271   : > { %8615 = vmatprep.subr.bf16.mxu0 %v12860_v54  ;;  %8663 = vmatprep.subr.bf16.mxu1 %v12863_v55 }
 0x272   : > { %5389 = vmatprep.mubr.f32.mxu0 %v12491_v7  ;;  %6079 = vmatprep.mubr.f32.mxu1 %v12491_v7 }
 0x273   : > { %5391 = vmatmul.mubr.f32.gmra.mrb[18].mxu0 %v11676_v5  ;;  %6081 = vmatmul.mubr.f32.gmra.mrb[18].mxu1 %v11676_v5 }
 0x274   : > { %8617 = vmatpush1.bf16.msra.mxu0 %v12866_v16  ;;  %8665 = vmatpush1.bf16.msra.mxu1 %v12869_v28 }
 0x275   : > { %8619 = vmatprep.subr.bf16.mxu0 %v12830_v48  ;;  %8667 = vmatprep.subr.bf16.mxu1 %v12831_v47 }
 0x276   : > { %5396 = vmatprep.mubr.f32.mxu0 %v12491_v7  ;;  %6086 = vmatprep.mubr.f32.mxu1 %v12491_v7 }
 0x277   : > { %5398 = vmatmul.mubr.f32.gmra.mrb[20].mxu0 %v11696_v31  ;;  %6088 = vmatmul.mubr.f32.gmra.mrb[20].mxu1 %v11696_v31 }
 0x278   : > { %5403 = vmatprep.mubr.f32.mxu0 %v12491_v7  ;;  %6093 = vmatprep.mubr.f32.mxu1 %v12491_v7 }
 0x27b   : > { %5405 = vmatmul.mubr.f32.gmra.mrb[22].mxu0 %v11715_v57  ;;  %6095 = vmatmul.mubr.f32.gmra.mrb[22].mxu1 %v11715_v57 }
 0x27c   : > { %5491 = vmatprep.mubr.f32.mxu0 %v12491_v7  ;;  %6181 = vmatprep.mubr.f32.mxu1 %v12491_v7 }
 0x27f   : > { %5494 = vmatmul.mubr.f32.vlgmr.msra.gmra.mrb[16].mxu0 %v11674_v33  ;;  %6184 = vmatmul.mubr.f32.vlgmr.msra.gmra.mrb[16].mxu1 %v11674_v33  ;;  %v12871_v33 = vld [vmem:[#allocation40_spill] sm:$0xff] }
 0x280   : > { %8621 = vmatpush1.bf16.msra.mxu0 %v12832_v37  ;;  %8669 = vmatpush1.bf16.msra.mxu1 %v12833_v38 }
 0x281   : > { %8623 = vmatprep.subr.bf16.mxu0 %v12834_v4  ;;  %8671 = vmatprep.subr.bf16.mxu1 %v12835_v53 }
 0x282   : > { %5499 = vmatprep.mubr.f32.mxu0 %v12491_v7  ;;  %6189 = vmatprep.mubr.f32.mxu1 %v12491_v7 }
 0x283   : > { %5502 = vmatmul.mubr.f32.gmra.mrb[18].mxu0 %v11694_v52  ;;  %6192 = vmatmul.mubr.f32.gmra.mrb[18].mxu1 %v11694_v52  ;;  %v12873_v52 = vld [vmem:[#allocation43_spill] sm:$0xff] }
 0x284   : > { %8625 = vmatpush1.bf16.msra.mxu0 %v12836_v6  ;;  %8673 = vmatpush1.bf16.msra.mxu1 %v12837_v39 }
 0x285   : > { %8627 = vmatprep.subr.bf16.mxu0 %v12870_v50  ;;  %8675 = vmatprep.subr.bf16.mxu1 %v12871_v33 }
 0x286   : > { %5507 = vmatprep.mubr.f32.mxu0 %v12491_v7  ;;  %6197 = vmatprep.mubr.f32.mxu1 %v12491_v7 }
 0x287   : > { %5510 = vmatmul.mubr.f32.gmra.mrb[20].mxu0 %v11713_v26  ;;  %6200 = vmatmul.mubr.f32.gmra.mrb[20].mxu1 %v11713_v26 }
 0x288   : > { %5515 = vmatprep.mubr.f32.mxu0 %v12491_v7  ;;  %6205 = vmatprep.mubr.f32.mxu1 %v12491_v7 }
 0x28b   : > { %5518 = vmatmul.mubr.f32.gmra.mrb[22].mxu0 %v11727_v63  ;;  %6208 = vmatmul.mubr.f32.gmra.mrb[22].mxu1 %v11727_v63 }
 0x28c   : > { %5596 = vmatprep.mubr.f32.mxu0 %v12491_v7  ;;  %6286 = vmatprep.mubr.f32.mxu1 %v12491_v7 }
 0x28f   : > { %5600 = vmatmul.mubr.f32.vlgmr.msra.gmra.mrb[16].mxu0 %v11691_v41  ;;  %6290 = vmatmul.mubr.f32.vlgmr.msra.gmra.mrb[16].mxu1 %v11691_v41 }
 0x290   : > { %8629 = vmatpush1.bf16.msra.mxu0 %v12872_v30  ;;  %8677 = vmatpush1.bf16.msra.mxu1 %v12873_v52 }
 0x291   : > { %8631 = vmatprep.subr.bf16.mxu0 %v12874_v9  ;;  %8679 = vmatprep.subr.bf16.mxu1 %v12875_v12 }
 0x292   : > { %5605 = vmatprep.mubr.f32.mxu0 %v12491_v7  ;;  %6295 = vmatprep.mubr.f32.mxu1 %v12491_v7 }
 0x293   : > { %5609 = vmatmul.mubr.f32.gmra.mrb[18].mxu0 %v11710_v3  ;;  %6299 = vmatmul.mubr.f32.gmra.mrb[18].mxu1 %v11710_v3 }
 0x294   : > { %8633 = vmatpush1.bf16.msra.mxu0 %v12876_v61  ;;  %8681 = vmatpush1.bf16.msra.mxu1 %v12877_v19 }
 0x295   : > { %8635 = vmatprep.subr.bf16.mxu0 %v12830_v48  ;;  %8683 = vmatprep.subr.bf16.mxu1 %v12831_v47  ;;  %v6597_v48 = vld [vmem:[%s12179_s6] sm:$0x1] }
 0x296   : > { %5614 = vmatprep.mubr.f32.mxu0 %v12491_v7  ;;  %6304 = vmatprep.mubr.f32.mxu1 %v12491_v7  ;;  %v6609_v47 = vsel %vm3756_vm1, %v6597_v48, 0 }
 0x297   : > { %5618 = vmatmul.mubr.f32.gmra.mrb[20].mxu0 %v11724_v51  ;;  %6308 = vmatmul.mubr.f32.gmra.mrb[20].mxu1 %v11724_v51 }
 0x298   : > { %5623 = vmatprep.mubr.f32.mxu0 %v12491_v7  ;;  %6313 = vmatprep.mubr.f32.mxu1 %v12491_v7 }
 0x29b   : > { %5627 = vmatmul.mubr.f32.gmra.mrb[22].mxu0 %v11735_v22  ;;  %6317 = vmatmul.mubr.f32.gmra.mrb[22].mxu1 %v11735_v22 }
 0x29c   : > { %5721 = vmatprep.mubr.f32.mxu0 %v12491_v7  ;;  %6411 = vmatprep.mubr.f32.mxu1 %v12491_v7 }
 0x29f   : > { %5723 = vmatmul.mubr.f32.vlgmr.msra.gmra.mrb[16].mxu0 %v11663_v11  ;;  %6413 = vmatmul.mubr.f32.vlgmr.msra.gmra.mrb[16].mxu1 %v11663_v11 }
 0x2a0   : > { %8637 = vmatpush1.bf16.msra.mxu0 %v12832_v37  ;;  %8685 = vmatpush1.bf16.msra.mxu1 %v12833_v38 }
 0x2a1   : > { %8639 = vmatprep.subr.bf16.mxu0 %v12834_v4  ;;  %8687 = vmatprep.subr.bf16.mxu1 %v12835_v53 }
 0x2a2   : > { %5728 = vmatprep.mubr.f32.mxu0 %v12491_v7  ;;  %6418 = vmatprep.mubr.f32.mxu1 %v12491_v7 }
 0x2a3   : > { %5730 = vmatmul.mubr.f32.gmra.mrb[18].mxu0 %v11676_v5  ;;  %6420 = vmatmul.mubr.f32.gmra.mrb[18].mxu1 %v11676_v5 }
 0x2a4   : > { %8641 = vmatpush1.bf16.msra.mxu0 %v12836_v6  ;;  %8689 = vmatpush1.bf16.msra.mxu1 %v12837_v39 }
 0x2a5   : > { %5735 = vmatprep.mubr.f32.mxu0 %v12491_v7  ;;  %6425 = vmatprep.mubr.f32.mxu1 %v12491_v7 }
 0x2a7   : > { %5737 = vmatmul.mubr.f32.gmra.mrb[20].mxu0 %v11696_v31  ;;  %6427 = vmatmul.mubr.f32.gmra.mrb[20].mxu1 %v11696_v31 }
 0x2a8   : > { %5742 = vmatprep.mubr.f32.mxu0 %v12491_v7  ;;  %6432 = vmatprep.mubr.f32.mxu1 %v12491_v7 }
 0x2ab   : > { %5744 = vmatmul.mubr.f32.gmra.mrb[22].mxu0 %v11715_v57  ;;  %6434 = vmatmul.mubr.f32.gmra.mrb[22].mxu1 %v11715_v57 }
 0x2ac   : > { %5822 = vmatprep.mubr.f32.mxu0 %v12491_v7  ;;  %6512 = vmatprep.mubr.f32.mxu1 %v12491_v7 }
 0x2af   : > { %5824 = vmatmul.mubr.f32.vlgmr.msra.gmra.mrb[16].mxu0 %v11663_v11  ;;  %6514 = vmatmul.mubr.f32.vlgmr.msra.gmra.mrb[16].mxu1 %v11663_v11  ;;  %v11885_v11 = vand.u32 4294901760, %v6609_v47 }
 0x2b0   : > { %5829 = vmatprep.mubr.f32.mxu0 %v12491_v7  ;;  %6519 = vmatprep.mubr.f32.mxu1 %v12491_v7 }
 0x2b3   : > { %5831 = vmatmul.mubr.f32.gmra.mrb[18].mxu0 %v11676_v5  ;;  %6521 = vmatmul.mubr.f32.gmra.mrb[18].mxu1 %v11676_v5  ;;  %v11888_v5 = vsub.f32 %v6609_v47, %v11885_v11 }
 0x2b4   : > { %5836 = vmatprep.mubr.f32.mxu0 %v12491_v7  ;;  %6526 = vmatprep.mubr.f32.mxu1 %v12491_v7 }
 0x2b7   : > { %5838 = vmatmul.mubr.f32.gmra.mrb[20].mxu0 %v11696_v31  ;;  %6528 = vmatmul.mubr.f32.gmra.mrb[20].mxu1 %v11696_v31  ;;  %v11891_v31 = vand.u32 4294901760, %v11888_v5 }
 0x2b8   : > { %5843 = vmatprep.mubr.f32.mxu0 %v12491_v7  ;;  %6533 = vmatprep.mubr.f32.mxu1 %v12491_v7 }
 0x2b9   : > { %v6548_v37 = vpop.permute.xlu0 %6547  ;;  %v6687_v46 = vsub.f32 %v11888_v5, %v11891_v31  ;;  %v6558_v58 = vpop.permute.xlu1 %6557 }
 0x2bb   : > { %5845 = vmatmul.mubr.f32.gmra.mrb[22].mxu0 %v11715_v57  ;;  %6535 = vmatmul.mubr.f32.gmra.mrb[22].mxu1 %v11715_v57  ;;  %v11913_v17 = vand.u32 4294901760, %v6687_v46 }
 0x2bc   : > { %6683 = vmatprep.mubr.f32.mxu0 %v12491_v7  ;;  %7226 = vmatprep.mubr.f32.mxu1 %v12491_v7 }
 0x2bd   : > { %v6553_v62 = vpop.permute.xlu0 %6552 }
 0x382   : > { %v5825_v38 = vpop.f32.mrb[16].mxu0  ;;  %v6515_v53 = vpop.f32.mrb[16].mxu1 }
 0x383   : > { %v6565_v4 = vadd.f32 %v6548_v37, %v5825_v38  ;;  %v5827_v41 = vpop.f32.mrb[17].mxu0  ;;  %v6567_v6 = vadd.f32 %v6548_v37, %v6515_v53  ;;  %v6517_v3 = vpop.f32.mrb[17].mxu1 }
 0x384   : > { %v6566_v39 = vadd.f32 %v6548_v37, %v5827_v41  ;;  %v6568_v57 = vadd.f32 %v6548_v37, %v6517_v3 }
 0x385   : > { %v6581_v26 = vmax.f32 %v6565_v4, 0.0  ;;  %v6583_v40 = vmax.f32 %v6567_v6, 0.0 }
 0x386   : > { %v6582_v51 = vmax.f32 %v6566_v39, 0.0  ;;  %v5832_v63 = vpop.f32.mrb[18].mxu0  ;;  %v6584_v42 = vmax.f32 %v6568_v57, 0.0  ;;  %v6522_v13 = vpop.f32.mrb[18].mxu1 }
 0x387   : > { %v6613_v43 = vand.u32 4294901760, %v6581_v26  ;;  %v6569_v22 = vadd.f32 %v6553_v62, %v5832_v63  ;;  %v5834_v60 = vpop.f32.mrb[19].mxu0  ;;  %v7156_v15 = vand.u32 4294901760, %v6583_v40  ;;  %v6571_v32 = vadd.f32 %v6553_v62, %v6522_v13  ;;  %v6524_v36 = vpop.f32.mrb[19].mxu1 }
 0x388   : > { %v11895_v29 = vand.u32 4294901760, %v6582_v51  ;;  %v6570_v45 = vadd.f32 %v6553_v62, %v5834_v60  ;;  %v11899_v25 = vand.u32 4294901760, %v6584_v42  ;;  %v6572_v14 = vadd.f32 %v6553_v62, %v6524_v36  ;;  %v6563_v57 = vpop.permute.xlu1 %6562 }
 0x389   : > { %v11897_v20 = vsub.f32 %v6581_v26, %v6613_v43  ;;  %v6585_v2 = vmax.f32 %v6569_v22, 0.0  ;;  %v11901_v0 = vsub.f32 %v6583_v40, %v7156_v15  ;;  %v6587_v27 = vmax.f32 %v6571_v32, 0.0 }
 0x38a   : > { %v11904_v56 = vsub.f32 %v6582_v51, %v11895_v29  ;;  %v6586_v24 = vmax.f32 %v6570_v45, 0.0  ;;  %v5839_v23 = vpop.f32.mrb[20].mxu0  ;;  %v11908_v44 = vsub.f32 %v6584_v42, %v11899_v25  ;;  %v6588_v35 = vmax.f32 %v6572_v14, 0.0  ;;  %v6529_v21 = vpop.f32.mrb[20].mxu1 }
 0x38b   : > { %v6703_v49 = vand.u32 4294901760, %v11897_v20  ;;  %v6617_v1 = vand.u32 4294901760, %v6585_v2  ;;  %v5841_v54 = vpop.f32.mrb[21].mxu0  ;;  %v7246_v10 = vand.u32 4294901760, %v11901_v0  ;;  %v7160_v8 = vand.u32 4294901760, %v6587_v27  ;;  %v6531_v18 = vpop.f32.mrb[21].mxu1 }
 0x38c   : > { %v11911_v55 = vand.u32 4294901760, %v6586_v24  ;;  %v6697_v59 = vand.u32 4294901760, %v11904_v56  ;;  %v7240_v12 = vand.u32 4294901760, %v11908_v44  ;;  %v7158_v19 = vand.u32 4294901760, %v6588_v35 }
 0x38d   : > { %v11918_v16 = vsub.f32 %v11897_v20, %v6703_v49  ;;  %v11921_v34 = vpack.c.bf16 %v6617_v1, %v6613_v43  ;;  %v11923_v28 = vsub.f32 %v6585_v2, %v6617_v1  ;;  %v11928_v50 = vsub.f32 %v11901_v0, %v7246_v10 }
 0x38e   : > { %v11930_v33 = vpack.c.bf16 %v7160_v8, %v7156_v15  ;;  %v11932_v30 = vsub.f32 %v6587_v27, %v7160_v8  ;;  %v11935_v52 = vsub.f32 %v6586_v24, %v11911_v55  ;;  %v5846_v9 = vpop.f32.mrb[22].mxu0  ;;  %v6573_v48 = vadd.f32 %v6558_v58, %v5839_v23  ;;  %v6536_v47 = vpop.f32.mrb[22].mxu1 }
 0x38f   : > { %v6715_v61 = vand.u32 4294901760, %v11923_v28  ;;  %v5848_v37 = vpop.f32.mrb[23].mxu0  ;;  %v6705_v38 = vand.u32 4294901760, %v11918_v16  ;;  %v7248_v4 = vand.u32 4294901760, %v11928_v50  ;;  %v6575_v41 = vadd.f32 %v6558_v58, %v6529_v21  ;;  %v6538_v6 = vpop.f32.mrb[23].mxu1 }
 0x390   : > { %v7258_v53 = vand.u32 4294901760, %v11932_v30  ;;  %v11947_v3 = vsub.f32 %v6588_v35, %v7158_v19  ;;  %v6589_v26 = vmax.f32 %v6573_v48, 0.0  ;;  %v6574_v62 = vadd.f32 %v6558_v58, %v5841_v54 }
 0x391   : > { %v11945_v39 = vsub.f32 %v11923_v28, %v6715_v61  ;;  %v6709_v40 = vand.u32 4294901760, %v11935_v52  ;;  %v6591_v51 = vmax.f32 %v6575_v41, 0.0  ;;  %v6576_v63 = vadd.f32 %v6558_v58, %v6531_v18 }
 0x392   : > { %v6577_v43 = vadd.f32 %v6563_v57, %v5846_v9  ;;  %v11954_v22 = vsub.f32 %v11932_v30, %v7258_v53  ;;  %v6621_v13 = vand.u32 4294901760, %v6589_v26  ;;  %v6590_v60 = vmax.f32 %v6574_v62, 0.0 }
 0x393   : > { %v6717_v42 = vand.u32 4294901760, %v11945_v39  ;;  %v7252_v46 = vand.u32 4294901760, %v11947_v3  ;;  %v7164_v15 = vand.u32 4294901760, %v6591_v51  ;;  %v6592_v32 = vmax.f32 %v6576_v63, 0.0 }
 0x394   : > { %v6593_v45 = vmax.f32 %v6577_v43, 0.0  ;;  %v11957_v36 = vsub.f32 %v6589_v26, %v6621_v13  ;;  %v6619_v2 = vand.u32 4294901760, %v6590_v60  ;;  %v6579_v14 = vadd.f32 %v6563_v57, %v6536_v47 }
 0x395   : > { %v6578_v27 = vadd.f32 %v6563_v57, %v5848_v37  ;;  %v11959_v58 = vsub.f32 %v6591_v51, %v7164_v15  ;;  %v7162_v24 = vand.u32 4294901760, %v6592_v32  ;;  %v6580_v1 = vadd.f32 %v6563_v57, %v6538_v6 }
 0x396   : > { %v6625_v23 = vand.u32 4294901760, %v6593_v45  ;;  %v12420_v35 = vand.u32 4294901760, %v11957_v36  ;;  %v11962_v21 = vsub.f32 %v6590_v60, %v6619_v2  ;;  %v6595_v54 = vmax.f32 %v6579_v14, 0.0 }
 0x397   : > { %v6594_v8 = vmax.f32 %v6578_v27, 0.0  ;;  %v12418_v18 = vand.u32 4294901760, %v11959_v58  ;;  %v11965_v9 = vsub.f32 %v6592_v32, %v7162_v24  ;;  %v7260_v47 = vand.u32 4294901760, %v11954_v22 }
 0x398   : > { %v11967_v48 = vpack.c.bf16 %v6625_v23, %v6621_v13  ;;  %v11969_v41 = vsub.f32 %v6593_v45, %v6625_v23  ;;  %v6728_v37 = vsub.f32 %v11957_v36, %v12420_v35  ;;  %v7168_v6 = vand.u32 4294901760, %v6595_v54 }
 0x399   : > { %v6623_v39 = vand.u32 4294901760, %v6594_v8  ;;  %v7271_v26 = vsub.f32 %v11959_v58, %v12418_v18  ;;  %v6721_v57 = vand.u32 4294901760, %v11962_v21  ;;  %v6596_v51 = vmax.f32 %v6580_v1, 0.0 }
 0x39a   : > { %v12419_v62 = vand.u32 4294901760, %v11969_v41  ;;  %v12421_v63 = vand.u32 4294901760, %v11965_v9  ;;  %v11981_v43 = vpack.c.bf16 %v7168_v6, %v7164_v15  ;;  %v11983_v22 = vsub.f32 %v6595_v54, %v7168_v6 }
 0x39b   : > { %v11985_v13 = vsub.f32 %v6594_v8, %v6623_v39  ;;  %v6729_v60 = vand.u32 4294901760, %v6728_v37  ;;  %v7166_v45 = vand.u32 4294901760, %v6596_v51  ;;  %v11992_v14 = vpack.c.bf16 %v11911_v55, %v11895_v29 }
 0x39c   : > { %v6740_v32 = vsub.f32 %v11969_v41, %v12419_v62  ;;  %v7272_v27 = vand.u32 4294901760, %v7271_v26  ;;  %v12417_v23 = vand.u32 4294901760, %v11983_v22  ;;  %v11996_v15 = vpack.c.bf16 %v7158_v19, %v11899_v25 }
 0x39d   : > { %v11998_v1 = vpack.c.bf16 %v6623_v39, %v6619_v2  ;;  %v6733_v54 = vand.u32 4294901760, %v11985_v13  ;;  %v12001_v8 = vsub.f32 %v6596_v51, %v7166_v45  ;;  %8691 = vmatprep.subr.bf16.mxu0 %v11992_v14  ;;  %v12004_v37 = vpack.c.bf16 %v7166_v45, %v7162_v24 }
 0x39e   : > { %v6698_v29 = vsub.f32 %v11904_v56, %v6697_v59  ;;  %v6741_v55 = vand.u32 4294901760, %v6740_v32  ;;  %v7283_v25 = vsub.f32 %v11983_v22, %v12417_v23  ;;  %8739 = vmatprep.subr.bf16.mxu1 %v11996_v15  ;;  %8693 = vmatpush1.bf16.msra.mxu0 %v11921_v34  ;;  %v6710_v19 = vsub.f32 %v11935_v52, %v6709_v40 }
 0x39f   : > { %v7241_v2 = vsub.f32 %v11908_v44, %v7240_v12  ;;  %v7276_v24 = vand.u32 4294901760, %v12001_v8  ;;  %8741 = vmatpush1.bf16.msra.mxu1 %v11930_v33  ;;  %8695 = vmatprep.subr.bf16.mxu0 %v11998_v1  ;;  %v7253_v39 = vsub.f32 %v11947_v3, %v7252_v46  ;;  %v8700_v26 = vpack.c.bf16 %v6717_v42, %v6705_v38 }
 0x3a0   : > { %v6699_v6 = vand.u32 4294901760, %v6698_v29  ;;  %v7284_v51 = vand.u32 4294901760, %v7283_v25  ;;  %8743 = vmatprep.subr.bf16.mxu1 %v12004_v37  ;;  %v6711_v32 = vand.u32 4294901760, %v6710_v19  ;;  %v8748_v23 = vpack.c.bf16 %v7260_v47, %v7248_v4 }
 0x3a1   : > { %v7242_v45 = vand.u32 4294901760, %v7241_v2  ;;  %v7254_v18 = vand.u32 4294901760, %v7253_v39  ;;  %v6722_v29 = vsub.f32 %v11962_v21, %v6721_v57  ;;  %v6734_v62 = vsub.f32 %v11985_v13, %v6733_v54 }
 0x3a2   : > { %v7265_v16 = vsub.f32 %v11965_v9, %v12421_v63  ;;  %8697 = vmatpush1.bf16.msra.mxu0 %v11967_v48  ;;  %v8698_v38 = vpack.c.bf16 %v6711_v32, %v6699_v6  ;;  %v7277_v42 = vsub.f32 %v12001_v8, %v7276_v24  ;;  %v8704_v25 = vpack.c.bf16 %v6741_v55, %v6729_v60 }
 0x3a3   : > { %v8752_v19 = vpack.c.bf16 %v7284_v51, %v7272_v27  ;;  %8745 = vmatpush1.bf16.msra.mxu1 %v11981_v43  ;;  %v8746_v50 = vpack.c.bf16 %v7254_v18, %v7242_v45  ;;  %v6723_v4 = vand.u32 4294901760, %v6722_v29  ;;  %v6735_v47 = vand.u32 4294901760, %v6734_v62 }
 0x3a4   : > { %v7266_v2 = vand.u32 4294901760, %v7265_v16  ;;  %8699 = vmatprep.subr.bf16.mxu0 %v8698_v38  ;;  %v7278_v39 = vand.u32 4294901760, %v7277_v42  ;;  %v8706_v35 = vpack.c.bf16 %v11935_v52, %v11904_v56  ;;  %v8754_v63 = vpack.c.bf16 %v11947_v3, %v11908_v44 }
 0x3a5   : > { %v8708_v6 = vpack.c.bf16 %v11923_v28, %v11897_v20  ;;  %8747 = vmatprep.subr.bf16.mxu1 %v8746_v50  ;;  %6689 = vmatmul.mubr.f32.vlgmr.msra.gmra.mrb[24].mxu0 %v11913_v17  ;;  %v8702_v60 = vpack.c.bf16 %v6735_v47, %v6723_v4  ;;  %v8756_v18 = vpack.c.bf16 %v11932_v30, %v11901_v0  ;;  %v12878_v44 = vand.u32 4294901760, %v11965_v9 }
 0x3a6   : > { %v8710_v62 = vpack.c.bf16 %v11985_v13, %v11962_v21  ;;  %7232 = vmatmul.mubr.f32.vlgmr.msra.gmra.mrb[24].mxu1 %v11913_v17  ;;  %8701 = vmatpush1.bf16.msra.mxu0 %v8700_v26  ;;  %v8750_v27 = vpack.c.bf16 %v7278_v39, %v7266_v2  ;;  %v8758_v55 = vpack.c.bf16 %v12001_v8, %v11965_v9  ;;  %v12880_v20 = vand.u32 4294901760, %v11969_v41 }
 0x3a7   : > { %v8712_v51 = vpack.c.bf16 %v11969_v41, %v11957_v36  ;;  %8749 = vmatpush1.bf16.msra.mxu1 %v8748_v23  ;;  %8703 = vmatprep.subr.bf16.mxu0 %v8702_v60  ;;  %v8760_v32 = vpack.c.bf16 %v11983_v22, %v11959_v58  ;;  %v8722_v13 = vpack.c.bf16 %v6709_v40, %v6697_v59  ;;  %v12882_v0 = vand.u32 4294901760, %v11983_v22 }
 0x3a8   : > { %v8770_v17 = vpack.c.bf16 %v7252_v46, %v7240_v12  ;;  %8751 = vmatprep.subr.bf16.mxu1 %v8750_v27  ;;  %6799 = vmatprep.mubr.f32.mxu0 %v12491_v7  ;;  %v8724_v23 = vpack.c.bf16 %v6715_v61, %v6703_v49  ;;  %v8772_v56 = vpack.c.bf16 %v7258_v53, %v7246_v10  ;;  %v12879_v12 = vand.u32 4294901760, %v11957_v36 }
 0x3a9   : > { %v8726_v59 = vpack.c.bf16 %v6733_v54, %v6721_v57  ;;  %7342 = vmatprep.mubr.f32.mxu1 %v12491_v7  ;;  %v8774_v52 = vpack.c.bf16 %v7276_v24, %v12878_v44  ;;  %v12881_v49 = vand.u32 4294901760, %v11959_v58 }
 0x3aa   : > { %v8728_v3 = vpack.c.bf16 %v12880_v20, %v12879_v12  ;;  %8705 = vmatpush1.bf16.msra.mxu0 %v8704_v25 }
 0x3ab   : > { %v8776_v28 = vpack.c.bf16 %v12882_v0, %v12881_v49  ;;  %8753 = vmatpush1.bf16.msra.mxu1 %v8752_v19  ;;  %8707 = vmatprep.subr.bf16.mxu0 %v8706_v35  ;;  %v12885_v19 = vlaneseq }
 0x3ac   : > { %8755 = vmatprep.subr.bf16.mxu1 %v8754_v63 }
 0x3ad   : > { %6801 = vmatmul.mubr.f32.vlgmr.msra.gmra.mrb[24].mxu0 %v11885_v11  ;;  %vm7752_vm2 = vcmp.lt.s32.totalorder %v12885_v19, 512 }
 0x3ae   : > { %7344 = vmatmul.mubr.f32.vlgmr.msra.gmra.mrb[24].mxu1 %v11885_v11  ;;  %8709 = vmatpush1.bf16.msra.mxu0 %v8708_v6 }
 0x3af   : > { %8757 = vmatpush1.bf16.msra.mxu1 %v8756_v18  ;;  %8711 = vmatprep.subr.bf16.mxu0 %v8710_v62 }
 0x3b0   : > { %8759 = vmatprep.subr.bf16.mxu1 %v8758_v55  ;;  %6887 = vmatprep.mubr.f32.mxu0 %v12491_v7 }
 0x3b1   : > { %7430 = vmatprep.mubr.f32.mxu1 %v12491_v7 }
 0x3b2   : > { %8713 = vmatpush1.bf16.msra.mxu0 %v8712_v51 }
 0x3b3   : > { %8761 = vmatpush1.bf16.msra.mxu1 %v8760_v32  ;;  %8715 = vmatprep.subr.bf16.mxu0 %v11992_v14 }
 0x3b4   : > { %8763 = vmatprep.subr.bf16.mxu1 %v11996_v15 }
 0x3b5   : > { %6890 = vmatmul.mubr.f32.vlgmr.msra.gmra.mrb[24].mxu0 %v11888_v5 }
 0x3b6   : > { %7433 = vmatmul.mubr.f32.vlgmr.msra.gmra.mrb[24].mxu1 %v11888_v5  ;;  %8717 = vmatpush1.bf16.msra.mxu0 %v11921_v34  ;;  %v6602_v5 = vpop.permute.xlu0 %6601 }
 0x3b7   : > { %8765 = vmatpush1.bf16.msra.mxu1 %v11930_v33  ;;  %8719 = vmatprep.subr.bf16.mxu0 %v11998_v1 }
 0x3b8   : > { %8767 = vmatprep.subr.bf16.mxu1 %v12004_v37  ;;  %6968 = vmatprep.mubr.f32.mxu0 %v12491_v7 }
 0x3b9   : > { %7511 = vmatprep.mubr.f32.mxu1 %v12491_v7 }
 0x3ba   : > { %8721 = vmatpush1.bf16.msra.mxu0 %v11967_v48 }
 0x3bb   : > { %8769 = vmatpush1.bf16.msra.mxu1 %v11981_v43  ;;  %8723 = vmatprep.subr.bf16.mxu0 %v8722_v13 }
 0x3bc   : > { %8771 = vmatprep.subr.bf16.mxu1 %v8770_v17 }
 0x3bd   : > { %6972 = vmatmul.mubr.f32.vlgmr.msra.gmra.mrb[24].mxu0 %v11891_v31 }
 0x3be   : > { %7515 = vmatmul.mubr.f32.vlgmr.msra.gmra.mrb[24].mxu1 %v11891_v31  ;;  %8725 = vmatpush1.bf16.msra.mxu0 %v8724_v23  ;;  %v12883_v31 = vld [vmem:[#allocation8_spill] sm:$0xff] }
 0x3bf   : > { %8773 = vmatpush1.bf16.msra.mxu1 %v8772_v56  ;;  %8727 = vmatprep.subr.bf16.mxu0 %v8726_v59  ;;  %v6607_v10 = vrot.slane %v6602_v5, %v12883_v31 }
 0x3c0   : > { %8775 = vmatprep.subr.bf16.mxu1 %v8774_v52  ;;  %7066 = vmatprep.mubr.f32.mxu0 %v12491_v7 }
 0x3c1   : > { %7609 = vmatprep.mubr.f32.mxu1 %v12491_v7 }
 0x3c2   : > { %8729 = vmatpush1.bf16.msra.mxu0 %v8728_v3 }
 0x3c3   : > { %8777 = vmatpush1.bf16.msra.mxu1 %v8776_v28  ;;  %8731 = vmatprep.subr.bf16.mxu0 %v11992_v14  ;;  %v9274_v14 = vmov 1966171168  }
 0x3c4   : > { %8779 = vmatprep.subr.bf16.mxu1 %v11996_v15  ;;  %v7728_v15 = vunpack.c.l.s4 %v9274_v14 }
 0x3c5   : > { %7068 = vmatmul.mubr.f32.vlgmr.msra.gmra.mrb[24].mxu0 %v11885_v11 }
 0x3c6   : > { %7611 = vmatmul.mubr.f32.vlgmr.msra.gmra.mrb[24].mxu1 %v11885_v11  ;;  %8733 = vmatpush1.bf16.msra.mxu0 %v11921_v34 }
 0x3c7   : > { %8781 = vmatpush1.bf16.msra.mxu1 %v11930_v33  ;;  %8735 = vmatprep.subr.bf16.mxu0 %v11998_v1  ;;  %v7729_v1 = vunpack.c.0.s8 %v7728_v15 }
 0x3c8   : > { %8783 = vmatprep.subr.bf16.mxu1 %v12004_v37  ;;  %7146 = vmatprep.mubr.f32.mxu0 %v12491_v7  ;;  %v12884_v37 = vld [vmem:[#allocation6_spill] sm:$0xff] }
 0x3c9   : > { %7689 = vmatprep.mubr.f32.mxu1 %v12491_v7  ;;  %v7732_v24 = vsub.s32 %v7729_v1, %v12884_v37 }
 0x3ca   : > { %8737 = vmatpush1.bf16.msra.mxu0 %v11967_v48 }
 0x3cb   : > { %8785 = vmatpush1.bf16.msra.mxu1 %v11981_v43 }
 0x3cd   : > { %7148 = vmatmul.mubr.f32.vlgmr.msra.gmra.mrb[24].mxu0 %v11885_v11 }
 0x3ce   : > { %7691 = vmatmul.mubr.f32.vlgmr.msra.gmra.mrb[24].mxu1 %v11885_v11 }
 0x4a0   : > { %v7149_v34 = vpop.f32.mrb[24].mxu0 }
 0x4a1   : > { %v8786_v33 = vadd.f32 %v7149_v34, %v6607_v10  ;;  %v7692_v30 = vpop.f32.mrb[24].mxu1  ;;  %v7151_v61 = vpop.f32.mrb[25].mxu0 }
 0x4a2   : > { %v8788_v53 = vadd.f32 %v7692_v30, %v6607_v10  ;;  %v8787_v40 = vadd.f32 %v7151_v61, %v6607_v10  ;;  %v7694_v46 = vpop.f32.mrb[25].mxu1 }
 0x4a3   : > { %v8104_v36 = vmul.f32 -1.442695, %v8786_v33  ;;  %v8789_v7 = vadd.f32 %v7694_v46, %v6607_v10 }
 0x4a4   : > { %v8106_v58 = vmul.f32 -1.442695, %v8788_v53  ;;  %v8105_v35 = vmul.f32 -1.442695, %v8787_v40 }
 0x4a5   : > { %9191 = vpow2.f32 %v8104_v36  ;;  %v8107_v21 = vmul.f32 -1.442695, %v8789_v7 }
 0x4a6   : > { %9193 = vpow2.f32 %v8106_v58 }
 0x4a7   : > { %9195 = vpow2.f32 %v8105_v35 }
 0x4a8   : > { %9197 = vpow2.f32 %v8107_v21 }
 0x4af   : > { %v9192_v11 = vpop.eup %9191 }
 0x4b0   : > { %v9194_v9 = vpop.eup %9193  ;;  %v7709_v48 = vadd.f32 1.0, %v9192_v11 }
 0x4b1   : > { %v9196_v41 = vpop.eup %9195  ;;  %v7711_v57 = vadd.f32 1.0, %v9194_v9 }
 0x4b2   : > { %v9198_v63 = vpop.eup %9197  ;;  %9199 = vrcp.f32 %v7709_v48  ;;  %v7710_v43 = vadd.f32 1.0, %v9196_v41 }
 0x4b3   : > { %9201 = vrcp.f32 %v7711_v57  ;;  %v7712_v22 = vadd.f32 1.0, %v9198_v63 }
 0x4b4   : > { %9203 = vrcp.f32 %v7710_v43 }
 0x4b5   : > { %9205 = vrcp.f32 %v7712_v22 }
 0x4bc   : > { %v9200_v54 = vpop.eup %9199 }
 0x4bd   : > { %v9202_v8 = vpop.eup %9201 }
 0x4be   : > { %v9204_v26 = vpop.eup %9203 }
 0x4bf   : > { %v9206_v45 = vpop.eup %9205  ;;  %v7725_v29 = vcombine.low %v9200_v54, %v9204_v26 }
 0x4c0   : > { %v7726_v16 = vcombine.low %v9202_v8, %v9206_v45 }
 0x4c1   : > { %v7733_v38 = vrot.slane %v7725_v29, %v7732_v24 }
 0x4c2   : > { %v7740_v42 = vrot.slane %v7726_v16, %v7732_v24 }
 0x4c4   : > { %v7741_v25 = vcombine.low %v7733_v38, %v7740_v42 }
 0x4c6   : > { %v7748_v50 = vrot.slane %v7741_v25, %v7732_v24 }
 0x4c8   : > { %7754 = vst.msk [vmem:[%s311_s21] sm:$0xf] %vm7752_vm2, %v7748_v50 }
 0x4c9   : > { %9220 = shalt.err (!%p9217_p3)
}
 0x4ca   : > { %s9221_s13 = scalar_lea.hbm %s12131_s25, 64  ;;  %s9225_s19 = scalar_lea.hbm %s12181_s8, 256 }
 0x4cb   : > { %p9222_p4 = scmp.ne.s32.totalorder %s12131_s25, %s9221_s13  ;;  %p9226_p9 = scmp.lt.u32.totalorder %s12131_s25, %s12181_s8 }
 0x4cc   : > { %p9227_p10 = scmp.lt.u32.totalorder %s9225_s19, %s9221_s13  ;;  %p9229_p12 = scmp.lt.u32.totalorder %s9221_s13, %s12131_s25 }
 0x4cd   : > { %p9223_p7 = pnand %p9222_p4, %p9362_p5 }
 0x4ce   : > { %p9228_p11 = por %p9227_p10, %p9226_p9 }
 0x4cf   : > { %p9224_p8 = pneg %p9223_p7 }
 0x4d0   : > { %p9230_p13 = por %p9229_p12, %p9228_p11 }
 0x4d2   : > { %p9231_p0 = pnand %p9230_p13, %p9224_p8 }
 0x4d4   : > { %9234 = shalt.err (!%p9231_p0)
}
 0x4d5   : > { %9146 = dma.vmem_to_hbm [thread:$0]  (%p9362_p5), %s12133_s22, 64, %s12131_s25, %s7756_s26  }
 0x4d6 PF: > { %p9152_p1 = scmp.ge.s32.totalorder %s9269_s10, 2  ;;  %s7782_s23 = sand.u32 1, %s9257_s29  }
 0x4d7   : > { %s7783_s24 = scalar_lea.sflag [#allocation4], %s7782_s23 }
 0x4d8   : > { %p9149_p2 = pnand %p9152_p1, %p9366_p6 }
 0x4da   : > { %9252 = dma.done.wait (!%p9149_p2), %s7783_s24, 64  }
 0x4db   : > { %9254 = vsyncadd (!%p9149_p2), %s7783_s24, 4294967232  ;;  %p20_p3 = scmp.ge.s32.totalorder %s9349_s12, 6   ;;  %s12886_s29 = smov %s9261_s30 }
 0x4dc   : > { %s12887_s30 = smov %s9265_s9  ;;  %s12888_s9 = smov %s9360_s15 }
 0x4dd   : > { %s12889_s10 = smov %s9349_s12  ;;  %22 = sbr.rel (!%p20_p3) target bundleno = 6 (0x6), region = 90 }
 0x4e4   :  { %7788 = vsyncpa [#allocation4], 1 }
 0x4e5   :  { %7790 = vsyncpa [#allocation4 + $0x1], 1 }

</bundles_post_ra>
